<compile_context>
chip_gen: v6e
topology: v6e:2x2x1
jax: 0.10.0
libtpu: 0.0.40
codegen_flags: <defaults>
</compile_context>

<pallas_src>
import functools

import jax
import jax.numpy as jnp
from jax import lax
from jax.experimental import pallas as pl
from jax.experimental.pallas import tpu as pltpu


def _round_up(x, m):
    return ((x + m - 1) // m) * m


# ------------------------------ kernel --------------------------------------

def bottleneck_kernel(x_ref, w1_ref, s1_ref, b1_ref,
                      w2_ref, s2_ref, b2_ref,
                      w3_ref, s3_ref, b3_ref,
                      o_ref, pad_ref, *, H, W):
    HW = H * W
    Cmid_p = w1_ref.shape[1]

    x_bf = x_ref[0]                                  # (HW, Cin_p) bf16
    x_f32 = x_bf.astype(jnp.float32)                 # residual path in f32

    # ---- conv1 (1x1) + bn1 + relu : single lane-dense MXU matmul ----------
    h1 = jnp.dot(x_bf, w1_ref[...], preferred_element_type=jnp.float32)
    h1 = jnp.maximum(h1 * s1_ref[...] + b1_ref[...], 0.0)   # (HW, Cmid_p) f32

    # ---- conv2 (3x3, stride 1, pad 1) + bn2 + relu -------------------------
    # Only the 1-pixel halo of the persistent scratch is zeroed (cheap: four
    # thin slabs).  It is done every step (not under program_id==0) so the
    # kernel stays correct when the "parallel" batch axis is sharded across
    # TensorCores, each with its own private scratch.
    zrow = jnp.zeros((1, W + 2, Cmid_p), pad_ref.dtype)
    zcol = jnp.zeros((H + 2, 1, Cmid_p), pad_ref.dtype)
    pad_ref[0:1, :, :] = zrow
    pad_ref[H + 1:H + 2, :, :] = zrow
    pad_ref[:, 0:1, :] = zcol
    pad_ref[:, W + 1:W + 2, :] = zcol
    pad_ref[1:H + 1, 1:W + 1, :] = (
        h1.astype(pad_ref.dtype).reshape(H, W, Cmid_p))

    # im2col: one MXU push with K = 9*Cmid_p instead of 9 shallow matmuls
    # plus 9 VPU accumulator adds.
    taps = []
    for dy in range(3):
        for dx in range(3):
            taps.append(pad_ref[dy:dy + H, dx:dx + W, :].reshape(HW, Cmid_p))
    h1_col = jnp.concatenate(taps, axis=-1)          # (HW, 9*Cmid_p) bf16
    h2 = jnp.dot(h1_col, w2_ref[...], preferred_element_type=jnp.float32)
    h2 = jnp.maximum(h2 * s2_ref[...] + b2_ref[...], 0.0)   # (HW, Cmid_p) f32

    # ---- conv3 (1x1) + bn3 + residual + relu -------------------------------
    h3 = jnp.dot(h2.astype(jnp.bfloat16), w3_ref[...],
                 preferred_element_type=jnp.float32)
    h3 = h3 * s3_ref[...] + b3_ref[...] + x_f32
    o_ref[0] = jnp.maximum(h3, 0.0)                  # full 128-lane store


# ------------------------------ wrapper -------------------------------------

def bottleneck_forward(x_nchw, p):
    """x_nchw: (B, Cin, H, W) float32.  p: dict of packed kernel params."""
    B, Cin, H, W = x_nchw.shape
    Cin_p, Cmid_p = p["w1"].shape
    Cout_p = p["w3"].shape[1]
    Cout = Cin            # downsample=None requires inplanes == planes * 4
    HW = H * W

    # NCHW -> (B, H*W, C): spatial flattening done here (free in XLA) so the
    # kernel has no input/output reshapes; channels padded to 128, bf16.
    x = jnp.transpose(x_nchw, (0, 2, 3, 1)).reshape(B, HW, Cin)
    x = jnp.pad(x, ((0, 0), (0, 0), (0, Cin_p - Cin))).astype(jnp.bfloat16)

    def full(shape):
        # Constant (grid-invariant) operands; no second pipeline buffer is
        # needed for them, but single-buffering is left to the compiler here.
        return pl.BlockSpec(shape, lambda b, n=len(shape): (0,) * n)

    kernel = functools.partial(bottleneck_kernel, H=H, W=W)

    out = pl.pallas_call(
        kernel,
        out_shape=jax.ShapeDtypeStruct((B, HW, Cout_p), jnp.float32),
        grid_spec=pltpu.PrefetchScalarGridSpec(
            num_scalar_prefetch=0,
            grid=(B,),
            in_specs=[
                pl.BlockSpec((1, HW, Cin_p), lambda b: (b, 0, 0)),
                full((Cin_p, Cmid_p)),
                full((1, Cmid_p)), full((1, Cmid_p)),
                full((9 * Cmid_p, Cmid_p)),
                full((1, Cmid_p)), full((1, Cmid_p)),
                full((Cmid_p, Cout_p)),
                full((1, Cout_p)), full((1, Cout_p)),
            ],
            out_specs=pl.BlockSpec((1, HW, Cout_p), lambda b: (b, 0, 0)),
            scratch_shapes=[
                pltpu.VMEM((H + 2, W + 2, Cmid_p), jnp.bfloat16)],
        ),
        compiler_params=pltpu.CompilerParams(
            dimension_semantics=("parallel",),        # batch across TCs (v7x)
            vmem_limit_bytes=32 * 1024 * 1024),       # raise v5e's 16 MiB default
    )(x, p["w1"], p["s1"], p["b1"], p["w2"], p["s2"], p["b2"],
      p["w3"], p["s3"], p["b3"])

    out = out[:, :, :Cout].reshape(B, H, W, Cout)
    return jnp.transpose(out, (0, 3, 1, 2))           # back to NCHW


# ----------------------- parameter construction -----------------------------

def fold_bn(gamma, beta, mean, var, eps=1e-5):
    scale = gamma / jnp.sqrt(var + eps)
    bias = beta - mean * scale
    return scale.astype(jnp.float32), bias.astype(jnp.float32)


def _pad_axis(a, axis, target):
    pw = [(0, 0)] * a.ndim
    pw[axis] = (0, target - a.shape[axis])
    return jnp.pad(a, pw)


def make_params(key, inplanes, planes, eps=1e-5):
    cmid, cout, cin = planes, planes * 4, inplanes
    cin_p = _round_up(cin, 128)
    cmid_p = _round_up(cmid, 128)
    cout_p = _round_up(cout, 128)

    ks = jax.random.split(key, 6)
    # PyTorch-layout conv weights (OIHW), no bias.
    w1_pt = jax.random.normal(ks[0], (cmid, cin, 1, 1), jnp.float32) * 0.1
    w2_pt = jax.random.normal(ks[1], (cmid, cmid, 3, 3), jnp.float32) * 0.1
    w3_pt = jax.random.normal(ks[2], (cout, cmid, 1, 1), jnp.float32) * 0.1

    def bn_raw(k, c):
        k1, k2, k3, k4 = jax.random.split(k, 4)
        gamma = 1.0 + 0.1 * jax.random.normal(k1, (c,), jnp.float32)
        beta = 0.1 * jax.random.normal(k2, (c,), jnp.float32)
        mean = 0.1 * jax.random.normal(k3, (c,), jnp.float32)
        var = 0.5 + jnp.abs(jax.random.normal(k4, (c,), jnp.float32))
        return gamma, beta, mean, var

    bn1, bn2, bn3 = bn_raw(ks[3], cmid), bn_raw(ks[4], cmid), bn_raw(ks[5], cout)
    raw = dict(w1=w1_pt, w2=w2_pt, w3=w3_pt, bn1=bn1, bn2=bn2, bn3=bn3)

    s1, b1 = fold_bn(*bn1, eps=eps)
    s2, b2 = fold_bn(*bn2, eps=eps)
    s3, b3 = fold_bn(*bn3, eps=eps)

    # conv1: (Cin_p, Cmid_p) bf16
    w1_k = _pad_axis(_pad_axis(jnp.transpose(w1_pt[:, :, 0, 0], (1, 0)),
                               0, cin_p), 1, cmid_p).astype(jnp.bfloat16)
    # conv2: OIHW -> (kh, kw, cin, cout), pad channels, flatten taps -> rows.
    w2_hwio = jnp.transpose(w2_pt, (2, 3, 1, 0))
    w2_hwio = _pad_axis(_pad_axis(w2_hwio, 2, cmid_p), 3, cmid_p)
    w2_k = w2_hwio.reshape(9 * cmid_p, cmid_p).astype(jnp.bfloat16)
    # conv3: (Cmid_p, Cout_p) bf16
    w3_k = _pad_axis(_pad_axis(jnp.transpose(w3_pt[:, :, 0, 0], (1, 0)),
                               0, cmid_p), 1, cout_p).astype(jnp.bfloat16)

    def pad_vec(v, c_p):
        return _pad_axis(v.reshape(1, -1), 1, c_p)

    kernel_p = dict(
        w1=w1_k, w2=w2_k, w3=w3_k,
        s1=pad_vec(s1, cmid_p), b1=pad_vec(b1, cmid_p),
        s2=pad_vec(s2, cmid_p), b2=pad_vec(b2, cmid_p),
        s3=pad_vec(s3, cout_p), b3=pad_vec(b3, cout_p),
    )
    return raw, kernel_p


# ----------------------- pure-JAX reference (NCHW) --------------------------

def ref_bottleneck(x, raw, eps=1e-5):
    def conv(x, w, pad):
        return lax.conv_general_dilated(
            x, w, window_strides=(1, 1), padding=pad,
            dimension_numbers=("NCHW", "OIHW", "NCHW"))

    def bn(x, params):
        gamma, beta, mean, var = params
        sh = (1, -1, 1, 1)
        return (x - mean.reshape(sh)) / jnp.sqrt(var.reshape(sh) + eps) \
            * gamma.reshape(sh) + beta.reshape(sh)

    out = jnp.maximum(bn(conv(x, raw["w1"], [(0, 0), (0, 0)]), raw["bn1"]), 0.0)
    out = jnp.maximum(bn(conv(out, raw["w2"], [(1, 1), (1, 1)]), raw["bn2"]), 0.0)
    out = bn(conv(out, raw["w3"], [(0, 0), (0, 0)]), raw["bn3"])
    return jnp.maximum(out + x, 0.0)


if __name__ == "__main__":
    planes = 8
    inplanes = planes * 4          # required for downsample=None residual add
    B, H, W = 2, 16, 16

    key = jax.random.PRNGKey(0)
    kx, kp = jax.random.split(key)
    x = jax.random.normal(kx, (B, inplanes, H, W), jnp.float32)
    raw, kernel_p = make_params(kp, inplanes, planes)

    out = jax.block_until_ready(bottleneck_forward(x, kernel_p))
    ref = jax.block_until_ready(ref_bottleneck(x, raw))

    assert out.shape == (B, planes * 4, H, W)
    # bf16 matmul inputs -> looser tolerance than a pure-f32 pipeline.
    assert jnp.allclose(out, ref, atol=5e-2, rtol=5e-2), (
        float(jnp.max(jnp.abs(out - ref))))
    print("KERNEL_OK")
</pallas_src>

<mosaic_0001>
module attributes {stable_mosaic.version = 11 : i64} {
  func.func @bottleneck_kernel(%arg0: i32, %arg1: memref<1x256x128xbf16, #tpu.memory_space<vmem>>, %arg2: memref<128x128xbf16, #tpu.memory_space<vmem>>, %arg3: memref<1x128xf32, #tpu.memory_space<vmem>>, %arg4: memref<1x128xf32, #tpu.memory_space<vmem>>, %arg5: memref<1152x128xbf16, #tpu.memory_space<vmem>>, %arg6: memref<1x128xf32, #tpu.memory_space<vmem>>, %arg7: memref<1x128xf32, #tpu.memory_space<vmem>>, %arg8: memref<128x128xbf16, #tpu.memory_space<vmem>>, %arg9: memref<1x128xf32, #tpu.memory_space<vmem>>, %arg10: memref<1x128xf32, #tpu.memory_space<vmem>>, %arg11: memref<1x256x128xf32, #tpu.memory_space<vmem>>, %arg12: memref<18x18x128xbf16, #tpu.memory_space<vmem>>) attributes {dimension_semantics = [#tpu.dimension_semantics<parallel>], iteration_bounds = array<i64: 2>, scalar_prefetch = 0 : i64, scratch_operands = 1 : i64, tpu.core_type = #tpu.core_type<tc>, window_params = [{transform_indices = @transform_0, window_bounds = array<i64: 1, 256, 128>}, {pipeline_mode = #tpu.pipeline_mode<synchronous>, transform_indices = @transform_1, window_bounds = array<i64: 128, 128>}, {pipeline_mode = #tpu.pipeline_mode<synchronous>, transform_indices = @transform_2, window_bounds = array<i64: 1, 128>}, {pipeline_mode = #tpu.pipeline_mode<synchronous>, transform_indices = @transform_3, window_bounds = array<i64: 1, 128>}, {pipeline_mode = #tpu.pipeline_mode<synchronous>, transform_indices = @transform_4, window_bounds = array<i64: 1152, 128>}, {pipeline_mode = #tpu.pipeline_mode<synchronous>, transform_indices = @transform_5, window_bounds = array<i64: 1, 128>}, {pipeline_mode = #tpu.pipeline_mode<synchronous>, transform_indices = @transform_6, window_bounds = array<i64: 1, 128>}, {pipeline_mode = #tpu.pipeline_mode<synchronous>, transform_indices = @transform_7, window_bounds = array<i64: 128, 128>}, {pipeline_mode = #tpu.pipeline_mode<synchronous>, transform_indices = @transform_8, window_bounds = array<i64: 1, 128>}, {pipeline_mode = #tpu.pipeline_mode<synchronous>, transform_indices = @transform_9, window_bounds = array<i64: 1, 128>}, {transform_indices = @transform_10, window_bounds = array<i64: 1, 256, 128>}]} {
    %c0 = arith.constant 0 : index
    %c0_0 = arith.constant 0 : index
    %c0_1 = arith.constant 0 : index
    %0 = vector.load %arg1[%c0, %c0_0, %c0_1] : memref<1x256x128xbf16, #tpu.memory_space<vmem>>, vector<1x256x128xbf16>
    %1 = vector.shape_cast %0 : vector<1x256x128xbf16> to vector<256x128xbf16>
    %2 = arith.extf %1 : vector<256x128xbf16> to vector<256x128xf32>
    %c0_2 = arith.constant 0 : index
    %c0_3 = arith.constant 0 : index
    %3 = vector.load %arg2[%c0_2, %c0_3] : memref<128x128xbf16, #tpu.memory_space<vmem>>, vector<128x128xbf16>
    %cst = arith.constant dense<0.000000e+00> : vector<256x128xf32>
    %4 = tpu.matmul %1, %3, %cst {dimension_numbers = #tpu.dot_dimension_numbers<[1], [0], [0], [1], [0, 0, 1, 1], [], []>} : vector<256x128xbf16>, vector<128x128xbf16>, vector<256x128xf32> -> vector<256x128xf32>
    %c0_4 = arith.constant 0 : index
    %c0_5 = arith.constant 0 : index
    %5 = vector.load %arg3[%c0_4, %c0_5] : memref<1x128xf32, #tpu.memory_space<vmem>>, vector<1x128xf32>
    %6 = vector.broadcast %5 : vector<1x128xf32> to vector<256x128xf32>
    %7 = arith.mulf %4, %6 : vector<256x128xf32>
    %c0_6 = arith.constant 0 : index
    %c0_7 = arith.constant 0 : index
    %8 = vector.load %arg4[%c0_6, %c0_7] : memref<1x128xf32, #tpu.memory_space<vmem>>, vector<1x128xf32>
    %9 = vector.broadcast %8 : vector<1x128xf32> to vector<256x128xf32>
    %10 = arith.addf %7, %9 : vector<256x128xf32>
    %cst_8 = arith.constant 0.000000e+00 : f32
    %11 = vector.broadcast %cst_8 : f32 to vector<256x128xf32>
    %12 = arith.maximumf %10, %11 : vector<256x128xf32>
    %cst_9 = arith.constant 0.000000e+00 : bf16
    %13 = vector.broadcast %cst_9 : bf16 to vector<1x18x128xbf16>
    %cst_10 = arith.constant 0.000000e+00 : bf16
    %14 = vector.broadcast %cst_10 : bf16 to vector<18x1x128xbf16>
    %c0_11 = arith.constant 0 : index
    %c0_12 = arith.constant 0 : index
    %c0_13 = arith.constant 0 : index
    %15 = vector.load %arg12[%c0_11, %c0_12, %c0_13] : memref<18x18x128xbf16, #tpu.memory_space<vmem>>, vector<1x18x128xbf16>
    tpu.vector_store %arg12[%c0_11, %c0_12, %c0_13], %13 {strides = array<i32>} : memref<18x18x128xbf16, #tpu.memory_space<vmem>>, vector<1x18x128xbf16>,
    %c17 = arith.constant 17 : index
    %c0_14 = arith.constant 0 : index
    %c0_15 = arith.constant 0 : index
    %16 = vector.load %arg12[%c17, %c0_14, %c0_15] : memref<18x18x128xbf16, #tpu.memory_space<vmem>>, vector<1x18x128xbf16>
    tpu.vector_store %arg12[%c17, %c0_14, %c0_15], %13 {strides = array<i32>} : memref<18x18x128xbf16, #tpu.memory_space<vmem>>, vector<1x18x128xbf16>,
    %c0_16 = arith.constant 0 : index
    %c0_17 = arith.constant 0 : index
    %c0_18 = arith.constant 0 : index
    %17 = vector.load %arg12[%c0_16, %c0_17, %c0_18] : memref<18x18x128xbf16, #tpu.memory_space<vmem>>, vector<18x1x128xbf16>
    tpu.vector_store %arg12[%c0_16, %c0_17, %c0_18], %14 {strides = array<i32>} : memref<18x18x128xbf16, #tpu.memory_space<vmem>>, vector<18x1x128xbf16>,
    %c0_19 = arith.constant 0 : index
    %c17_20 = arith.constant 17 : index
    %c0_21 = arith.constant 0 : index
    %18 = vector.load %arg12[%c0_19, %c17_20, %c0_21] : memref<18x18x128xbf16, #tpu.memory_space<vmem>>, vector<18x1x128xbf16>
    tpu.vector_store %arg12[%c0_19, %c17_20, %c0_21], %14 {strides = array<i32>} : memref<18x18x128xbf16, #tpu.memory_space<vmem>>, vector<18x1x128xbf16>,
    %19 = arith.truncf %12 : vector<256x128xf32> to vector<256x128xbf16>
    %20 = vector.shape_cast %19 : vector<256x128xbf16> to vector<16x16x128xbf16>
    %c1 = arith.constant 1 : index
    %c1_22 = arith.constant 1 : index
    %c0_23 = arith.constant 0 : index
    %21 = vector.load %arg12[%c1, %c1_22, %c0_23] : memref<18x18x128xbf16, #tpu.memory_space<vmem>>, vector<16x16x128xbf16>
    tpu.vector_store %arg12[%c1, %c1_22, %c0_23], %20 {strides = array<i32>} : memref<18x18x128xbf16, #tpu.memory_space<vmem>>, vector<16x16x128xbf16>,
    %c0_24 = arith.constant 0 : index
    %c0_25 = arith.constant 0 : index
    %c0_26 = arith.constant 0 : index
    %22 = vector.load %arg12[%c0_24, %c0_25, %c0_26] : memref<18x18x128xbf16, #tpu.memory_space<vmem>>, vector<16x16x128xbf16>
    %23 = vector.shape_cast %22 : vector<16x16x128xbf16> to vector<256x128xbf16>
    %c0_27 = arith.constant 0 : index
    %c1_28 = arith.constant 1 : index
    %c0_29 = arith.constant 0 : index
    %24 = vector.load %arg12[%c0_27, %c1_28, %c0_29] : memref<18x18x128xbf16, #tpu.memory_space<vmem>>, vector<16x16x128xbf16>
    %25 = vector.shape_cast %24 : vector<16x16x128xbf16> to vector<256x128xbf16>
    %c0_30 = arith.constant 0 : index
    %c2 = arith.constant 2 : index
    %c0_31 = arith.constant 0 : index
    %26 = vector.load %arg12[%c0_30, %c2, %c0_31] : memref<18x18x128xbf16, #tpu.memory_space<vmem>>, vector<16x16x128xbf16>
    %27 = vector.shape_cast %26 : vector<16x16x128xbf16> to vector<256x128xbf16>
    %c1_32 = arith.constant 1 : index
    %c0_33 = arith.constant 0 : index
    %c0_34 = arith.constant 0 : index
    %28 = vector.load %arg12[%c1_32, %c0_33, %c0_34] : memref<18x18x128xbf16, #tpu.memory_space<vmem>>, vector<16x16x128xbf16>
    %29 = vector.shape_cast %28 : vector<16x16x128xbf16> to vector<256x128xbf16>
    %c1_35 = arith.constant 1 : index
    %c1_36 = arith.constant 1 : index
    %c0_37 = arith.constant 0 : index
    %30 = vector.load %arg12[%c1_35, %c1_36, %c0_37] : memref<18x18x128xbf16, #tpu.memory_space<vmem>>, vector<16x16x128xbf16>
    %31 = vector.shape_cast %30 : vector<16x16x128xbf16> to vector<256x128xbf16>
    %c1_38 = arith.constant 1 : index
    %c2_39 = arith.constant 2 : index
    %c0_40 = arith.constant 0 : index
    %32 = vector.load %arg12[%c1_38, %c2_39, %c0_40] : memref<18x18x128xbf16, #tpu.memory_space<vmem>>, vector<16x16x128xbf16>
    %33 = vector.shape_cast %32 : vector<16x16x128xbf16> to vector<256x128xbf16>
    %c2_41 = arith.constant 2 : index
    %c0_42 = arith.constant 0 : index
    %c0_43 = arith.constant 0 : index
    %34 = vector.load %arg12[%c2_41, %c0_42, %c0_43] : memref<18x18x128xbf16, #tpu.memory_space<vmem>>, vector<16x16x128xbf16>
    %35 = vector.shape_cast %34 : vector<16x16x128xbf16> to vector<256x128xbf16>
    %c2_44 = arith.constant 2 : index
    %c1_45 = arith.constant 1 : index
    %c0_46 = arith.constant 0 : index
    %36 = vector.load %arg12[%c2_44, %c1_45, %c0_46] : memref<18x18x128xbf16, #tpu.memory_space<vmem>>, vector<16x16x128xbf16>
    %37 = vector.shape_cast %36 : vector<16x16x128xbf16> to vector<256x128xbf16>
    %c2_47 = arith.constant 2 : index
    %c2_48 = arith.constant 2 : index
    %c0_49 = arith.constant 0 : index
    %38 = vector.load %arg12[%c2_47, %c2_48, %c0_49] : memref<18x18x128xbf16, #tpu.memory_space<vmem>>, vector<16x16x128xbf16>
    %39 = vector.shape_cast %38 : vector<16x16x128xbf16> to vector<256x128xbf16>
    %40 = tpu.concatenate %23, %25, %27, %29, %31, %33, %35, %37, %39 in 1 : vector<256x128xbf16>, vector<256x128xbf16>, vector<256x128xbf16>, vector<256x128xbf16>, vector<256x128xbf16>, vector<256x128xbf16>, vector<256x128xbf16>, vector<256x128xbf16>, vector<256x128xbf16> -> vector<256x1152xbf16>
    %c0_50 = arith.constant 0 : index
    %c0_51 = arith.constant 0 : index
    %41 = vector.load %arg5[%c0_50, %c0_51] : memref<1152x128xbf16, #tpu.memory_space<vmem>>, vector<1152x128xbf16>
    %cst_52 = arith.constant dense<0.000000e+00> : vector<256x128xf32>
    %42 = tpu.matmul %40, %41, %cst_52 {dimension_numbers = #tpu.dot_dimension_numbers<[1], [0], [0], [1], [0, 0, 1, 1], [], []>} : vector<256x1152xbf16>, vector<1152x128xbf16>, vector<256x128xf32> -> vector<256x128xf32>
    %c0_53 = arith.constant 0 : index
    %c0_54 = arith.constant 0 : index
    %43 = vector.load %arg6[%c0_53, %c0_54] : memref<1x128xf32, #tpu.memory_space<vmem>>, vector<1x128xf32>
    %44 = vector.broadcast %43 : vector<1x128xf32> to vector<256x128xf32>
    %45 = arith.mulf %42, %44 : vector<256x128xf32>
    %c0_55 = arith.constant 0 : index
    %c0_56 = arith.constant 0 : index
    %46 = vector.load %arg7[%c0_55, %c0_56] : memref<1x128xf32, #tpu.memory_space<vmem>>, vector<1x128xf32>
    %47 = vector.broadcast %46 : vector<1x128xf32> to vector<256x128xf32>
    %48 = arith.addf %45, %47 : vector<256x128xf32>
    %cst_57 = arith.constant 0.000000e+00 : f32
    %49 = vector.broadcast %cst_57 : f32 to vector<256x128xf32>
    %50 = arith.maximumf %48, %49 : vector<256x128xf32>
    %51 = arith.truncf %50 : vector<256x128xf32> to vector<256x128xbf16>
    %c0_58 = arith.constant 0 : index
    %c0_59 = arith.constant 0 : index
    %52 = vector.load %arg8[%c0_58, %c0_59] : memref<128x128xbf16, #tpu.memory_space<vmem>>, vector<128x128xbf16>
    %cst_60 = arith.constant dense<0.000000e+00> : vector<256x128xf32>
    %53 = tpu.matmul %51, %52, %cst_60 {dimension_numbers = #tpu.dot_dimension_numbers<[1], [0], [0], [1], [0, 0, 1, 1], [], []>} : vector<256x128xbf16>, vector<128x128xbf16>, vector<256x128xf32> -> vector<256x128xf32>
    %c0_61 = arith.constant 0 : index
    %c0_62 = arith.constant 0 : index
    %54 = vector.load %arg9[%c0_61, %c0_62] : memref<1x128xf32, #tpu.memory_space<vmem>>, vector<1x128xf32>
    %55 = vector.broadcast %54 : vector<1x128xf32> to vector<256x128xf32>
    %56 = arith.mulf %53, %55 : vector<256x128xf32>
    %c0_63 = arith.constant 0 : index
    %c0_64 = arith.constant 0 : index
    %57 = vector.load %arg10[%c0_63, %c0_64] : memref<1x128xf32, #tpu.memory_space<vmem>>, vector<1x128xf32>
    %58 = vector.broadcast %57 : vector<1x128xf32> to vector<256x128xf32>
    %59 = arith.addf %56, %58 : vector<256x128xf32>
    %60 = arith.addf %59, %2 : vector<256x128xf32>
    %cst_65 = arith.constant 0.000000e+00 : f32
    %61 = vector.broadcast %cst_65 : f32 to vector<256x128xf32>
    %62 = arith.maximumf %60, %61 : vector<256x128xf32>
    %c0_66 = arith.constant 0 : index
    %c0_67 = arith.constant 0 : index
    %c0_68 = arith.constant 0 : index
    %63 = vector.load %arg11[%c0_66, %c0_67, %c0_68] : memref<1x256x128xf32, #tpu.memory_space<vmem>>, vector<1x256x128xf32>
    %64 = vector.shape_cast %63 : vector<1x256x128xf32> to vector<256x128xf32>
    %65 = vector.shape_cast %62 : vector<256x128xf32> to vector<1x256x128xf32>
    tpu.vector_store %arg11[%c0_66, %c0_67, %c0_68], %65 {strides = array<i32>} : memref<1x256x128xf32, #tpu.memory_space<vmem>>, vector<1x256x128xf32>,
    return
  }
  func.func @transform_0(%arg0: i32) -> (i32, i32, i32) {
    %c0_i32 = arith.constant 0 : i32
    %c0_i32_0 = arith.constant 0 : i32
    %c0_i32_1 = arith.constant 0 : i32
    return %arg0, %c0_i32, %c0_i32_0 : i32, i32, i32
  }
  func.func @transform_1(%arg0: i32) -> (i32, i32) {
    %c0_i32 = arith.constant 0 : i32
    %c0_i32_0 = arith.constant 0 : i32
    %c0_i32_1 = arith.constant 0 : i32
    return %c0_i32, %c0_i32_0 : i32, i32
  }
  func.func @transform_2(%arg0: i32) -> (i32, i32) {
    %c0_i32 = arith.constant 0 : i32
    %c0_i32_0 = arith.constant 0 : i32
    %c0_i32_1 = arith.constant 0 : i32
    return %c0_i32, %c0_i32_0 : i32, i32
  }
  func.func @transform_3(%arg0: i32) -> (i32, i32) {
    %c0_i32 = arith.constant 0 : i32
    %c0_i32_0 = arith.constant 0 : i32
    %c0_i32_1 = arith.constant 0 : i32
    return %c0_i32, %c0_i32_0 : i32, i32
  }
  func.func @transform_4(%arg0: i32) -> (i32, i32) {
    %c0_i32 = arith.constant 0 : i32
    %c0_i32_0 = arith.constant 0 : i32
    %c0_i32_1 = arith.constant 0 : i32
    return %c0_i32, %c0_i32_0 : i32, i32
  }
  func.func @transform_5(%arg0: i32) -> (i32, i32) {
    %c0_i32 = arith.constant 0 : i32
    %c0_i32_0 = arith.constant 0 : i32
    %c0_i32_1 = arith.constant 0 : i32
    return %c0_i32, %c0_i32_0 : i32, i32
  }
  func.func @transform_6(%arg0: i32) -> (i32, i32) {
    %c0_i32 = arith.constant 0 : i32
    %c0_i32_0 = arith.constant 0 : i32
    %c0_i32_1 = arith.constant 0 : i32
    return %c0_i32, %c0_i32_0 : i32, i32
  }
  func.func @transform_7(%arg0: i32) -> (i32, i32) {
    %c0_i32 = arith.constant 0 : i32
    %c0_i32_0 = arith.constant 0 : i32
    %c0_i32_1 = arith.constant 0 : i32
    return %c0_i32, %c0_i32_0 : i32, i32
  }
  func.func @transform_8(%arg0: i32) -> (i32, i32) {
    %c0_i32 = arith.constant 0 : i32
    %c0_i32_0 = arith.constant 0 : i32
    %c0_i32_1 = arith.constant 0 : i32
    return %c0_i32, %c0_i32_0 : i32, i32
  }
  func.func @transform_9(%arg0: i32) -> (i32, i32) {
    %c0_i32 = arith.constant 0 : i32
    %c0_i32_0 = arith.constant 0 : i32
    %c0_i32_1 = arith.constant 0 : i32
    return %c0_i32, %c0_i32_0 : i32, i32
  }
  func.func @transform_10(%arg0: i32) -> (i32, i32, i32) {
    %c0_i32 = arith.constant 0 : i32
    %c0_i32_0 = arith.constant 0 : i32
    %c0_i32_1 = arith.constant 0 : i32
    return %arg0, %c0_i32, %c0_i32_0 : i32, i32, i32
  }
}

</mosaic_0001>

<bundles_post_ra>
// kernel: tpu_custom_call.1
= control target key start
LH: loop header
LB: loop body
LE: loop exit
PB: predicated region body
PF: predicated region fallthrough
CT: control target
= control target key end

     0   :  { %s10144_s0 = inlined_call_operand.hbm [shape: bf16[2,256,128], index: 0, kind: input, shape index: {}]   ;;  %s10145_s1 = inlined_call_operand.hbm [shape: bf16[128,128], index: 1, kind: input, shape index: {}]   ;;  %s10146_s2 = inlined_call_operand.vmem [shape: f32[1,128], index: 2, kind: input, shape index: {}]   ;;  %s10147_s3 = inlined_call_operand.vmem [shape: f32[1,128], index: 3, kind: input, shape index: {}]   ;;  %s10148_s4 = inlined_call_operand.hbm [shape: bf16[1152,128], index: 4, kind: input, shape index: {}]   ;;  %s10149_s5 = inlined_call_operand.vmem [shape: f32[1,128], index: 5, kind: input, shape index: {}]   ;;  %s10150_s6 = inlined_call_operand.vmem [shape: f32[1,128], index: 6, kind: input, shape index: {}]   ;;  %s10151_s7 = inlined_call_operand.hbm [shape: bf16[128,128], index: 7, kind: input, shape index: {}]   ;;  %s10152_s8 = inlined_call_operand.vmem [shape: f32[1,128], index: 8, kind: input, shape index: {}]   ;;  %s10153_s9 = inlined_call_operand.vmem [shape: f32[1,128], index: 9, kind: input, shape index: {}]   ;;  %s10154_s10 = inlined_call_operand.hbm [shape: f32[2,256,128], index: 10, kind: output, shape index: {}]  }
   0x1   :  { %10178 = sst [smem:[#allocation59_spill]] %s10145_s1 }
   0x2   :  { %10179 = sst [smem:[#allocation60_spill]] %s10148_s4 }
   0x3   :  { %10180 = sst [smem:[#allocation61_spill]] %s10151_s7 }
   0x4   :  { %15 = vsyncpa [#allocation4], 0 }
   0x5   :  { %17 = vsyncpa [#allocation4 + $0x1], 0 }
   0x6   :  { %18 = vsyncpa [#allocation7], 0 }
   0x7   :  { %19 = vsyncpa [#allocation10], 0 }
   0x8   :  { %20 = vsyncpa [#allocation5], 0 }
   0x9   :  { %22 = vsyncpa [#allocation5 + $0x1], 0  ;;  %s7665_s13 = smov 0   ;;  %s7667_s14 = smov 0  }
   0xa   :  { %s7669_s15 = smov 0   ;;  %s7671_s16 = smov 0  }
   0xb LB: > { %s7686_s17 = sadd.s32 4294967295, %s7598_s16   ;;  %s6048_s18 = sadd.s32 4294967294, %s7598_s16   ;;  %s7598_s16 = sphi %s7671_s16, %s10389_s16   ;;  %s7594_s15 = sphi %s7669_s15, %s10388_s15   ;;  %s7590_s14 = sphi %s7667_s14, %s10387_s14   ;;  %s7586_s13 = sphi %s7665_s13, %s10386_s13  }
   0xc   : > { %p48_p0 = scmp.ne.s32.totalorder %s7590_s14, %s7586_s13  ;;  %p10155_p1 = scmp.eq.s32.totalorder %s7686_s17, 0 }
   0xd   : > { %p261_p2 = scmp.eq.s32.totalorder %s7686_s17, 1  ;;  %p267_p3 = scmp.eq.s32.totalorder %s6048_s18, 1 }
   0xe   : > { %p7695_p4 = por %p10155_p1, %p48_p0  ;;  %p6049_p5 = scmp.ge.s32.totalorder %s7598_s16, 1 }
   0xf   : > { %p7700_p6 = por %p267_p3, %p48_p0  ;;  %p274_p7 = scmp.lt.s32.totalorder %s7598_s16, 3 }
  0x10   : > { %s10181_s19 = scalar_select %p7695_p4, 1, 0 }
  0x11   : > { %s10182_s20 = scalar_select %p7700_p6, 1, 0 }
  0x12   : > { %p7705_p8 = pnand %p6049_p5, %p274_p7  ;;  %s7600_s22 = smov [#allocation6]  }
  0x13   : > { %s286_s23 = sshll.u32 %s7600_s22, 4  ;;  %s7601_s25 = smov [#allocation8]   ;;  %s287_s23 = int_to_ptr.vmem [resolvable:$true] %s286_s23 }
  0x14   : > { %s10183_s21 = scalar_select %p7705_p8, 1, 0 }
  0x15   : > { %p7132_p9 = pneg %p7705_p8  ;;  %s305_s26 = sshll.u32 %s7601_s25, 4  ;;  %s306_s26 = int_to_ptr.vmem [resolvable:$true] %s305_s26 }
  0x16   : > { %s7602_s27 = smov [#allocation9]   ;;  %s7431_s29 = scalar_lea.vmem %s287_s23, 1024 }
  0x17   : > { %p7714_p11 = pnand %p7132_p9, %p10155_p1  ;;  %s324_s28 = sshll.u32 %s7602_s27, 4  ;;  %s325_s28 = int_to_ptr.vmem [resolvable:$true] %s324_s28 }
  0x18   : > { %p7432_p13 = scmp.ne.s32.totalorder %s287_s23, %s7431_s29  ;;  %p7439_p5 = scmp.lt.s32.totalorder %s287_s23, %s287_s23 }
  0x19   : > { %p7422_p12 = pneg %p7714_p11  ;;  %p7440_p7 = scmp.lt.s32.totalorder %s7431_s29, %s7431_s29 }
  0x1b   : > { %p7434_p0 = pnand %p7432_p13, %p7422_p12  ;;  %p7441_p9 = por %p7440_p7, %p7439_p5 }
  0x1d   : > { %p7435_p3 = pneg %p7434_p0 }
  0x1f   : > { %p7442_p10 = pnand %p7441_p9, %p7435_p3 }
  0x21   : > { %7445 = shalt.err (!%p7442_p10)
}
  0x22   : > { %s10156_s30 = smov 64   ;;  %s10157_s11 = smov 4  }
  0x23   : > { %s10185_s1 = sld [smem:[#allocation59_spill]]  ;;  %s7457_s22 = scalar_lea.vmem %s306_s26, 9216 }
  0x24   : > { %p7458_p13 = scmp.ne.s32.totalorder %s306_s26, %s7457_s22  ;;  %p7465_p3 = scmp.lt.s32.totalorder %s306_s26, %s306_s26 }
  0x25   : > { %p7466_p10 = scmp.lt.s32.totalorder %s7457_s22, %s7457_s22 }
  0x26   : > { %p7460_p0 = pnand %p7458_p13, %p7422_p12 }
  0x27   : > { %p7467_p7 = por %p7466_p10, %p7465_p3 }
  0x28   : > { %p7461_p5 = pneg %p7460_p0 }
  0x29   : > { %7135 = dma.hbm_to_vmem [thread:$0]  (!%p7714_p11), %s10185_s1, 1024, %s287_s23, [#allocation7], %s10156_s30, %s10156_s30, %s10157_s11  }
  0x2a   : > { %p7468_p9 = pnand %p7467_p7, %p7461_p5 }
  0x2c   : > { %7471 = shalt.err (!%p7468_p9)
}
  0x2d   : > { %s10186_s4 = sld [smem:[#allocation60_spill]]  ;;  %s7483_s23 = scalar_lea.vmem %s325_s28, 1024 }
  0x2e   : > { %p7484_p1 = scmp.ne.s32.totalorder %s325_s28, %s7483_s23  ;;  %p7491_p3 = scmp.lt.s32.totalorder %s325_s28, %s325_s28 }
  0x2f   : > { %p7492_p5 = scmp.lt.s32.totalorder %s7483_s23, %s7483_s23 }
  0x30   : > { %p7486_p13 = pnand %p7484_p1, %p7422_p12 }
  0x31   : > { %p7493_p10 = por %p7492_p5, %p7491_p3 }
  0x32   : > { %p7487_p0 = pneg %p7486_p13 }
  0x33   : > { %7138 = dma.hbm_to_vmem [thread:$0]  (!%p7714_p11), %s10186_s4, 9216, %s306_s26, [#allocation7], %s10156_s30, %s10156_s30, %s10157_s11  }
  0x34   : > { %p7494_p7 = pnand %p7493_p10, %p7487_p0 }
  0x36   : > { %7497 = shalt.err (!%p7494_p7)
}
  0x37   : > { %s10187_s7 = sld [smem:[#allocation61_spill]]  ;;  %s7754_s26 = sadd.s32 1, %s7598_s16  }
  0x38   : > { %s32_s24 = ssub.s32 %s7598_s16, %s7754_s26  ;;  %s35_s18 = sadd.s32 1, %s7594_s15 }
  0x39   : > { %p33_p1 = scmp.eq.s32.totalorder %s32_s24, 0  ;;  %p42_p12 = scmp.ne.s32.totalorder %s7594_s15, %s7590_s14 }
  0x3a   : > { %p43_p9 = scmp.eq.s32.totalorder %s7598_s16, 0  ;;  %p7153_p13 = scmp.lt.s32.totalorder %s7598_s16, 2 }
  0x3b   : > { %s7764_s22 = scalar_select %p33_p1, %s7594_s15, %s35_s18  }
  0x3c   : > { %p44_p0 = por %p43_p9, %p42_p12  ;;  %p7768_p3 = por %p261_p2, %p42_p12 }
  0x3d   : > { %7141 = dma.hbm_to_vmem [thread:$0]  (!%p7714_p11), %s10187_s7, 1024, %s325_s28, [#allocation10], %s10156_s30, %s10156_s30, %s10157_s11  }
  0x3e   : > { %10188 = sst [smem:[#allocation16_spill]] %s7764_s22  ;;  %s344_s27 = sand.u32 1, %s7594_s15  }
  0x3f   : > { %s10189_s25 = scalar_select %p7768_p3, 1, 0 }
  0x40   : > { %s6402_s23 = sshll.u32 %s7598_s16, 11  ;;  %s6054_s28 = sshll.u32 %s344_s27, 7 }
  0x41   : > { %s7777_s30 = scalar_lea.hbm %s10144_s0, %s6402_s23  ;;  %s348_s24 = scalar_lea.vmem [#allocation3], %s6054_s28 }
  0x42   : > { %s355_s18 = sshll.u32 %s348_s24, 4  ;;  %p7779_p11 = pnand %p7153_p13, %p44_p0  ;;  %s7783_s18 = int_to_ptr.vmem [resolvable:$true] %s355_s18 }
  0x43   : > { %s7785_s1 = scalar_lea.sflag [#allocation4], %s344_s27  ;;  %s7498_s4 = scalar_lea.hbm %s7777_s30, 2048 }
  0x44   : > { %p7499_p2 = scmp.ne.s32.totalorder %s7777_s30, %s7498_s4  ;;  %p7500_p5 = pneg %p7779_p11 }
  0x45   : > { %s7503_s28 = scalar_lea.hbm %s10144_s0, 4096  ;;  %p7504_p1 = scmp.lt.s32.totalorder %s7777_s30, %s10144_s0 }
  0x46   : > { %p7501_p10 = pnand %p7500_p5, %p7499_p2  ;;  %p7505_p12 = scmp.lt.s32.totalorder %s7503_s28, %s7498_s4 }
  0x48   : > { %p7502_p7 = pneg %p7501_p10  ;;  %p7506_p9 = por %p7505_p12, %p7504_p1 }
  0x4a   : > { %p7507_p13 = pnand %p7506_p9, %p7502_p7 }
  0x4c   : > { %7510 = shalt.err (!%p7507_p13)
}
  0x4d   : > { %s7511_s27 = scalar_lea.vmem %s7783_s18, 2048  ;;  %s7605_s7 = smov [#allocation3]  }
  0x4e   : > { %p7512_p0 = scmp.ne.s32.totalorder %s7783_s18, %s7511_s27  ;;  %s7516_s22 = sshll.u32 %s7605_s7, 4  ;;  %s7517_s22 = int_to_ptr.vmem [resolvable:$false] %s7516_s22 }
  0x4f   : > { %s7518_s23 = scalar_lea.vmem %s7517_s22, 4096  ;;  %p7519_p10 = scmp.lt.s32.totalorder %s7783_s18, %s7517_s22 }
  0x50   : > { %p7514_p6 = pnand %p7512_p0, %p7500_p5  ;;  %p7520_p3 = scmp.lt.s32.totalorder %s7518_s23, %s7511_s27 }
  0x52   : > { %p7515_p2 = pneg %p7514_p6  ;;  %p7521_p4 = por %p7520_p3, %p7519_p10 }
  0x54   : > { %p7522_p8 = pnand %p7521_p4, %p7515_p2 }
  0x56   : > { %7525 = shalt.err (!%p7522_p8)
}
  0x57   : > { %s10191_s4 = smov 4   ;;  %s10192_s29 = smov 64  }
  0x58   : > { %7145 = dma.hbm_to_vmem [thread:$0]  (!%p7779_p11), %s7777_s30, 2048, %s7783_s18, %s7785_s1, %s10192_s29, %s10192_s29, %s10191_s4  }
  0x59   : > { %p10193_p6 = scmp.ne.s32.totalorder %s10183_s21, 0 }
  0x5b   : > { %367 = sbr.rel (%p10193_p6) target bundleno = 1199 (0x4af), region = 60 }
  0x60   : > { %s7812_s7 = sand.u32 1, %s7590_s14   ;;  %p10194_p4 = scmp.ne.s32.totalorder %s10181_s19, 0 }
  0x61   : > { %s6058_s22 = sshll.u32 %s7812_s7, 7  ;;  %s370_s28 = scalar_lea.sflag [#allocation4], %s7812_s7 }
  0x62   : > { %s7816_s12 = scalar_lea.vmem [#allocation3], %s6058_s22 }
  0x63   : > { %7569 = dma.done.wait (%p10194_p4), %s370_s28, 2048  }
  0x64   : > { %7571 = vsyncadd (%p10194_p4), %s370_s28, 4294965248  ;;  %p10195_p8 = scmp.eq.s32.totalorder %s7686_s17, 0 }
  0x66   : > { %7573 = dma.done.wait (%p10195_p8), [#allocation7], 10240   ;;  %p10196_p3 = pmov %p10195_p8 }
  0x68   : > { %7575 = vsyncadd (%p10196_p3), [#allocation7], 4294957056  ;;  %p10197_p11 = pmov %p10196_p3 }
  0x69   : > { %p10198_p5 = pmov %p10196_p3 }
  0x6a   : > { %7577 = dma.done.wait (%p10197_p11), [#allocation10], 1024  }
  0x6b   : > { %7579 = vsyncadd (%p10198_p5), [#allocation10], 4294966272  ;;  %v7198_v0 = vld [vmem:[#allocation6 + $0x38] sm:$0xff]   ;;  %v7199_v1 = vld [vmem:[#allocation6 + $0x30] sm:$0xff]   ;;  %vm925_vm0 = vcmask 1040384   ;;  %v7606_v33 = vmov 0  }
  0x6c   : > { %6956 = vmatprep.subr.bf16.mxu0 %v7198_v0  ;;  %7100 = vmatprep.subr.bf16.mxu1 %v7198_v0  ;;  %v7200_v2 = vld [vmem:[#allocation6 + $0x28] sm:$0xff]   ;;  %v7201_v3 = vld [vmem:[#allocation6 + $0x20] sm:$0xff]   ;;  %v7202_v5 = vld [vmem:[#allocation6 + $0x18] sm:$0xff]   ;;  %vm926_vm1 = vsmask.f32 256  ;;  %v10199_v34 = vmov 0 }
  0x6d   : > { %6957 = vmatpush3.bf16.msra.mxu0 %v7198_v0  ;;  %7108 = vmatpush3.bf16.msra.mxu1 %v7198_v0  ;;  %v423_v4 = vld [vmem:[%s7816_s12] sm:$0xff]   ;;  %v7203_v7 = vld [vmem:[#allocation6 + $0x10] sm:$0xff]   ;;  %v7204_v8 = vld [vmem:[#allocation6 + $0x8] sm:$0xff]   ;;  %918 = vst [vmem:[#allocation2] sm:$0xf] %v7606_v33  ;;  %v10202_v38 = vmov 0 }
  0x6e   : > { %6958 = vmatprep.subr.bf16.mxu0 %v7199_v1  ;;  %7101 = vmatprep.subr.bf16.mxu1 %v7199_v1  ;;  %v439_v6 = vld [vmem:[%s7816_s12 + $0x40] sm:$0xff]   ;;  %v425_v10 = vld [vmem:[%s7816_s12 + $0x8] sm:$0xff]   ;;  %v427_v11 = vld [vmem:[%s7816_s12 + $0x10] sm:$0xff]   ;;  %919 = vst [vmem:[#allocation2 + $0x4] sm:$0xf] %v7606_v33  ;;  %vm2070_vm8 = vcmask 1042432  }
  0x6f   : > { %6972 = vmatprep.mubr.bf16.mxu0 %v423_v4  ;;  %6988 = vmatprep.mubr.bf16.mxu1 %v439_v6  ;;  %v7205_v9 = vld [vmem:[#allocation6] sm:$0xff]   ;;  %v441_v12 = vld [vmem:[%s7816_s12 + $0x48] sm:$0xff]   ;;  %v443_v13 = vld [vmem:[%s7816_s12 + $0x50] sm:$0xff]   ;;  %920 = vst [vmem:[#allocation2 + $0x8] sm:$0x1] %v7606_v33  ;;  %vm2071_vm9 = vcmask 1046532  }
  0x70   : > { %v7222_v14 = vld [vmem:[#allocation8 + $0x78] sm:$0xff]   ;;  %v431_v17 = vld [vmem:[%s7816_s12 + $0x20] sm:$0xff]   ;;  %v433_v20 = vld [vmem:[%s7816_s12 + $0x28] sm:$0xff]   ;;  %922 = vst [vmem:[#allocation2 + $0xcc] sm:$0xf] %v7606_v33  ;;  %vm1457_vm11 = vcmask 1043456  }
  0x71   : > { %6959 = vmatpush3.bf16.msra.mxu0 %v7199_v1  ;;  %7109 = vmatpush3.bf16.msra.mxu1 %v7199_v1  ;;  %v7223_v15 = vld [vmem:[#allocation8 + $0x38] sm:$0xff]   ;;  %v447_v19 = vld [vmem:[%s7816_s12 + $0x60] sm:$0xff]   ;;  %v435_v21 = vld [vmem:[%s7816_s12 + $0x30] sm:$0xff]   ;;  %923 = vst [vmem:[#allocation2 + $0xd0] sm:$0xf] %v7606_v33  ;;  %s6062_s30 = sshll.u32 %s7812_s7, 8 }
  0x72   : > { %6960 = vmatprep.subr.bf16.mxu0 %v7200_v2  ;;  %7102 = vmatprep.subr.bf16.mxu1 %v7200_v2  ;;  %v429_v16 = vld [vmem:[%s7816_s12 + $0x18] sm:$0xff]   ;;  %v449_v22 = vld [vmem:[%s7816_s12 + $0x68] sm:$0xff]   ;;  %v451_v23 = vld [vmem:[%s7816_s12 + $0x70] sm:$0xff]   ;;  %924 = vst [vmem:[#allocation2 + $0xd4] sm:$0x1] %v7606_v33  ;;  %s9990_s11 = scalar_lea.vmem [#allocation11], %s6062_s30 }
  0x73   : > { %v445_v18 = vld [vmem:[%s7816_s12 + $0x58] sm:$0xff]   ;;  %v7224_v26 = vld [vmem:[#allocation8 + $0x70] sm:$0xff]   ;;  %v7228_v30 = vld [vmem:[#allocation8 + $0x68] sm:$0xff]   ;;  %vm982_vm3 = vsmask.f32 7938  ;;  %s5946_s18 = sshll.u32 %s9990_s11, 4  ;;  %s10099_s18 = int_to_ptr.vmem [resolvable:$true] %s5946_s18 }
  0x74   : > { %v437_v24 = vld [vmem:[%s7816_s12 + $0x38] sm:$0xff]   ;;  %v7225_v27 = vld [vmem:[#allocation8 + $0x30] sm:$0xff]   ;;  %v7229_v31 = vld [vmem:[#allocation8 + $0x28] sm:$0xff]   ;;  %vm1619_vm5 = vsmask.f32 3328  ;;  %s5933_s4 = scalar_lea.sflag [#allocation5], %s7812_s7 }
  0x75   : > { %6961 = vmatpush3.bf16.msra.mxu0 %v7200_v2  ;;  %7110 = vmatpush3.bf16.msra.mxu1 %v7200_v2  ;;  %v453_v25 = vld [vmem:[%s7816_s12 + $0x78] sm:$0xff]   ;;  %v7230_v32 = vld [vmem:[#allocation8 + $0xf0] sm:$0xff]   ;;  %vm7848_vm2 = vmand %vm925_vm0, %vm926_vm1  ;;  %vm1620_vm6 = vsmask.f32 7440  ;;  %vm1134_vm12 = vsmask.f32 4368 }
  0x76   : > { %6962 = vmatprep.subr.bf16.mxu0 %v7201_v3  ;;  %7103 = vmatprep.subr.bf16.mxu1 %v7201_v3  ;;  %v7226_v28 = vld [vmem:[#allocation8 + $0xf8] sm:$0xff]   ;;  %v10200_v34 = vsel %vm7848_vm2, 4294967295, %v10199_v34  ;;  %v934_v35 = vld [vmem:[#allocation2 + $0x18] sm:$0x1]  ;;  %v7231_v36 = vld [vmem:[#allocation8 + $0xb0] sm:$0xff]   ;;  %s7526_s29 = scalar_lea.vmem %s10099_s18, 4096 }
  0x77   : > { %v7227_v29 = vld [vmem:[#allocation8 + $0xb8] sm:$0xff]   ;;  %10201 = vst [vmem:[#allocation17_spill] sm:$0xff] %v10200_v34  ;;  %v935_v37 = vsel %vm7848_vm2, 0, %v934_v35  ;;  %vm7856_vm4 = vmand %vm925_vm0, %vm982_vm3  ;;  %v931_v39 = vld [vmem:[#allocation2 + $0xc] sm:$0x1]  ;;  %p7527_p7 = scmp.ne.s32.totalorder %s10099_s18, %s7526_s29  ;;  %p10382_p1 = scmp.ne.s32.totalorder %s10189_s25, 0 }
  0x78   : > { %936 = vst [vmem:[#allocation2 + $0x18] sm:$0x1] %v935_v37  ;;  %v10203_v38 = vsel %vm7856_vm4, 4294967295, %v10202_v38  ;;  %v7232_v40 = vld [vmem:[#allocation8 + $0x60] sm:$0xff]   ;;  %v932_v41 = vsel %vm7848_vm2, 0, %v931_v39  ;;  %v7234_v43 = vld [vmem:[#allocation8 + $0xe8] sm:$0xff]   ;;  %vm7882_vm7 = vmor %vm1619_vm5, %vm1620_vm6 }
  0x79   : > { %6963 = vmatpush3.bf16.msra.mxu0 %v7201_v3  ;;  %7111 = vmatpush3.bf16.msra.mxu1 %v7201_v3  ;;  %10204 = vst [vmem:[#allocation18_spill] sm:$0xff] %v10203_v38  ;;  %v7233_v42 = vld [vmem:[#allocation8 + $0x20] sm:$0xff]   ;;  %933 = vst [vmem:[#allocation2 + $0xc] sm:$0x1] %v932_v41  ;;  %v990_v44 = vld [vmem:[#allocation2 + $0x20] sm:$0x1]  ;;  %p7528_p12 = pnand %p7527_p7, %p10382_p1 }
  0x7a   : > { %6964 = vmatprep.subr.bf16.mxu0 %v7202_v5  ;;  %7104 = vmatprep.subr.bf16.mxu1 %v7202_v5  ;;  %v991_v45 = vsel %vm7856_vm4, 0, %v990_v44  ;;  %v7235_v46 = vld [vmem:[#allocation8 + $0xa8] sm:$0xff]   ;;  %v987_v48 = vld [vmem:[#allocation2 + $0x14] sm:$0x1]  ;;  %v7238_v53 = vld [vmem:[#allocation8 + $0xe0] sm:$0xff]  }
  0x7b   : > { %992 = vst [vmem:[#allocation2 + $0x20] sm:$0x1] %v991_v45  ;;  %v928_v47 = vld [vmem:[#allocation2] sm:$0x1]  ;;  %v988_v50 = vsel %vm7856_vm4, 0, %v987_v48  ;;  %v7236_v51 = vld [vmem:[#allocation8 + $0x58] sm:$0xff]   ;;  %vm7896_vm10 = vmor %vm2070_vm8, %vm2071_vm9  ;;  %p7529_p9 = pneg %p7528_p12 }
  0x7c   : > { %v929_v49 = vsel %vm7848_vm2, 0, %v928_v47  ;;  %989 = vst [vmem:[#allocation2 + $0x14] sm:$0x1] %v988_v50  ;;  %v7237_v52 = vld [vmem:[#allocation8 + $0x18] sm:$0xff]   ;;  %v984_v54 = vld [vmem:[#allocation2 + $0x8] sm:$0x1]  ;;  %vm7968_vm13 = vmand %vm1457_vm11, %vm982_vm3 }
  0x7d   : > { %6965 = vmatpush3.bf16.msra.mxu0 %v7202_v5  ;;  %7112 = vmatpush3.bf16.msra.mxu1 %v7202_v5  ;;  %930 = vst [vmem:[#allocation2] sm:$0x1] %v929_v49  ;;  %v940_v55 = vld [vmem:[#allocation2 + $0x30] sm:$0x1]  ;;  %v937_v56 = vld [vmem:[#allocation2 + $0x24] sm:$0x1]  ;;  %vm7979_vm14 = vmor %vm926_vm1, %vm1134_vm12 }
  0x7e   : > { %6966 = vmatprep.subr.bf16.mxu0 %v7203_v7  ;;  %7105 = vmatprep.subr.bf16.mxu1 %v7203_v7  ;;  %v941_v57 = vsel %vm7848_vm2, 0, %v940_v55  ;;  %v938_v58 = vsel %vm7848_vm2, 0, %v937_v56  ;;  %v7239_v59 = vld [vmem:[#allocation8 + $0xa0] sm:$0xff]   ;;  %v985_v60 = vsel %vm7856_vm4, 0, %v984_v54  ;;  %v7240_v61 = vld [vmem:[#allocation8 + $0x50] sm:$0xff]   ;;  %v7242_v63 = vld [vmem:[#allocation8 + $0xd8] sm:$0xff]  }
  0x7f   : > { %942 = vst [vmem:[#allocation2 + $0x30] sm:$0x1] %v941_v57  ;;  %939 = vst [vmem:[#allocation2 + $0x24] sm:$0x1] %v938_v58  ;;  %v7241_v62 = vld [vmem:[#allocation8 + $0x10] sm:$0xff]   ;;  %v7243_v1 = vld [vmem:[#allocation8 + $0x98] sm:$0xff]  }
  0x80   : > { %986 = vst [vmem:[#allocation2 + $0x8] sm:$0x1] %v985_v60  ;;  %v7874_v2 = vld [vmem:[#allocation2 + $0x4] sm:$0xf]  ;;  %v7254_v37 = vld [vmem:[#allocation8 + $0x80] sm:$0xff]   ;;  %v7256_v56 = vld [vmem:[#allocation8 + $0x178] sm:$0xff]  }
  0x81   : > { %6967 = vmatpush3.bf16.msra.mxu0 %v7203_v7  ;;  %7113 = vmatpush3.bf16.msra.mxu1 %v7203_v7  ;;  %v1632_v5 = vshll.u32 %v7874_v2, 16  ;;  %v1636_v6 = vshrl.u32 %v7874_v2, 16  ;;  %v996_v7 = vld [vmem:[#allocation2 + $0x38] sm:$0x1]  ;;  %v946_v39 = vld [vmem:[#allocation2 + $0x48] sm:$0x1] }
  0x82   : > { %6968 = vmatprep.subr.bf16.mxu0 %v7204_v8  ;;  %7106 = vmatprep.subr.bf16.mxu1 %v7204_v8  ;;  %v943_v41 = vld [vmem:[#allocation2 + $0x3c] sm:$0x1]  ;;  %v2006_v45 = vld [vmem:[#allocation2] sm:$0xe]  ;;  %v1002_v49 = vld [vmem:[#allocation2 + $0x50] sm:$0x1] }
  0x83   : > { %v944_v44 = vsel %vm7848_vm2, 0, %v943_v41  ;;  %v999_v50 = vld [vmem:[#allocation2 + $0x44] sm:$0x1]  ;;  %v7258_v57 = vld [vmem:[#allocation8 + $0x138] sm:$0xff]   ;;  %v952_v58 = vld [vmem:[#allocation2 + $0x60] sm:$0x1] }
  0x84   : > { %v1571_v0 = vld [vmem:[#allocation2] sm:$0xf]  ;;  %945 = vst [vmem:[#allocation2 + $0x3c] sm:$0x1] %v944_v44  ;;  %v1000_v54 = vsel %vm7856_vm4, 0, %v999_v50 }
  0x85   : > { %6969 = vmatpush3.bf16.msra.mxu0 %v7204_v8  ;;  %7114 = vmatpush3.bf16.msra.mxu1 %v7204_v8  ;;  %v1623_v3 = vshrl.u32 %v1571_v0, 16  ;;  %v1626_v4 = vshll.u32 %v1571_v0, 16  ;;  %v7244_v8 = vld [vmem:[#allocation8 + $0x48] sm:$0xff]   ;;  %v6169_v33 = vcombine.low %v1571_v0, %v7874_v2  ;;  %1001 = vst [vmem:[#allocation2 + $0x44] sm:$0x1] %v1000_v54 }
  0x86   : > { %6970 = vmatprep.subr.bf16.mxu0 %v7205_v9  ;;  %7107 = vmatprep.subr.bf16.mxu1 %v7205_v9  ;;  %v949_v60 = vld [vmem:[#allocation2 + $0x54] sm:$0x1]  ;;  %v1005_v0 = vld [vmem:[#allocation2 + $0x5c] sm:$0x1] }
  0x89   : > { %6971 = vmatpush3.bf16.msra.mxu0 %v7205_v9  ;;  %7115 = vmatpush3.bf16.msra.mxu1 %v7205_v9  ;;  %v1625_v9 = vrot.slane %v1623_v3, 4  ;;  %v7264_v3 = vld [vmem:[#allocation8 + $0x130] sm:$0xff]  }
  0x8a   : > { %6460 = vmatprep.subr.bf16.mxu1 %v7222_v14  ;;  %6572 = vmatprep.subr.bf16.mxu0 %v7226_v28  ;;  %v1634_v14 = vrot.slane %v1632_v5, 5  ;;  %v955_v5 = vld [vmem:[#allocation2 + $0x6c] sm:$0x1] }
  0x8c   : > { %6973 = vmatmul.mubr.bf16.vlgmr.msra.gmra.mxu0 %v425_v10  ;;  %6989 = vmatmul.mubr.bf16.vlgmr.msra.gmra.mxu1 %v441_v12  ;;  %v997_v10 = vsel %vm7856_vm4, 0, %v996_v7  ;;  %v7246_v12 = vld [vmem:[#allocation8 + $0xd0] sm:$0xff]  }
  0x8d   : > { %6976 = vmatprep.mubr.bf16.mxu0 %v427_v11  ;;  %6992 = vmatprep.mubr.bf16.mxu1 %v443_v13  ;;  %v7245_v11 = vld [vmem:[#allocation8 + $0x8] sm:$0xff]   ;;  %v1628_v13 = vrot.slane %v1626_v4, 5  ;;  %998 = vst [vmem:[#allocation2 + $0x38] sm:$0x1] %v997_v10  ;;  %v958_v4 = vld [vmem:[#allocation2 + $0x78] sm:$0x1] }
  0x8e   : > { %6461 = vmatpush3.bf16.msra.mxu1 %v7223_v15  ;;  %6573 = vmatpush3.bf16.msra.mxu0 %v7227_v29  ;;  %v1638_v15 = vrot.slane %v1636_v6, 4  ;;  %v7251_v29 = vld [vmem:[#allocation8 + $0x88] sm:$0xff]   ;;  %v959_v7 = vsel %vm7848_vm2, 0, %v958_v4  ;;  %v1011_v10 = vld [vmem:[#allocation2 + $0x74] sm:$0x1] }
  0x8f   : > { %6462 = vmatprep.subr.bf16.mxu1 %v7224_v26  ;;  %6574 = vmatprep.subr.bf16.mxu0 %v7230_v32  ;;  %v1014_v6 = vld [vmem:[#allocation2 + $0x80] sm:$0x1]  ;;  %960 = vst [vmem:[#allocation2 + $0x78] sm:$0x1] %v959_v7 }
  0x92   : > { %6463 = vmatpush3.bf16.msra.mxu1 %v7225_v27  ;;  %6575 = vmatpush3.bf16.msra.mxu0 %v7231_v36  ;;  %v7253_v36 = vld [vmem:[#allocation8 + $0xc0] sm:$0xff]  }
  0x93   : > { %6464 = vmatprep.subr.bf16.mxu1 %v7228_v30  ;;  %6576 = vmatprep.subr.bf16.mxu0 %v7234_v43  ;;  %v2075_v43 = vrot.slane %v7874_v2, 5  ;;  %v7261_v2 = vld [vmem:[#allocation8 + $0x170] sm:$0xff]  }
  0x94   : > { %6977 = vmatmul.mubr.bf16.gmra.mxu0 %v429_v16  ;;  %6993 = vmatmul.mubr.bf16.gmra.mxu1 %v445_v18  ;;  %v993_v16 = vld [vmem:[#allocation2 + $0x2c] sm:$0x1] }
  0x95   : > { %6980 = vmatprep.mubr.bf16.mxu0 %v431_v17  ;;  %6996 = vmatprep.mubr.bf16.mxu1 %v447_v19  ;;  %v994_v17 = vsel %vm7856_vm4, 0, %v993_v16  ;;  %v7247_v18 = vld [vmem:[#allocation8 + $0x90] sm:$0xff]   ;;  %v2077_v47 = vrot.slane %v2075_v43, 4  ;;  %v961_v16 = vld [vmem:[#allocation2 + $0x84] sm:$0x1] }
  0x96   : > { %6465 = vmatpush3.bf16.msra.mxu1 %v7229_v31  ;;  %6577 = vmatpush3.bf16.msra.mxu0 %v7235_v46  ;;  %v1603_v19 = vld [vmem:[#allocation2 + $0x8] sm:$0x1]  ;;  %995 = vst [vmem:[#allocation2 + $0x2c] sm:$0x1] %v994_v17  ;;  %v6121_v46 = vrot.slane %v2006_v45, 9  ;;  %v962_v17 = vsel %vm7848_vm2, 0, %v961_v16 }
  0x97   : > { %6466 = vmatprep.subr.bf16.mxu1 %v7232_v40  ;;  %6578 = vmatprep.subr.bf16.mxu0 %v7238_v53  ;;  %v947_v40 = vsel %vm7848_vm2, 0, %v946_v39  ;;  %v1003_v53 = vsel %vm7856_vm4, 0, %v1002_v49  ;;  %963 = vst [vmem:[#allocation2 + $0x84] sm:$0x1] %v962_v17 }
  0x98   : > { %948 = vst [vmem:[#allocation2 + $0x48] sm:$0x1] %v947_v40  ;;  %1004 = vst [vmem:[#allocation2 + $0x50] sm:$0x1] %v1003_v53 }
  0x9a   : > { %6467 = vmatpush3.bf16.msra.mxu1 %v7233_v42  ;;  %6579 = vmatpush3.bf16.msra.mxu0 %v7239_v59  ;;  %v2078_v42 = vrot.slane %v1603_v19, 5  ;;  %v953_v59 = vsel %vm7848_vm2, 0, %v952_v58 }
  0x9b   : > { %6468 = vmatprep.subr.bf16.mxu1 %v7236_v51  ;;  %6580 = vmatprep.subr.bf16.mxu0 %v7242_v63  ;;  %v7902_v51 = vsel %vm7896_vm10, %v6121_v46, %v2075_v43  ;;  %954 = vst [vmem:[#allocation2 + $0x60] sm:$0x1] %v953_v59 }
  0x9c   : > { %6981 = vmatmul.mubr.bf16.gmra.mxu0 %v433_v20  ;;  %6997 = vmatmul.mubr.bf16.gmra.mxu1 %v449_v22  ;;  %v1629_v20 = vor.u32 %v1628_v13, %v1625_v9  ;;  %v7248_v22 = vld [vmem:[#allocation8 + $0x40] sm:$0xff]   ;;  %v1015_v9 = vsel %vm7856_vm4, 0, %v1014_v6  ;;  %v7270_v13 = vld [vmem:[#allocation8 + $0x128] sm:$0xff]  }
  0x9d   : > { %6984 = vmatprep.mubr.bf16.mxu0 %v435_v21  ;;  %7000 = vmatprep.mubr.bf16.mxu1 %v451_v23  ;;  %v1639_v21 = vor.u32 %v1638_v15, %v1634_v14  ;;  %v1642_v23 = vshll.u32 %v1603_v19, 16  ;;  %1016 = vst [vmem:[#allocation2 + $0x80] sm:$0x1] %v1015_v9 }
  0x9e   : > { %6469 = vmatpush3.bf16.msra.mxu1 %v7237_v52  ;;  %6581 = vmatpush3.bf16.msra.mxu0 %v7243_v1  ;;  %v1630_v27 = vrot.slane %v1629_v20, 4  ;;  %v7906_v52 = vsel %vm7896_vm10, %v2077_v47, %v2078_v42  ;;  %v1006_v1 = vsel %vm7856_vm4, 0, %v1005_v0  ;;  %v1017_v20 = vld [vmem:[#allocation2 + $0x8c] sm:$0x1] }
  0x9f   : > { %6470 = vmatprep.subr.bf16.mxu1 %v7240_v61  ;;  %6582 = vmatprep.subr.bf16.mxu0 %v7246_v12  ;;  %v1640_v28 = vrot.slane %v1639_v21, 4  ;;  %v1644_v30 = vrot.slane %v1642_v23, 5  ;;  %v6201_v55 = vcombine.low %v7902_v51, %v7906_v52  ;;  %v1008_v61 = vld [vmem:[#allocation2 + $0x68] sm:$0x1]  ;;  %1007 = vst [vmem:[#allocation2 + $0x5c] sm:$0x1] %v1006_v1 }
  0xa0   : > { %v1635_v31 = vsel %vm7882_vm7, %v1630_v27, %v1634_v14  ;;  %v1009_v63 = vsel %vm7856_vm4, 0, %v1008_v61  ;;  %v7267_v12 = vld [vmem:[#allocation8 + $0x168] sm:$0xff]   ;;  %v964_v14 = vld [vmem:[#allocation2 + $0x90] sm:$0x1]  ;;  %v1018_v21 = vsel %vm7856_vm4, 0, %v1017_v20  ;;  %v7276_v23 = vld [vmem:[#allocation8 + $0x120] sm:$0xff]  }
  0xa1   : > { %v1645_v32 = vsel %vm7882_vm7, %v1640_v28, %v1644_v30  ;;  %1010 = vst [vmem:[#allocation2 + $0x68] sm:$0x1] %v1009_v63  ;;  %v965_v15 = vsel %vm7848_vm2, 0, %v964_v14  ;;  %1019 = vst [vmem:[#allocation2 + $0x8c] sm:$0x1] %v1018_v21 }
  0xa2   : > { %6471 = vmatpush3.bf16.msra.mxu1 %v7241_v62  ;;  %6583 = vmatpush3.bf16.msra.mxu0 %v7247_v18  ;;  %v6185_v35 = vcombine.low %v1635_v31, %v1645_v32  ;;  %v950_v62 = vsel %vm7848_vm2, 0, %v949_v60  ;;  %966 = vst [vmem:[#allocation2 + $0x90] sm:$0x1] %v965_v15  ;;  %v1020_v18 = vld [vmem:[#allocation2 + $0x98] sm:$0x1] }
  0xa3   : > { %6472 = vmatprep.subr.bf16.mxu1 %v7244_v8  ;;  %951 = vst [vmem:[#allocation2 + $0x54] sm:$0x1] %v950_v62  ;;  %v956_v8 = vsel %vm7848_vm2, 0, %v955_v5  ;;  %v1021_v19 = vsel %vm7856_vm4, 0, %v1020_v18  ;;  %v7946_v27 = vld [vmem:[%s10147_s3] ss:$0 sm:$0xff] }
  0xa4   : > { %6985 = vmatmul.mubr.bf16.gmra.mxu0 %v437_v24  ;;  %7001 = vmatmul.mubr.bf16.gmra.mxu1 %v453_v25  ;;  %v7249_v24 = vld [vmem:[#allocation8] sm:$0xff]   ;;  %v7250_v25 = vld [vmem:[#allocation8 + $0xc8] sm:$0xff]   ;;  %957 = vst [vmem:[#allocation2 + $0x6c] sm:$0x1] %v956_v8  ;;  %1022 = vst [vmem:[#allocation2 + $0x98] sm:$0x1] %v1021_v19 }
  0xa5   : > { %6584 = vmatprep.subr.bf16.mxu0 %v7250_v25  ;;  %4634 = vmatprep.mubr.bf16.mxu1 %v6185_v35 }
  0xa6   : > { %6473 = vmatpush3.bf16.msra.mxu1 %v7245_v11  ;;  %6585 = vmatpush3.bf16.msra.mxu0 %v7251_v29  ;;  %v1012_v11 = vsel %vm7856_vm4, 0, %v1011_v10  ;;  %v970_v29 = vld [vmem:[#allocation2 + $0xa8] sm:$0x1] }
  0xa7   : > { %6474 = vmatprep.subr.bf16.mxu1 %v7248_v22  ;;  %6586 = vmatprep.subr.bf16.mxu0 %v7253_v36  ;;  %1013 = vst [vmem:[#allocation2 + $0x74] sm:$0x1] %v1012_v11  ;;  %v7273_v22 = vld [vmem:[#allocation8 + $0x160] sm:$0xff]   ;;  %v971_v31 = vsel %vm7848_vm2, 0, %v970_v29 }
  0xa8   : > { %972 = vst [vmem:[#allocation2 + $0xa8] sm:$0x1] %v971_v31 }
  0xaa   : > { %6475 = vmatpush3.bf16.msra.mxu1 %v7249_v24  ;;  %6587 = vmatpush3.bf16.msra.mxu0 %v7254_v37  ;;  %v7941_v24 = vld [vmem:[%s10146_s2] ss:$0 sm:$0xff] }
  0xab   : > { %6684 = vmatprep.subr.bf16.mxu1 %v7256_v56 }
  0xad   : > { %4635 = vmatmul.mubr.bf16.vlgmr.msra.gmra.mxu1 %v6169_v33 }
  0xae   : > { %6685 = vmatpush3.bf16.msra.mxu1 %v7258_v57 }
  0xaf   : > { %6686 = vmatprep.subr.bf16.mxu1 %v7261_v2  ;;  %v1466_v2 = vld [vmem:[#allocation2 + $0x18] sm:$0xf] }
  0xb2   : > { %6687 = vmatpush3.bf16.msra.mxu1 %v7264_v3 }
  0xb3   : > { %6688 = vmatprep.subr.bf16.mxu1 %v7267_v12  ;;  %v1459_v12 = vld [vmem:[#allocation2 + $0xc] sm:$0xf] }
  0xb6   : > { %6689 = vmatpush3.bf16.msra.mxu1 %v7270_v13 }
  0xb7   : > { %6690 = vmatprep.subr.bf16.mxu1 %v7273_v22 }
  0xba   : > { %6691 = vmatpush3.bf16.msra.mxu1 %v7276_v23  ;;  %v1470_v23 = vld [vmem:[#allocation2 + $0x20] sm:$0x1] }
 0x14c   : > { %v6974_v25 = vpop.f32.mrf.mxu0  ;;  %v6990_v40 = vpop.f32.mrf.mxu1 }
 0x14d   : > { %v817_v28 = vmul.f32 %v6974_v25, %v7941_v24  ;;  %v833_v42 = vmul.f32 %v6990_v40, %v7941_v24 }
 0x14e   : > { %v681_v30 = vpop.f32.mrf.mxu0  ;;  %v745_v54 = vpop.f32.mrf.mxu1 }
 0x14f   : > { %v856_v32 = vadd.f32 %v7946_v27, %v817_v28  ;;  %v815_v33 = vmul.f32 %v7941_v24, %v681_v30  ;;  %v7961_v59 = vadd.f32 %v7946_v27, %v833_v42  ;;  %v7964_v60 = vmul.f32 %v7941_v24, %v745_v54 }
 0x150   : > { %v6975_v35 = vpop.f32.mrf.mxu0 }
 0x151   : > { %v888_v36 = vmax.f32 %v856_v32, 0.0  ;;  %v854_v37 = vadd.f32 %v7946_v27, %v815_v33  ;;  %v818_v39 = vmul.f32 %v6975_v35, %v7941_v24 }
 0x152   : > { %v684_v41 = vpop.f32.mrf.mxu0 }
 0x153   : > { %v6405_v43 = vpack.c.bf16 %v888_v36, %v888_v36  ;;  %v886_v44 = vmax.f32 %v854_v37, 0.0  ;;  %v857_v45 = vadd.f32 %v7946_v27, %v818_v39  ;;  %v816_v46 = vmul.f32 %v7941_v24, %v684_v41 }
 0x154   : > { %v6978_v47 = vpop.f32.mrf.mxu0 }
 0x155   : > { %v1154_v49 = vshrl.u32 %v6405_v43, 16  ;;  %v6403_v50 = vpack.c.bf16 %v886_v44, %v886_v44  ;;  %v889_v53 = vmax.f32 %v857_v45, 0.0  ;;  %v855_v56 = vadd.f32 %v7946_v27, %v816_v46  ;;  %v1463_v45 = vld [vmem:[#allocation2 + $0x14] sm:$0x1] }
 0x156   : > { %v821_v57 = vmul.f32 %v6978_v47, %v7941_v24  ;;  %v697_v58 = vpop.f32.mrf.mxu0  ;;  %v1157_v62 = vshll.u32 %v6405_v43, 16 }
 0x157   : > { %v1156_v61 = vrot.slane %v1154_v49, 7  ;;  %v1137_v63 = vshrl.u32 %v6403_v50, 16  ;;  %v6406_v0 = vpack.c.bf16 %v889_v53, %v889_v53  ;;  %v1140_v3 = vshll.u32 %v6403_v50, 16 }
 0x158   : > { %v887_v4 = vmax.f32 %v855_v56, 0.0  ;;  %v860_v5 = vadd.f32 %v7946_v27, %v821_v57  ;;  %v819_v6 = vmul.f32 %v7941_v24, %v697_v58  ;;  %v6979_v7 = vpop.f32.mrf.mxu0  ;;  %v1480_v57 = vld [vmem:[#allocation2 + $0x30] sm:$0xf] }
 0x159   : > { %v1159_v8 = vor.u32 %v1157_v62, %v1156_v61  ;;  %v1160_v9 = vrot.slane %v1156_v61, 4  ;;  %v1139_v10 = vrot.slane %v1137_v63, 7  ;;  %v1162_v11 = vshrl.u32 %v6406_v0, 16 }
 0x15a   : > { %v1165_v13 = vshll.u32 %v6406_v0, 16  ;;  %v6404_v14 = vpack.c.bf16 %v887_v4, %v887_v4  ;;  %v892_v15 = vmax.f32 %v860_v5, 0.0  ;;  %v858_v16 = vadd.f32 %v7946_v27, %v819_v6  ;;  %v700_v17 = vpop.f32.mrf.mxu0  ;;  %v7279_v0 = vld [vmem:[#allocation8 + $0x1f8] sm:$0xff]  }
 0x15b   : > { %v1467_v18 = vsel %vm7968_vm13, %v1159_v8, %v1466_v2  ;;  %v1142_v19 = vor.u32 %v1140_v3, %v1139_v10  ;;  %v1143_v20 = vrot.slane %v1139_v10, 4  ;;  %v1164_v21 = vrot.slane %v1162_v11, 7  ;;  %v7281_v2 = vld [vmem:[#allocation8 + $0x158] sm:$0xff]   ;;  %6796 = vmatprep.subr.bf16.mxu0 %v7279_v0  ;;  %v1494_v0 = vld [vmem:[#allocation2 + $0x48] sm:$0xf] }
 0x15c   : > { %1468 = vst [vmem:[#allocation2 + $0x18] sm:$0xf] %v1467_v18  ;;  %v1145_v25 = vshrl.u32 %v6404_v14, 16  ;;  %v1148_v28 = vshll.u32 %v6404_v14, 16  ;;  %v6409_v29 = vpack.c.bf16 %v892_v15, %v892_v15  ;;  %v890_v30 = vmax.f32 %v858_v16, 0.0  ;;  %v6982_v31 = vpop.f32.mrf.mxu0  ;;  %v7284_v8 = vld [vmem:[#allocation8 + $0x118] sm:$0xff]   ;;  %6692 = vmatprep.subr.bf16.mxu1 %v7281_v2 }
 0x15d   : > { %v1460_v32 = vsel %vm7968_vm13, %v1142_v19, %v1459_v12  ;;  %v1167_v33 = vor.u32 %v1165_v13, %v1164_v21  ;;  %v1169_v35 = vrot.slane %v1164_v21, 4  ;;  %v822_v36 = vmul.f32 %v6979_v7, %v7941_v24  ;;  %v1473_v14 = vld [vmem:[#allocation2 + $0x24] sm:$0xf]  ;;  %6693 = vmatpush3.bf16.msra.mxu1 %v7284_v8 }
 0x15e   : > { %1461 = vst [vmem:[#allocation2 + $0xc] sm:$0xf] %v1460_v32  ;;  %v1147_v37 = vrot.slane %v1145_v25, 7  ;;  %v1188_v39 = vshrl.u32 %v6409_v29, 16  ;;  %v1191_v40 = vshll.u32 %v6409_v29, 16  ;;  %v6407_v41 = vpack.c.bf16 %v890_v30, %v890_v30  ;;  %v713_v42 = vpop.f32.mrf.mxu0 }
 0x15f   : > { %v1168_v43 = vsel %vm7979_vm14, %v1160_v9, %v1167_v33  ;;  %v1471_v44 = vsel %vm7848_vm2, %v1169_v35, %v1470_v23  ;;  %v861_v46 = vadd.f32 %v7946_v27, %v822_v36  ;;  %v820_v47 = vmul.f32 %v7941_v24, %v700_v17  ;;  %v1484_v35 = vld [vmem:[#allocation2 + $0x38] sm:$0x1] }
 0x160   : > { %1469 = vst [vmem:[#allocation2 + $0x1c] sm:$0xf] %v1168_v43  ;;  %1472 = vst [vmem:[#allocation2 + $0x20] sm:$0x1] %v1471_v44  ;;  %v1150_v49 = vor.u32 %v1148_v28, %v1147_v37  ;;  %v1152_v50 = vrot.slane %v1147_v37, 4  ;;  %v1190_v53 = vrot.slane %v1188_v39, 7  ;;  %v6983_v56 = vpop.f32.mrf.mxu0  ;;  %v825_v63 = vmul.f32 %v6982_v31, %v7941_v24 }
 0x161   : > { %v1171_v54 = vshrl.u32 %v6407_v41, 16  ;;  %v1174_v58 = vshll.u32 %v6407_v41, 16  ;;  %v893_v61 = vmax.f32 %v861_v46, 0.0  ;;  %v859_v62 = vadd.f32 %v7946_v27, %v820_v47 }
 0x162   : > { %v1151_v3 = vsel %vm7979_vm14, %v1143_v20, %v1150_v49  ;;  %v1464_v4 = vsel %vm7848_vm2, %v1152_v50, %v1463_v45  ;;  %v1193_v5 = vor.u32 %v1191_v40, %v1190_v53  ;;  %v716_v6 = vpop.f32.mrf.mxu0  ;;  %v904_v7 = vmax.f32 %v7961_v59, 0.0 }
 0x163   : > { %1462 = vst [vmem:[#allocation2 + $0x10] sm:$0xf] %v1151_v3  ;;  %1465 = vst [vmem:[#allocation2 + $0x14] sm:$0x1] %v1464_v4  ;;  %v1173_v9 = vrot.slane %v1171_v54, 7  ;;  %v6410_v10 = vpack.c.bf16 %v893_v61, %v893_v61  ;;  %v891_v11 = vmax.f32 %v859_v62, 0.0  ;;  %v864_v12 = vadd.f32 %v7946_v27, %v825_v63 }
 0x164   : > { %v1481_v13 = vsel %vm7968_vm13, %v1193_v5, %v1480_v57  ;;  %v823_v15 = vmul.f32 %v7941_v24, %v713_v42  ;;  %v826_v16 = vmul.f32 %v6983_v56, %v7941_v24  ;;  %v824_v17 = vmul.f32 %v7941_v24, %v716_v6  ;;  %v1477_v54 = vld [vmem:[#allocation2 + $0x2c] sm:$0x1] }
 0x165   : > { %v1194_v18 = vrot.slane %v1190_v53, 4  ;;  %1482 = vst [vmem:[#allocation2 + $0x30] sm:$0xf] %v1481_v13  ;;  %v1176_v19 = vor.u32 %v1174_v58, %v1173_v9  ;;  %v1196_v20 = vshrl.u32 %v6410_v10, 16  ;;  %v1199_v21 = vshll.u32 %v6410_v10, 16 }
 0x166   : > { %v6408_v23 = vpack.c.bf16 %v891_v11, %v891_v11  ;;  %v896_v25 = vmax.f32 %v864_v12, 0.0  ;;  %v862_v28 = vadd.f32 %v7946_v27, %v823_v15  ;;  %v865_v29 = vadd.f32 %v7946_v27, %v826_v16  ;;  %v6986_v11 = vpop.f32.mrf.mxu0  ;;  %v6991_v12 = vpop.f32.mrf.mxu1 }
 0x167   : > { %v1177_v30 = vrot.slane %v1173_v9, 4  ;;  %v1474_v31 = vsel %vm7968_vm13, %v1176_v19, %v1473_v14  ;;  %v1198_v32 = vrot.slane %v1196_v20, 7  ;;  %v863_v33 = vadd.f32 %v7946_v27, %v824_v17  ;;  %v1498_v19 = vld [vmem:[#allocation2 + $0x50] sm:$0x1]  ;;  %v2185_v20 = vld [vmem:[#allocation2 + $0xc] sm:$0xf] }
 0x168   : > { %1475 = vst [vmem:[#allocation2 + $0x24] sm:$0xf] %v1474_v31  ;;  %v1179_v36 = vshrl.u32 %v6408_v23, 16  ;;  %v1182_v37 = vshll.u32 %v6408_v23, 16  ;;  %v6413_v39 = vpack.c.bf16 %v896_v25, %v896_v25  ;;  %v894_v40 = vmax.f32 %v862_v28, 0.0 }
 0x169   : > { %v1201_v41 = vor.u32 %v1199_v21, %v1198_v32  ;;  %v1203_v42 = vrot.slane %v1198_v32, 4  ;;  %v897_v43 = vmax.f32 %v865_v29, 0.0  ;;  %v895_v44 = vmax.f32 %v863_v33, 0.0  ;;  %v1491_v31 = vld [vmem:[#allocation2 + $0x44] sm:$0x1] }
 0x16a   : > { %v1181_v45 = vrot.slane %v1179_v36, 7  ;;  %v1222_v46 = vshrl.u32 %v6413_v39, 16  ;;  %v1225_v47 = vshll.u32 %v6413_v39, 16  ;;  %v6411_v49 = vpack.c.bf16 %v894_v40, %v894_v40  ;;  %v8025_v32 = vld [vmem:[#allocation2 + $0x10] sm:$0xf]  ;;  %v729_v36 = vpop.f32.mrf.mxu0 }
 0x16b   : > { %v1202_v50 = vsel %vm7979_vm14, %v1194_v18, %v1201_v41  ;;  %v1485_v53 = vsel %vm7848_vm2, %v1203_v42, %v1484_v35  ;;  %v6414_v56 = vpack.c.bf16 %v897_v43, %v897_v43  ;;  %v6412_v57 = vpack.c.bf16 %v895_v44, %v895_v44  ;;  %v1487_v18 = vld [vmem:[#allocation2 + $0x3c] sm:$0xf] }
 0x16c   : > { %1483 = vst [vmem:[#allocation2 + $0x34] sm:$0xf] %v1202_v50  ;;  %1486 = vst [vmem:[#allocation2 + $0x38] sm:$0x1] %v1485_v53  ;;  %v1184_v58 = vor.u32 %v1182_v37, %v1181_v45  ;;  %v1186_v61 = vrot.slane %v1181_v45, 4  ;;  %v1224_v62 = vrot.slane %v1222_v46, 7  ;;  %v8022_v21 = vadd.f32 %v7946_v27, %v7964_v60  ;;  %v748_v60 = vpop.f32.mrf.mxu1 }
 0x16d   : > { %v1205_v63 = vshrl.u32 %v6411_v49, 16  ;;  %v1208_v2 = vshll.u32 %v6411_v49, 16  ;;  %v1230_v3 = vshrl.u32 %v6414_v56, 16  ;;  %v1233_v4 = vshll.u32 %v6414_v56, 16  ;;  %v8038_v43 = vld [vmem:[#allocation2 + $0x1c] sm:$0xf] }
 0x16e   : > { %v1213_v5 = vshrl.u32 %v6412_v57, 16  ;;  %v1185_v6 = vsel %vm7979_vm14, %v1177_v30, %v1184_v58  ;;  %v1478_v8 = vsel %vm7848_vm2, %v1186_v61, %v1477_v54  ;;  %v1227_v9 = vor.u32 %v1225_v47, %v1224_v62  ;;  %v7280_v45 = vld [vmem:[#allocation8 + $0x1b8] sm:$0xff]   ;;  %v8045_v47 = vld [vmem:[#allocation2 + $0x18] sm:$0xf]  ;;  %v8047_v49 = vld [vmem:[#allocation2 + $0xc] sm:$0xf]  ;;  %v6987_v61 = vpop.f32.mrf.mxu0 }
 0x16f   : > { %v1228_v10 = vrot.slane %v1224_v62, 4  ;;  %1476 = vst [vmem:[#allocation2 + $0x28] sm:$0xf] %v1185_v6  ;;  %1479 = vst [vmem:[#allocation2 + $0x2c] sm:$0x1] %v1478_v8  ;;  %v1207_v13 = vrot.slane %v1205_v63, 7  ;;  %v834_v23 = vmul.f32 %v6991_v12, %v7941_v24  ;;  %v8030_v37 = vpack.c.bf16 %v904_v7, %v904_v7 }
 0x170   : > { %v1232_v14 = vrot.slane %v1230_v3, 7  ;;  %v1215_v15 = vrot.slane %v1213_v5, 7  ;;  %v1216_v16 = vshll.u32 %v6412_v57, 16  ;;  %v1495_v17 = vsel %vm7968_vm13, %v1227_v9, %v1494_v0  ;;  %v8060_v62 = vld [vmem:[#allocation2 + $0x10] sm:$0xf] }
 0x171   : > { %1496 = vst [vmem:[#allocation2 + $0x48] sm:$0xf] %v1495_v17  ;;  %v1210_v25 = vor.u32 %v1208_v2, %v1207_v13  ;;  %v1211_v28 = vrot.slane %v1207_v13, 4  ;;  %v2234_v42 = vshrl.u32 %v2185_v20, 16  ;;  %v6217_v44 = vcombine.low %v2185_v20, %v8025_v32  ;;  %v1604_v8 = vld [vmem:[#allocation2 + $0x14] sm:$0x1] }
 0x172   : > { %v1235_v29 = vor.u32 %v1233_v4, %v1232_v14  ;;  %v1237_v30 = vrot.slane %v1232_v14, 4  ;;  %v1218_v33 = vor.u32 %v1216_v16, %v1215_v15  ;;  %v1220_v35 = vrot.slane %v1215_v15, 4  ;;  %v2007_v12 = vld [vmem:[#allocation2 + $0xc] sm:$0xe] }
 0x173   : > { %v1488_v39 = vsel %vm7968_vm13, %v1210_v25, %v1487_v18  ;;  %v2237_v46 = vshll.u32 %v2185_v20, 16  ;;  %v902_v50 = vmax.f32 %v8022_v21, 0.0  ;;  %v8051_v53 = vadd.f32 %v7946_v27, %v834_v23  ;;  %4795 = vmatprep.mubr.bf16.mxu0 %v6217_v44 }
 0x174   : > { %v1236_v40 = vsel %vm7979_vm14, %v1228_v10, %v1235_v29  ;;  %v1499_v41 = vsel %vm7848_vm2, %v1237_v30, %v1498_v19  ;;  %1489 = vst [vmem:[#allocation2 + $0x3c] sm:$0xf] %v1488_v39  ;;  %v1219_v59 = vsel %vm7979_vm14, %v1211_v28, %v1218_v33  ;;  %v1492_v7 = vsel %vm7848_vm2, %v1220_v35, %v1491_v31 }
 0x175   : > { %1497 = vst [vmem:[#allocation2 + $0x4c] sm:$0xf] %v1236_v40  ;;  %1500 = vst [vmem:[#allocation2 + $0x50] sm:$0x1] %v1499_v41  ;;  %v8054_v54 = vmul.f32 %v7941_v24, %v748_v60  ;;  %v6218_v56 = vcombine.low %v8045_v47, %v8038_v43  ;;  %v829_v57 = vmul.f32 %v6986_v11, %v7941_v24  ;;  %v1290_v63 = vshrl.u32 %v8030_v37, 16 }
 0x176   : > { %1490 = vst [vmem:[#allocation2 + $0x40] sm:$0xf] %v1219_v59  ;;  %1493 = vst [vmem:[#allocation2 + $0x44] sm:$0x1] %v1492_v7  ;;  %v827_v58 = vmul.f32 %v7941_v24, %v729_v36  ;;  %v8063_v0 = vrot.slane %v2234_v42, 4  ;;  %v2243_v2 = vshll.u32 %v8025_v32, 16  ;;  %4796 = vmatmul.mubr.bf16.vlgmr.msra.gmra.mxu0 %v6201_v55  ;;  %v830_v3 = vmul.f32 %v6987_v61, %v7941_v24 }
 0x177   : > { %v1293_v4 = vshll.u32 %v8030_v37, 16  ;;  %4803 = vmatprep.mubr.bf16.mxu0 %v6218_v56  ;;  %v868_v5 = vadd.f32 %v7946_v27, %v829_v57  ;;  %v1647_v9 = vshrl.u32 %v8047_v49, 16  ;;  %v1650_v10 = vshll.u32 %v8047_v49, 16  ;;  %6797 = vmatpush3.bf16.msra.mxu0 %v7280_v45  ;;  %v1508_v41 = vld [vmem:[#allocation2 + $0x60] sm:$0xf] }
 0x178   : > { %v866_v6 = vadd.f32 %v7946_v27, %v827_v58  ;;  %v8075_v11 = vrot.slane %v2237_v46, 5  ;;  %v869_v51 = vadd.f32 %v7946_v27, %v830_v3  ;;  %v1656_v52 = vshll.u32 %v8060_v62, 16  ;;  %v7287_v58 = vld [vmem:[#allocation8 + $0x1f0] sm:$0xff]   ;;  %v1501_v61 = vld [vmem:[#allocation2 + $0x54] sm:$0xf] }
 0x179   : > { %v1660_v55 = vshrl.u32 %v8060_v62, 16  ;;  %v900_v13 = vmax.f32 %v868_v5, 0.0  ;;  %v1649_v15 = vrot.slane %v1647_v9, 4  ;;  %v1652_v16 = vrot.slane %v1650_v10, 5  ;;  %v732_v10 = vpop.f32.mrf.mxu0  ;;  %6798 = vmatprep.subr.bf16.mxu0 %v7287_v58 }
 0x17a   : > { %v898_v14 = vmax.f32 %v866_v6, 0.0  ;;  %v901_v17 = vmax.f32 %v869_v51, 0.0  ;;  %v1658_v18 = vrot.slane %v1656_v52, 5  ;;  %v1666_v20 = vshll.u32 %v1604_v8, 16  ;;  %v7288_v51 = vld [vmem:[#allocation8 + $0x1b0] sm:$0xff]  }
 0x17b   : > { %v1662_v19 = vrot.slane %v1660_v55, 4  ;;  %v6417_v23 = vpack.c.bf16 %v900_v13, %v900_v13  ;;  %v1653_v28 = vor.u32 %v1652_v16, %v1649_v15  ;;  %v6122_v29 = vrot.slane %v2007_v12, 9  ;;  %v7289_v52 = vld [vmem:[#allocation8 + $0x150] sm:$0xff]   ;;  %6799 = vmatpush3.bf16.msra.mxu0 %v7288_v51 }
 0x17c   : > { %v6415_v25 = vpack.c.bf16 %v898_v14, %v898_v14  ;;  %v6418_v30 = vpack.c.bf16 %v901_v17, %v901_v17  ;;  %v1668_v33 = vrot.slane %v1666_v20, 5  ;;  %v2082_v35 = vrot.slane %v8060_v62, 5  ;;  %v1512_v14 = vld [vmem:[#allocation2 + $0x68] sm:$0x1]  ;;  %6694 = vmatprep.subr.bf16.mxu1 %v7289_v52 }
 0x17d   : > { %v1663_v31 = vor.u32 %v1662_v19, %v1658_v18  ;;  %v1256_v36 = vshrl.u32 %v6417_v23, 16  ;;  %v1259_v60 = vshll.u32 %v6417_v23, 16  ;;  %v1654_v7 = vrot.slane %v1653_v28, 4  ;;  %v7292_v16 = vld [vmem:[#allocation8 + $0x110] sm:$0xff]  }
 0x17e   : > { %v1239_v39 = vshrl.u32 %v6415_v25, 16  ;;  %v1242_v40 = vshll.u32 %v6415_v25, 16  ;;  %v1264_v42 = vshrl.u32 %v6418_v30, 16  ;;  %v1267_v59 = vshll.u32 %v6418_v30, 16  ;;  %v8100_v30 = vld [vmem:[#allocation2 + $0x18] sm:$0xf]  ;;  %6695 = vmatpush3.bf16.msra.mxu1 %v7292_v16 }
 0x17f   : > { %v1664_v44 = vrot.slane %v1663_v31, 4  ;;  %v2247_v45 = vshrl.u32 %v8025_v32, 16  ;;  %v1258_v46 = vrot.slane %v1256_v36, 7  ;;  %v2084_v57 = vrot.slane %v2082_v35, 4  ;;  %v8102_v31 = vld [vmem:[#allocation2 + $0x1c] sm:$0xf] }
 0x180   : > { %v8082_v56 = vrot.slane %v1239_v39, 7  ;;  %v1266_v3 = vrot.slane %v1264_v42, 7  ;;  %v2083_v6 = vsel %vm7896_vm10, %v6122_v29, %v2082_v35  ;;  %v2085_v9 = vrot.slane %v1604_v8, 5  ;;  %v8093_v8 = vld [vmem:[#allocation2 + $0x28] sm:$0xf] }
 0x181   : > { %v1669_v5 = vsel %vm7882_vm7, %v1664_v44, %v1668_v33  ;;  %v1261_v55 = vor.u32 %v1259_v60, %v1258_v46  ;;  %v1262_v12 = vrot.slane %v1258_v46, 4  ;;  %v1659_v15 = vsel %vm7882_vm7, %v1654_v7, %v1658_v18  ;;  %v8114_v39 = vld [vmem:[#allocation2 + $0x24] sm:$0xf]  ;;  %v8141_v16 = vld [vmem:[#allocation2 + $0x30] sm:$0xf] }
 0x182   : > { %v1244_v13 = vor.u32 %v1242_v40, %v8082_v56  ;;  %v1269_v17 = vor.u32 %v1267_v59, %v1266_v3  ;;  %v1271_v19 = vrot.slane %v1266_v3, 4  ;;  %v6186_v20 = vcombine.low %v1659_v15, %v1669_v5  ;;  %v1605_v59 = vld [vmem:[#allocation2 + $0x20] sm:$0x1]  ;;  %v2008_v3 = vld [vmem:[#allocation2 + $0x18] sm:$0xe] }
 0x183   : > { %v2086_v23 = vsel %vm7896_vm10, %v2084_v57, %v2085_v9  ;;  %v1509_v25 = vsel %vm7968_vm13, %v1261_v55, %v1508_v41  ;;  %v828_v18 = vmul.f32 %v7941_v24, %v732_v10  ;;  %v8106_v33 = vrot.slane %v2243_v2, 5 }
 0x184   : > { %v1502_v28 = vsel %vm7968_vm13, %v1244_v13, %v1501_v61  ;;  %v6202_v29 = vcombine.low %v2083_v6, %v2086_v23  ;;  %1510 = vst [vmem:[#allocation2 + $0x60] sm:$0xf] %v1509_v25  ;;  %v1270_v35 = vsel %vm7979_vm14, %v1262_v12, %v1269_v17  ;;  %v1513_v36 = vsel %vm7848_vm2, %v1271_v19, %v1512_v14  ;;  %v8143_v17 = vld [vmem:[#allocation2 + $0x24] sm:$0xf] }
 0x185   : > { %1503 = vst [vmem:[#allocation2 + $0x54] sm:$0xf] %v1502_v28  ;;  %4642 = vmatprep.mubr.bf16.mxu1 %v6186_v20  ;;  %v6170_v60 = vcombine.low %v8047_v49, %v8060_v62  ;;  %v2240_v40 = vor.u32 %v8075_v11, %v8063_v0  ;;  %v8118_v32 = vrot.slane %v2247_v45, 4  ;;  %1511 = vst [vmem:[#allocation2 + $0x64] sm:$0xf] %v1270_v35  ;;  %v2258_v42 = vshrl.u32 %v8045_v47, 16 }
 0x186   : > { %1514 = vst [vmem:[#allocation2 + $0x68] sm:$0x1] %v1513_v36  ;;  %4804 = vmatmul.mubr.bf16.gmra.mxu0 %v6202_v29  ;;  %v867_v2 = vadd.f32 %v7946_v27, %v828_v18  ;;  %v6219_v41 = vcombine.low %v8114_v39, %v8093_v8  ;;  %v1671_v49 = vshrl.u32 %v8100_v30, 16  ;;  %v1674_v62 = vshll.u32 %v8100_v30, 16  ;;  %v8146_v28 = vld [vmem:[#allocation2 + $0x34] sm:$0xf] }
 0x187   : > { %4643 = vmatmul.mubr.bf16.gmra.mxu1 %v6170_v60  ;;  %v1680_v0 = vshll.u32 %v8102_v31, 16  ;;  %v2261_v11 = vshll.u32 %v8045_v47, 16  ;;  %v1684_v44 = vshrl.u32 %v8102_v31, 16  ;;  %v8131_v45 = vrot.slane %v1290_v63, 7  ;;  %v8150_v60 = vld [vmem:[#allocation2 + $0x28] sm:$0xf] }
 0x188   : > { %v899_v7 = vmax.f32 %v867_v2, 0.0  ;;  %4811 = vmatprep.mubr.bf16.mxu0 %v6219_v41  ;;  %v1673_v57 = vrot.slane %v1671_v49, 4  ;;  %v1676_v58 = vrot.slane %v1674_v62, 5  ;;  %v1690_v9 = vshll.u32 %v1605_v59, 16 }
 0x189   : > { %v1682_v61 = vrot.slane %v1680_v0, 5  ;;  %v1686_v6 = vrot.slane %v1684_v44, 4  ;;  %v2089_v10 = vrot.slane %v8102_v31, 5  ;;  %v8135_v51 = vrot.slane %v2240_v40, 4  ;;  %v1505_v40 = vld [vmem:[#allocation2 + $0x5c] sm:$0x1] }
 0x18a   : > { %v6416_v5 = vpack.c.bf16 %v899_v7, %v899_v7  ;;  %v2250_v52 = vor.u32 %v8118_v32, %v8106_v33  ;;  %v8139_v55 = vrot.slane %v2258_v42, 4  ;;  %v1677_v63 = vor.u32 %v1676_v58, %v1673_v57  ;;  %v1606_v7 = vld [vmem:[#allocation2 + $0x2c] sm:$0x1]  ;;  %v1522_v44 = vld [vmem:[#allocation2 + $0x78] sm:$0xf] }
 0x18b   : > { %v1687_v14 = vor.u32 %v1686_v6, %v1682_v61  ;;  %v6123_v15 = vrot.slane %v2008_v3, 9  ;;  %v1245_v19 = vrot.slane %v8082_v56, 4  ;;  %v2091_v23 = vrot.slane %v2089_v10, 4  ;;  %v7295_v6 = vld [vmem:[#allocation8 + $0x1e8] sm:$0xff]  }
 0x18c   : > { %v1247_v12 = vshrl.u32 %v6416_v5, 16  ;;  %v1250_v13 = vshll.u32 %v6416_v5, 16  ;;  %v1678_v20 = vrot.slane %v1677_v63, 4  ;;  %v2092_v25 = vrot.slane %v1605_v59, 5  ;;  %v2009_v5 = vld [vmem:[#allocation2 + $0x24] sm:$0xe]  ;;  %6800 = vmatprep.subr.bf16.mxu0 %v7295_v6 }
 0x18d   : > { %v1688_v18 = vrot.slane %v1687_v14, 4  ;;  %v1692_v35 = vrot.slane %v1690_v9, 5  ;;  %v2090_v36 = vsel %vm7896_vm10, %v6123_v15, %v2089_v10  ;;  %v6220_v41 = vcombine.low %v8141_v16, %v8146_v28  ;;  %v7297_v14 = vld [vmem:[#allocation8 + $0x148] sm:$0xff]  }
 0x18e   : > { %v1249_v29 = vrot.slane %v1247_v12, 7  ;;  %v1683_v2 = vsel %vm7882_vm7, %v1678_v20, %v1682_v61  ;;  %v2093_v56 = vsel %vm7896_vm10, %v2091_v23, %v2092_v25  ;;  %v1695_v42 = vshrl.u32 %v8143_v17, 16  ;;  %v7300_v15 = vld [vmem:[#allocation8 + $0x108] sm:$0xff]   ;;  %6696 = vmatprep.subr.bf16.mxu1 %v7297_v14 }
 0x18f   : > { %v1693_v62 = vsel %vm7882_vm7, %v1688_v18, %v1692_v35  ;;  %v6203_v0 = vcombine.low %v2090_v36, %v2093_v56  ;;  %v1698_v61 = vshll.u32 %v8143_v17, 16  ;;  %v1704_v3 = vshll.u32 %v8150_v60, 16  ;;  %6697 = vmatpush3.bf16.msra.mxu1 %v7300_v15  ;;  %v8213_v32 = vld [vmem:[#allocation2 + $0x40] sm:$0xf] }
 0x190   : > { %v1252_v59 = vor.u32 %v1250_v13, %v1249_v29  ;;  %v1254_v49 = vrot.slane %v1249_v29, 4  ;;  %v6187_v57 = vcombine.low %v1683_v2, %v1693_v62  ;;  %v1697_v58 = vrot.slane %v1695_v42, 4  ;;  %v7296_v13 = vld [vmem:[#allocation8 + $0x1a8] sm:$0xff]  }
 0x191   : > { %4812 = vmatmul.mubr.bf16.gmra.mxu0 %v6203_v0  ;;  %v6171_v63 = vcombine.low %v8100_v30, %v8102_v31  ;;  %v1708_v12 = vshrl.u32 %v8150_v60, 16  ;;  %v1700_v20 = vrot.slane %v1698_v61, 5  ;;  %v1706_v23 = vrot.slane %v1704_v3, 5  ;;  %v1515_v0 = vld [vmem:[#allocation2 + $0x6c] sm:$0xf] }
 0x192   : > { %v1253_v9 = vsel %vm7979_vm14, %v1245_v19, %v1252_v59  ;;  %v1506_v10 = vsel %vm7848_vm2, %v1254_v49, %v1505_v40  ;;  %4650 = vmatprep.mubr.bf16.mxu1 %v6187_v57  ;;  %4819 = vmatprep.mubr.bf16.mxu0 %v6220_v41  ;;  %v1714_v25 = vshll.u32 %v1606_v7, 16  ;;  %v1295_v19 = vor.u32 %v1293_v4, %v8131_v45 }
 0x193   : > { %1504 = vst [vmem:[#allocation2 + $0x58] sm:$0xf] %v1253_v9  ;;  %1507 = vst [vmem:[#allocation2 + $0x5c] sm:$0x1] %v1506_v10  ;;  %v8175_v29 = vrot.slane %v2261_v11, 5  ;;  %4651 = vmatmul.mubr.bf16.gmra.mxu1 %v6171_v63  ;;  %v1710_v30 = vrot.slane %v1708_v12, 4  ;;  %v6419_v31 = vpack.c.bf16 %v902_v50, %v902_v50  ;;  %v1701_v35 = vor.u32 %v1700_v20, %v1697_v58 }
 0x194   : > { %v905_v18 = vmax.f32 %v8051_v53, 0.0  ;;  %v1523_v36 = vsel %vm7968_vm13, %v1295_v19, %v1522_v44  ;;  %v6124_v40 = vrot.slane %v2009_v5, 9  ;;  %v2096_v37 = vrot.slane %v8150_v60, 5  ;;  %6801 = vmatpush3.bf16.msra.mxu0 %v7296_v13  ;;  %v8203_v12 = vld [vmem:[#allocation2 + $0x30] sm:$0xf] }
 0x195   : > { %v1711_v47 = vor.u32 %v1710_v30, %v1706_v23  ;;  %1524 = vst [vmem:[#allocation2 + $0x78] sm:$0xf] %v1523_v36  ;;  %v1273_v4 = vshrl.u32 %v6419_v31, 16  ;;  %v1276_v11 = vshll.u32 %v6419_v31, 16  ;;  %v1702_v21 = vrot.slane %v1701_v35, 4 }
 0x196   : > { %v6422_v2 = vpack.c.bf16 %v905_v18, %v905_v18  ;;  %v1716_v50 = vrot.slane %v1714_v25, 5  ;;  %v2098_v56 = vrot.slane %v2096_v37, 4  ;;  %v2099_v53 = vrot.slane %v1606_v7, 5  ;;  %v8211_v20 = vld [vmem:[#allocation2 + $0x3c] sm:$0xf] }
 0x197   : > { %v1712_v41 = vrot.slane %v1711_v47, 4  ;;  %v8184_v42 = vrot.slane %v1273_v4, 7  ;;  %v1296_v62 = vrot.slane %v8131_v45, 4  ;;  %v2097_v44 = vsel %vm7896_vm10, %v6124_v40, %v2096_v37  ;;  %v1526_v45 = vld [vmem:[#allocation2 + $0x80] sm:$0x1] }
 0x198   : > { %v1298_v59 = vshrl.u32 %v6422_v2, 16  ;;  %v1301_v49 = vshll.u32 %v6422_v2, 16  ;;  %v2100_v57 = vsel %vm7896_vm10, %v2098_v56, %v2099_v53  ;;  %v871_v58 = vadd.f32 %v7946_v27, %v8054_v54  ;;  %v8205_v27 = vld [vmem:[#allocation2 + $0x34] sm:$0xf]  ;;  %v2010_v30 = vld [vmem:[#allocation2 + $0x30] sm:$0xe] }
 0x199   : > { %v1707_v7 = vsel %vm7882_vm7, %v1702_v21, %v1706_v23  ;;  %v1717_v61 = vsel %vm7882_vm7, %v1712_v41, %v1716_v50  ;;  %v1278_v3 = vor.u32 %v1276_v11, %v8184_v42  ;;  %v8201_v6 = vrot.slane %v2250_v52, 4  ;;  %v1607_v40 = vld [vmem:[#allocation2 + $0x38] sm:$0x1] }
 0x19a   : > { %v1300_v5 = vrot.slane %v1298_v59, 7  ;;  %v6188_v9 = vcombine.low %v1707_v7, %v1717_v61  ;;  %v6204_v10 = vcombine.low %v2097_v44, %v2100_v57  ;;  %v903_v63 = vmax.f32 %v871_v58, 0.0 }
 0x19b   : > { %v1516_v54 = vsel %vm7968_vm13, %v1278_v3, %v1515_v0  ;;  %v6172_v15 = vcombine.low %v8143_v17, %v8150_v60  ;;  %v2282_v52 = vshrl.u32 %v8114_v39, 16  ;;  %v2285_v23 = vshll.u32 %v8114_v39, 16  ;;  %v8225_v39 = vpop.f32.mrf.mxu1  ;;  %v7303_v3 = vld [vmem:[#allocation8 + $0x1e0] sm:$0xff]  }
 0x19c   : > { %v1303_v13 = vor.u32 %v1301_v49, %v1300_v5  ;;  %v1305_v14 = vrot.slane %v1300_v5, 4  ;;  %4658 = vmatprep.mubr.bf16.mxu1 %v6188_v9  ;;  %1517 = vst [vmem:[#allocation2 + $0x6c] sm:$0xf] %v1516_v54  ;;  %4820 = vmatmul.mubr.bf16.gmra.mxu0 %v6204_v10  ;;  %v6420_v25 = vpack.c.bf16 %v903_v63, %v903_v63  ;;  %v1279_v31 = vrot.slane %v8184_v42, 4  ;;  %v1519_v49 = vld [vmem:[#allocation2 + $0x74] sm:$0x1] }
 0x19d   : > { %v6221_v19 = vcombine.low %v8211_v20, %v8213_v32  ;;  %4659 = vmatmul.mubr.bf16.gmra.mxu1 %v6172_v15  ;;  %v1719_v18 = vshrl.u32 %v8203_v12, 16  ;;  %v1722_v37 = vshll.u32 %v8203_v12, 16  ;;  %v1728_v47 = vshll.u32 %v8205_v27, 16  ;;  %v761_v44 = vpop.f32.mrf.mxu1  ;;  %v7304_v5 = vld [vmem:[#allocation8 + $0x1a0] sm:$0xff]   ;;  %v7306_v15 = vld [vmem:[#allocation8 + $0x1d8] sm:$0xff]   ;;  %6802 = vmatprep.subr.bf16.mxu0 %v7303_v3 }
 0x19e   : > { %v1304_v17 = vsel %vm7979_vm14, %v1296_v62, %v1303_v13  ;;  %v1527_v60 = vsel %vm7848_vm2, %v1305_v14, %v1526_v45  ;;  %v1281_v35 = vshrl.u32 %v6420_v25, 16  ;;  %v1284_v36 = vshll.u32 %v6420_v25, 16  ;;  %v7305_v45 = vld [vmem:[#allocation8 + $0x140] sm:$0xff]   ;;  %v8238_v13 = vld [vmem:[#allocation2 + $0x48] sm:$0xf]  ;;  %6803 = vmatpush3.bf16.msra.mxu0 %v7304_v5 }
 0x19f   : > { %1525 = vst [vmem:[#allocation2 + $0x7c] sm:$0xf] %v1304_v17  ;;  %1528 = vst [vmem:[#allocation2 + $0x80] sm:$0x1] %v1527_v60  ;;  %4827 = vmatprep.mubr.bf16.mxu0 %v6221_v19  ;;  %v1721_v4 = vrot.slane %v1719_v18, 4  ;;  %v1732_v11 = vshrl.u32 %v8205_v27, 16  ;;  %6698 = vmatprep.subr.bf16.mxu1 %v7305_v45 }
 0x1a0   : > { %v1738_v2 = vshll.u32 %v1607_v40, 16  ;;  %v6125_v21 = vrot.slane %v2010_v30, 9  ;;  %v1283_v50 = vrot.slane %v1281_v35, 7  ;;  %v1724_v56 = vrot.slane %v1722_v37, 5  ;;  %v8240_v14 = vld [vmem:[#allocation2 + $0x3c] sm:$0xf]  ;;  %6804 = vmatprep.subr.bf16.mxu0 %v7306_v15 }
 0x1a1   : > { %v1730_v53 = vrot.slane %v1728_v47, 5  ;;  %v2103_v41 = vrot.slane %v8205_v27, 5  ;;  %v8231_v42 = vrot.slane %v2282_v52, 4  ;;  %v1734_v62 = vrot.slane %v1732_v11, 4  ;;  %v8247_v30 = vld [vmem:[#allocation2 + $0x4c] sm:$0xf] }
 0x1a2   : > { %v2106_v0 = vrot.slane %v1607_v40, 5  ;;  %v8234_v57 = vrot.slane %v2285_v23, 5  ;;  %v1286_v58 = vor.u32 %v1284_v36, %v1283_v50  ;;  %v1288_v7 = vrot.slane %v1283_v50, 4  ;;  %v8249_v17 = vld [vmem:[#allocation2 + $0x40] sm:$0xf]  ;;  %v6995_v40 = vpop.f32.mrf.mxu1  ;;  %v7309_v37 = vld [vmem:[#allocation8 + $0x100] sm:$0xff]  }
 0x1a3   : > { %v1725_v61 = vor.u32 %v1724_v56, %v1721_v4  ;;  %v1735_v9 = vor.u32 %v1734_v62, %v1730_v53  ;;  %v1740_v10 = vrot.slane %v1738_v2, 5  ;;  %v2104_v63 = vsel %vm7896_vm10, %v6125_v21, %v2103_v41  ;;  %v8256_v36 = vld [vmem:[#allocation2 + $0x44] sm:$0x1]  ;;  %v7310_v21 = vld [vmem:[#allocation8 + $0x198] sm:$0xff]   ;;  %6699 = vmatpush3.bf16.msra.mxu1 %v7309_v37  ;;  %v8274_v3 = vld [vmem:[%s10146_s2] ss:$0 sm:$0xff] }
 0x1a4   : > { %v2105_v54 = vrot.slane %v2103_v41, 4  ;;  %v2306_v52 = vshrl.u32 %v8141_v16, 16  ;;  %v1287_v23 = vsel %vm7979_vm14, %v1279_v31, %v1286_v58  ;;  %v1520_v25 = vsel %vm7848_vm2, %v1288_v7, %v1519_v49  ;;  %v2011_v41 = vld [vmem:[#allocation2 + $0x3c] sm:$0xe]  ;;  %v764_v45 = vpop.f32.mrf.mxu1  ;;  %6805 = vmatpush3.bf16.msra.mxu0 %v7310_v21 }
 0x1a5   : > { %v1726_v19 = vrot.slane %v1725_v61, 4  ;;  %v2309_v60 = vshll.u32 %v8141_v16, 16  ;;  %1518 = vst [vmem:[#allocation2 + $0x70] sm:$0xf] %v1287_v23  ;;  %1521 = vst [vmem:[#allocation2 + $0x74] sm:$0x1] %v1520_v25  ;;  %v6173_v31 = vcombine.low %v8203_v12, %v8205_v27  ;;  %v6222_v11 = vcombine.low %v8238_v13, %v8247_v30 }
 0x1a6   : > { %v1736_v18 = vrot.slane %v1735_v9, 4  ;;  %v2107_v35 = vsel %vm7896_vm10, %v2105_v54, %v2106_v0  ;;  %v1743_v2 = vshrl.u32 %v8240_v14, 16  ;;  %v1746_v12 = vshll.u32 %v8240_v14, 16  ;;  %v7311_v25 = vld [vmem:[#allocation8 + $0x1d0] sm:$0xff]  }
 0x1a7   : > { %v1731_v47 = vsel %vm7882_vm7, %v1726_v19, %v1730_v53  ;;  %v6205_v4 = vcombine.low %v2104_v63, %v2107_v35  ;;  %v1752_v27 = vshll.u32 %v8249_v17, 16  ;;  %v1756_v56 = vshrl.u32 %v8249_v17, 16  ;;  %v7312_v19 = vld [vmem:[#allocation8 + $0x190] sm:$0xff]   ;;  %6806 = vmatprep.subr.bf16.mxu0 %v7311_v25 }
 0x1a8   : > { %v1741_v50 = vsel %vm7882_vm7, %v1736_v18, %v1740_v10  ;;  %v1745_v49 = vrot.slane %v1743_v2, 4  ;;  %v1762_v62 = vshll.u32 %v8256_v36, 16  ;;  %v837_v0 = vmul.f32 %v8225_v39, %v7941_v24  ;;  %v8280_v10 = vld [vmem:[%s10147_s3] ss:$0 sm:$0xff]  ;;  %6807 = vmatpush3.bf16.msra.mxu0 %v7312_v19  ;;  %v1032_v19 = vld [vmem:[#allocation2 + $0xc8] sm:$0x1] }
 0x1a9   : > { %v6189_v53 = vcombine.low %v1731_v47, %v1741_v50  ;;  %4828 = vmatmul.mubr.bf16.gmra.mxu0 %v6205_v4  ;;  %v1748_v58 = vrot.slane %v1746_v12, 5  ;;  %v1754_v7 = vrot.slane %v1752_v27, 5  ;;  %v1758_v61 = vrot.slane %v1756_v56, 4  ;;  %v7313_v18 = vld [vmem:[#allocation8 + $0x1c8] sm:$0xff]  }
 0x1aa   : > { %4835 = vmatprep.mubr.bf16.mxu0 %v6222_v11  ;;  %v835_v5 = vmul.f32 %v8274_v3, %v761_v44  ;;  %v1764_v9 = vrot.slane %v1762_v62, 5  ;;  %v876_v24 = vadd.f32 %v8280_v10, %v837_v0  ;;  %v838_v39 = vmul.f32 %v8274_v3, %v6995_v40  ;;  %v7315_v56 = vld [vmem:[#allocation8 + $0x188] sm:$0xff]   ;;  %6808 = vmatprep.subr.bf16.mxu0 %v7313_v18 }
 0x1ab   : > { %4666 = vmatprep.mubr.bf16.mxu1 %v6189_v53  ;;  %v6126_v63 = vrot.slane %v2011_v41, 9  ;;  %v1749_v54 = vor.u32 %v1748_v58, %v1745_v49  ;;  %v1759_v15 = vor.u32 %v1758_v61, %v1754_v7  ;;  %v2110_v44 = vrot.slane %v8249_v17, 5 }
 0x1ac   : > { %4667 = vmatmul.mubr.bf16.gmra.mxu1 %v6173_v31  ;;  %v874_v23 = vadd.f32 %v8280_v10, %v835_v5  ;;  %v908_v35 = vmax.f32 %v876_v24, 0.0  ;;  %v877_v37 = vadd.f32 %v8280_v10, %v838_v39  ;;  %v2113_v47 = vrot.slane %v8256_v36, 5  ;;  %v7316_v5 = vld [vmem:[#allocation8 + $0x1c0] sm:$0xff]   ;;  %6809 = vmatpush3.bf16.msra.mxu0 %v7315_v56 }
 0x1ad   : > { %v836_v4 = vmul.f32 %v8274_v3, %v764_v45  ;;  %v1750_v11 = vrot.slane %v1749_v54, 4  ;;  %v1760_v40 = vrot.slane %v1759_v15, 4  ;;  %v2111_v31 = vsel %vm7896_vm10, %v6126_v63, %v2110_v44  ;;  %v1536_v45 = vld [vmem:[#allocation2 + $0x90] sm:$0xf]  ;;  %v1529_v15 = vld [vmem:[#allocation2 + $0x84] sm:$0xf]  ;;  %6810 = vmatprep.subr.bf16.mxu0 %v7316_v5 }
 0x1ae   : > { %v906_v2 = vmax.f32 %v874_v23, 0.0  ;;  %v6425_v21 = vpack.c.bf16 %v908_v35, %v908_v35  ;;  %v909_v50 = vmax.f32 %v877_v37, 0.0  ;;  %v2112_v12 = vrot.slane %v2110_v44, 4  ;;  %v7319_v54 = vld [vmem:[#allocation8 + $0x238] sm:$0xff]   ;;  %v1540_v35 = vld [vmem:[#allocation2 + $0x98] sm:$0x1] }
 0x1af   : > { %v875_v27 = vadd.f32 %v8280_v10, %v836_v4  ;;  %v1755_v41 = vsel %vm7882_vm7, %v1750_v11, %v1754_v7  ;;  %v1765_v36 = vsel %vm7882_vm7, %v1760_v40, %v1764_v9  ;;  %v6174_v49 = vcombine.low %v8240_v14, %v8249_v17  ;;  %v7317_v17 = vld [vmem:[#allocation8 + $0x180] sm:$0xff]   ;;  %7004 = vmatprep.subr.bf16.mxu1 %v7319_v54 }
 0x1b0   : > { %v6423_v53 = vpack.c.bf16 %v906_v2, %v906_v2  ;;  %v6190_v62 = vcombine.low %v1755_v41, %v1765_v36  ;;  %v1324_v0 = vshrl.u32 %v6425_v21, 16  ;;  %v1327_v58 = vshll.u32 %v6425_v21, 16  ;;  %v8309_v2 = vld [vmem:[#allocation2 + $0x48] sm:$0xf]  ;;  %v8317_v41 = vld [vmem:[#allocation2 + $0x54] sm:$0xf]  ;;  %6811 = vmatpush3.bf16.msra.mxu0 %v7317_v17  ;;  %v6998_v17 = vpop.f32.mrf.mxu1 }
 0x1b1   : > { %v6426_v61 = vpack.c.bf16 %v909_v50, %v909_v50  ;;  %v2114_v63 = vsel %vm7896_vm10, %v2112_v12, %v2113_v47  ;;  %v907_v7 = vmax.f32 %v875_v27, 0.0  ;;  %v8302_v25 = vrot.slane %v2306_v52, 4  ;;  %v8312_v12 = vld [vmem:[#allocation2 + $0x4c] sm:$0xf]  ;;  %v8319_v36 = vld [vmem:[#allocation2 + $0x58] sm:$0xf] }
 0x1b2   : > { %v1307_v24 = vshrl.u32 %v6423_v53, 16  ;;  %v1310_v39 = vshll.u32 %v6423_v53, 16  ;;  %4674 = vmatprep.mubr.bf16.mxu1 %v6190_v62  ;;  %v1326_v9 = vrot.slane %v1324_v0, 7  ;;  %v6206_v14 = vcombine.low %v2111_v31, %v2114_v63 }
 0x1b3   : > { %v1332_v23 = vshrl.u32 %v6426_v61, 16  ;;  %v1335_v44 = vshll.u32 %v6426_v61, 16  ;;  %v6424_v37 = vpack.c.bf16 %v907_v7, %v907_v7  ;;  %v8307_v47 = vrot.slane %v2309_v60, 5 }
 0x1b4   : > { %v1309_v18 = vrot.slane %v1307_v24, 7  ;;  %4675 = vmatmul.mubr.bf16.gmra.mxu1 %v6174_v49  ;;  %v1329_v4 = vor.u32 %v1327_v58, %v1326_v9  ;;  %v1330_v11 = vrot.slane %v1326_v9, 4  ;;  %4836 = vmatmul.mubr.bf16.gmra.mxu0 %v6206_v14  ;;  %v2330_v52 = vshrl.u32 %v8211_v20, 16  ;;  %v2012_v58 = vld [vmem:[#allocation2 + $0x48] sm:$0xe] }
 0x1b5   : > { %v1334_v40 = vrot.slane %v1332_v23, 7  ;;  %v1315_v21 = vshrl.u32 %v6424_v37, 16  ;;  %v1318_v50 = vshll.u32 %v6424_v37, 16  ;;  %v2333_v27 = vshll.u32 %v8211_v20, 16  ;;  %v1609_v20 = vld [vmem:[#allocation2 + $0x50] sm:$0x1] }
 0x1b6   : > { %v1312_v31 = vor.u32 %v1310_v39, %v1309_v18  ;;  %v1537_v16 = vsel %vm7968_vm13, %v1329_v4, %v1536_v45  ;;  %v1313_v53 = vrot.slane %v1309_v18, 4  ;;  %v6223_v0 = vcombine.low %v8317_v41, %v8319_v36  ;;  %v1533_v45 = vld [vmem:[#allocation2 + $0x8c] sm:$0x1] }
 0x1b7   : > { %v1337_v60 = vor.u32 %v1335_v44, %v1334_v40  ;;  %v1339_v56 = vrot.slane %v1334_v40, 4  ;;  %1538 = vst [vmem:[#allocation2 + $0x90] sm:$0xf] %v1537_v16  ;;  %v1317_v62 = vrot.slane %v1315_v21, 7  ;;  %v1767_v24 = vshrl.u32 %v8309_v2, 16 }
 0x1b8   : > { %v1530_v49 = vsel %vm7968_vm13, %v1312_v31, %v1529_v15  ;;  %v1770_v39 = vshll.u32 %v8309_v2, 16  ;;  %4843 = vmatprep.mubr.bf16.mxu0 %v6223_v0  ;;  %v1776_v54 = vshll.u32 %v8312_v12, 16  ;;  %v1780_v9 = vshrl.u32 %v8312_v12, 16  ;;  %v8342_v16 = vld [vmem:[#allocation2 + $0x64] sm:$0xf] }
 0x1b9   : > { %1531 = vst [vmem:[#allocation2 + $0x84] sm:$0xf] %v1530_v49  ;;  %v1338_v61 = vsel %vm7979_vm14, %v1330_v11, %v1337_v60  ;;  %v1541_v5 = vsel %vm7848_vm2, %v1339_v56, %v1540_v35  ;;  %v1320_v63 = vor.u32 %v1318_v50, %v1317_v62  ;;  %v1322_v7 = vrot.slane %v1317_v62, 4  ;;  %v8340_v50 = vld [vmem:[#allocation2 + $0x60] sm:$0xf] }
 0x1ba   : > { %1539 = vst [vmem:[#allocation2 + $0x94] sm:$0xf] %v1338_v61  ;;  %1542 = vst [vmem:[#allocation2 + $0x98] sm:$0x1] %v1541_v5  ;;  %v1769_v15 = vrot.slane %v1767_v24, 4  ;;  %v1772_v23 = vrot.slane %v1770_v39, 5  ;;  %v777_v5 = vpop.f32.mrf.mxu1  ;;  %v6175_v24 = vcombine.low %v8309_v2, %v8312_v12  ;;  %v6224_v39 = vcombine.low %v8340_v50, %v8342_v16 }
 0x1bb   : > { %v1786_v44 = vshll.u32 %v1609_v20, 16  ;;  %v6127_v14 = vrot.slane %v2012_v58, 9  ;;  %v1321_v18 = vsel %vm7979_vm14, %v1313_v53, %v1320_v63  ;;  %v1534_v35 = vsel %vm7848_vm2, %v1322_v7, %v1533_v45  ;;  %v8347_v62 = vld [vmem:[#allocation2 + $0x54] sm:$0xf]  ;;  %v1610_v63 = vld [vmem:[#allocation2 + $0x5c] sm:$0x1] }
 0x1bc   : > { %v1778_v37 = vrot.slane %v1776_v54, 5  ;;  %v1782_v4 = vrot.slane %v1780_v9, 4  ;;  %v8337_v11 = vrot.slane %v2330_v52, 4  ;;  %1532 = vst [vmem:[#allocation2 + $0x88] sm:$0xf] %v1321_v18  ;;  %v1773_v40 = vor.u32 %v1772_v23, %v1769_v15 }
 0x1bd   : > { %1535 = vst [vmem:[#allocation2 + $0x8c] sm:$0x1] %v1534_v35  ;;  %v2117_v31 = vrot.slane %v8312_v12, 5  ;;  %v2120_v21 = vrot.slane %v1609_v20, 5  ;;  %v8344_v60 = vrot.slane %v2333_v27, 5  ;;  %v1788_v49 = vrot.slane %v1786_v44, 5 }
 0x1be   : > { %v1783_v53 = vor.u32 %v1782_v4, %v1778_v37  ;;  %v2354_v52 = vshrl.u32 %v8238_v13, 16  ;;  %v1774_v0 = vrot.slane %v1773_v40, 4  ;;  %v8352_v20 = vld [vmem:[#allocation2 + $0x58] sm:$0xf]  ;;  %v2357_v45 = vshll.u32 %v8238_v13, 16  ;;  %v6999_v40 = vpop.f32.mrf.mxu1 }
 0x1bf   : > { %v2118_v58 = vsel %vm7896_vm10, %v6127_v14, %v2117_v31  ;;  %v2119_v61 = vrot.slane %v2117_v31, 4  ;;  %v1791_v9 = vshrl.u32 %v8347_v62, 16  ;;  %v1794_v15 = vshll.u32 %v8347_v62, 16  ;;  %v967_v14 = vld [vmem:[#allocation2 + $0x9c] sm:$0x1] }
 0x1c0   : > { %v1784_v27 = vrot.slane %v1783_v53, 4  ;;  %v1779_v7 = vsel %vm7882_vm7, %v1774_v0, %v1778_v37  ;;  %v1800_v2 = vshll.u32 %v8352_v20, 16  ;;  %v1804_v12 = vshrl.u32 %v8352_v20, 16  ;;  %v1026_v31 = vld [vmem:[#allocation2 + $0xb0] sm:$0x1] }
 0x1c1   : > { %v2121_v54 = vsel %vm7896_vm10, %v2119_v61, %v2120_v21  ;;  %v1793_v35 = vrot.slane %v1791_v9, 4  ;;  %v1796_v4 = vrot.slane %v1794_v15, 5  ;;  %v1810_v37 = vshll.u32 %v1610_v63, 16 }
 0x1c2   : > { %v1789_v23 = vsel %vm7882_vm7, %v1784_v27, %v1788_v49  ;;  %v6207_v44 = vcombine.low %v2118_v58, %v2121_v54  ;;  %v1802_v21 = vrot.slane %v1800_v2, 5  ;;  %v1806_v53 = vrot.slane %v1804_v12, 4  ;;  %v2013_v49 = vld [vmem:[#allocation2 + $0x54] sm:$0xe]  ;;  %v780_v12 = vpop.f32.mrf.mxu1 }
 0x1c3   : > { %v6191_v18 = vcombine.low %v1779_v7, %v1789_v23  ;;  %v841_v0 = vmul.f32 %v8274_v3, %v6998_v17  ;;  %v839_v61 = vmul.f32 %v8274_v3, %v777_v5  ;;  %v1797_v58 = vor.u32 %v1796_v4, %v1793_v35  ;;  %v1023_v4 = vld [vmem:[#allocation2 + $0xa4] sm:$0x1] }
 0x1c4   : > { %4844 = vmatmul.mubr.bf16.gmra.mxu0 %v6207_v44  ;;  %v1812_v27 = vrot.slane %v1810_v37, 5  ;;  %v968_v7 = vsel %vm7848_vm2, 0, %v967_v14  ;;  %v842_v54 = vmul.f32 %v8274_v3, %v6999_v40  ;;  %v1807_v9 = vor.u32 %v1806_v53, %v1802_v21 }
 0x1c5   : > { %4682 = vmatprep.mubr.bf16.mxu1 %v6191_v18  ;;  %4851 = vmatprep.mubr.bf16.mxu0 %v6224_v39  ;;  %v880_v15 = vadd.f32 %v8280_v10, %v841_v0  ;;  %v878_v23 = vadd.f32 %v8280_v10, %v839_v61  ;;  %969 = vst [vmem:[#allocation2 + $0x9c] sm:$0x1] %v968_v7  ;;  %v1027_v17 = vsel %vm7856_vm4, 0, %v1026_v31  ;;  %v1798_v5 = vrot.slane %v1797_v58, 4 }
 0x1c6   : > { %4683 = vmatmul.mubr.bf16.gmra.mxu1 %v6175_v24  ;;  %v881_v39 = vadd.f32 %v8280_v10, %v842_v54  ;;  %1028 = vst [vmem:[#allocation2 + $0xb0] sm:$0x1] %v1027_v17  ;;  %v6128_v44 = vrot.slane %v2013_v49, 9  ;;  %v2124_v2 = vrot.slane %v8352_v20, 5  ;;  %v1808_v14 = vrot.slane %v1807_v9, 4 }
 0x1c7   : > { %v912_v18 = vmax.f32 %v880_v15, 0.0  ;;  %v910_v24 = vmax.f32 %v878_v23, 0.0  ;;  %v2127_v35 = vrot.slane %v1610_v63, 5  ;;  %v1803_v37 = vsel %vm7882_vm7, %v1798_v5, %v1802_v21 }
 0x1c8   : > { %v913_v40 = vmax.f32 %v881_v39, 0.0  ;;  %v2125_v31 = vsel %vm7896_vm10, %v6128_v44, %v2124_v2  ;;  %v2126_v53 = vrot.slane %v2124_v2, 4  ;;  %v1813_v0 = vsel %vm7882_vm7, %v1808_v14, %v1812_v27  ;;  %v1550_v14 = vld [vmem:[#allocation2 + $0xa8] sm:$0xf] }
 0x1c9   : > { %v6429_v61 = vpack.c.bf16 %v912_v18, %v912_v18  ;;  %v6427_v49 = vpack.c.bf16 %v910_v24, %v910_v24  ;;  %v840_v58 = vmul.f32 %v8274_v3, %v780_v12  ;;  %v6192_v7 = vcombine.low %v1803_v37, %v1813_v0 }
 0x1ca   : > { %v6430_v54 = vpack.c.bf16 %v913_v40, %v913_v40  ;;  %v2128_v63 = vsel %vm7896_vm10, %v2126_v53, %v2127_v35  ;;  %v1024_v21 = vsel %vm7856_vm4, 0, %v1023_v4  ;;  %v6176_v24 = vcombine.low %v8347_v62, %v8352_v20 }
 0x1cb   : > { %v1358_v9 = vshrl.u32 %v6429_v61, 16  ;;  %v1361_v15 = vshll.u32 %v6429_v61, 16  ;;  %v1341_v23 = vshrl.u32 %v6427_v49, 16  ;;  %v1344_v17 = vshll.u32 %v6427_v49, 16  ;;  %1025 = vst [vmem:[#allocation2 + $0xa4] sm:$0x1] %v1024_v21  ;;  %4690 = vmatprep.mubr.bf16.mxu1 %v6192_v7 }
 0x1cc   : > { %v1366_v5 = vshrl.u32 %v6430_v54, 16  ;;  %v1369_v27 = vshll.u32 %v6430_v54, 16  ;;  %v6208_v39 = vcombine.low %v2125_v31, %v2128_v63  ;;  %v879_v44 = vadd.f32 %v8280_v10, %v840_v58  ;;  %v1543_v37 = vld [vmem:[#allocation2 + $0x9c] sm:$0xf]  ;;  %v8405_v54 = vld [vmem:[#allocation2 + $0x60] sm:$0xf] }
 0x1cd   : > { %v1360_v12 = vrot.slane %v1358_v9, 7  ;;  %v1343_v18 = vrot.slane %v1341_v23, 7  ;;  %v8397_v35 = vrot.slane %v2354_v52, 4  ;;  %v8401_v4 = vrot.slane %v2357_v45, 5  ;;  %v1554_v58 = vld [vmem:[#allocation2 + $0xb0] sm:$0x1] }
 0x1ce   : > { %v1368_v40 = vrot.slane %v1366_v5, 7  ;;  %4852 = vmatmul.mubr.bf16.gmra.mxu0 %v6208_v39  ;;  %v911_v31 = vmax.f32 %v879_v44, 0.0  ;;  %v2378_v53 = vshrl.u32 %v8317_v41, 16  ;;  %4691 = vmatmul.mubr.bf16.gmra.mxu1 %v6176_v24  ;;  %v2381_v62 = vshll.u32 %v8317_v41, 16  ;;  %v8413_v9 = vld [vmem:[#allocation2 + $0x64] sm:$0xf] }
 0x1cf   : > { %v1363_v0 = vor.u32 %v1361_v15, %v1360_v12  ;;  %v1364_v61 = vrot.slane %v1360_v12, 4  ;;  %v1346_v49 = vor.u32 %v1344_v17, %v1343_v18  ;;  %v2402_v45 = vshrl.u32 %v8340_v50, 16  ;;  %v1611_v15 = vld [vmem:[#allocation2 + $0x68] sm:$0x1]  ;;  %v8419_v39 = vld [vmem:[#allocation2 + $0x70] sm:$0xf] }
 0x1d0   : > { %v1371_v20 = vor.u32 %v1369_v27, %v1368_v40  ;;  %v1373_v52 = vrot.slane %v1368_v40, 4  ;;  %v6428_v7 = vpack.c.bf16 %v911_v31, %v911_v31  ;;  %v2201_v27 = vld [vmem:[#allocation2 + $0x6c] sm:$0xf]  ;;  %v2405_v44 = vshll.u32 %v8340_v50, 16 }
 0x1d1   : > { %v1551_v63 = vsel %vm7968_vm13, %v1363_v0, %v1550_v14  ;;  %v1544_v21 = vsel %vm7968_vm13, %v1346_v49, %v1543_v37  ;;  %v1347_v12 = vrot.slane %v1343_v18, 4  ;;  %v6225_v14 = vcombine.low %v2201_v27, %v8419_v39 }
 0x1d2   : > { %1552 = vst [vmem:[#allocation2 + $0xa8] sm:$0xf] %v1551_v63  ;;  %1545 = vst [vmem:[#allocation2 + $0x9c] sm:$0xf] %v1544_v21  ;;  %v1372_v41 = vsel %vm7979_vm14, %v1364_v61, %v1371_v20  ;;  %v1555_v23 = vsel %vm7848_vm2, %v1373_v52, %v1554_v58  ;;  %v1349_v17 = vshrl.u32 %v6428_v7, 16  ;;  %v1352_v5 = vshll.u32 %v6428_v7, 16 }
 0x1d3   : > { %1553 = vst [vmem:[#allocation2 + $0xac] sm:$0xf] %v1372_v41  ;;  %1556 = vst [vmem:[#allocation2 + $0xb0] sm:$0x1] %v1555_v23  ;;  %v1815_v24 = vshrl.u32 %v8405_v54, 16  ;;  %v1818_v40 = vshll.u32 %v8405_v54, 16  ;;  %4859 = vmatprep.mubr.bf16.mxu0 %v6225_v14  ;;  %v7002_v41 = vpop.f32.mrf.mxu1 }
 0x1d4   : > { %v1351_v37 = vrot.slane %v1349_v17, 7  ;;  %v1824_v31 = vshll.u32 %v8413_v9, 16  ;;  %v1828_v0 = vshrl.u32 %v8413_v9, 16  ;;  %v2014_v61 = vld [vmem:[#allocation2 + $0x60] sm:$0xe]  ;;  %v2426_v58 = vshrl.u32 %v2201_v27, 16 }
 0x1d5   : > { %v1547_v49 = vld [vmem:[#allocation2 + $0xa4] sm:$0x1]  ;;  %v2429_v20 = vshll.u32 %v2201_v27, 16  ;;  %v1817_v50 = vrot.slane %v1815_v24, 4  ;;  %v1834_v18 = vshll.u32 %v1611_v15, 16  ;;  %v1820_v63 = vrot.slane %v1818_v40, 5 }
 0x1d6   : > { %v1354_v52 = vor.u32 %v1352_v5, %v1351_v37  ;;  %v1356_v7 = vrot.slane %v1351_v37, 4  ;;  %v1826_v21 = vrot.slane %v1824_v31, 5  ;;  %v2435_v23 = vshll.u32 %v8419_v39, 16 }
 0x1d7   : > { %v1830_v17 = vrot.slane %v1828_v0, 4  ;;  %v6129_v13 = vrot.slane %v2014_v61, 9  ;;  %v2131_v2 = vrot.slane %v8413_v9, 5  ;;  %v1821_v14 = vor.u32 %v1820_v63, %v1817_v50 }
 0x1d8   : > { %v1355_v56 = vsel %vm7979_vm14, %v1347_v12, %v1354_v52  ;;  %v1548_v27 = vsel %vm7848_vm2, %v1356_v7, %v1547_v49  ;;  %v2134_v24 = vrot.slane %v1611_v15, 5  ;;  %v1836_v37 = vrot.slane %v1834_v18, 5  ;;  %v8440_v52 = vld [vmem:[#allocation2 + $0x78] sm:$0xf]  ;;  %v8442_v49 = vld [vmem:[#allocation2 + $0x6c] sm:$0xf]  ;;  %v793_v15 = vpop.f32.mrf.mxu1 }
 0x1d9   : > { %1546 = vst [vmem:[#allocation2 + $0xa0] sm:$0xf] %v1355_v56  ;;  %1549 = vst [vmem:[#allocation2 + $0xa4] sm:$0x1] %v1548_v27  ;;  %v1831_v5 = vor.u32 %v1830_v17, %v1826_v21  ;;  %v2132_v40 = vsel %vm7896_vm10, %v6129_v13, %v2131_v2  ;;  %v2133_v31 = vrot.slane %v2131_v2, 4  ;;  %v8435_v0 = vrot.slane %v2378_v53, 4 }
 0x1da   : > { %v8437_v61 = vrot.slane %v2381_v62, 5  ;;  %v1822_v12 = vrot.slane %v1821_v14, 4  ;;  %v8444_v56 = vrot.slane %v2402_v45, 4  ;;  %v8446_v50 = vrot.slane %v2405_v44, 5  ;;  %v8450_v53 = vld [vmem:[#allocation2 + $0x70] sm:$0xf] }
 0x1db   : > { %v1832_v18 = vrot.slane %v1831_v5, 4  ;;  %v2135_v2 = vsel %vm7896_vm10, %v2133_v31, %v2134_v24  ;;  %v8452_v62 = vrot.slane %v2426_v58, 4  ;;  %v8454_v13 = vrot.slane %v2429_v20, 5  ;;  %v8458_v17 = vld [vmem:[#allocation2 + $0x7c] sm:$0xf]  ;;  %v7003_v31 = vpop.f32.mrf.mxu1 }
 0x1dc   : > { %v1827_v7 = vsel %vm7882_vm7, %v1822_v12, %v1826_v21  ;;  %v6209_v63 = vcombine.low %v2132_v40, %v2135_v2  ;;  %v1612_v45 = vld [vmem:[#allocation2 + $0x74] sm:$0x1]  ;;  %v8460_v27 = vrot.slane %v2435_v23, 5  ;;  %v6226_v14 = vcombine.low %v8440_v52, %v8458_v17  ;;  %v976_v24 = vld [vmem:[#allocation2 + $0xc0] sm:$0x1] }
 0x1dd   : > { %v1837_v44 = vsel %vm7882_vm7, %v1832_v18, %v1836_v37  ;;  %v1839_v58 = vshrl.u32 %v8442_v49, 16  ;;  %v6177_v21 = vcombine.low %v8405_v54, %v8413_v9  ;;  %v1842_v5 = vshll.u32 %v8442_v49, 16  ;;  %v973_v23 = vld [vmem:[#allocation2 + $0xb4] sm:$0x1] }
 0x1de   : > { %10213 = vst [vmem:[#allocation19_spill] sm:$0xff] %v8460_v27  ;;  %v6193_v20 = vcombine.low %v1827_v7, %v1837_v44  ;;  %4860 = vmatmul.mubr.bf16.gmra.mxu0 %v6209_v63  ;;  %v1848_v40 = vshll.u32 %v8450_v53, 16  ;;  %v1852_v37 = vshrl.u32 %v8450_v53, 16  ;;  %v1858_v18 = vshll.u32 %v1612_v45, 16  ;;  %v2015_v44 = vld [vmem:[#allocation2 + $0x6c] sm:$0xe] }
 0x1df   : > { %4867 = vmatprep.mubr.bf16.mxu0 %v6226_v14  ;;  %v1841_v12 = vrot.slane %v1839_v58, 4  ;;  %v845_v2 = vmul.f32 %v8274_v3, %v7002_v41  ;;  %v1844_v63 = vrot.slane %v1842_v5, 5  ;;  %v977_v9 = vsel %vm7848_vm2, 0, %v976_v24 }
 0x1e0   : > { %4698 = vmatprep.mubr.bf16.mxu1 %v6193_v20  ;;  %v1850_v54 = vrot.slane %v1848_v40, 5  ;;  %v1854_v59 = vrot.slane %v1852_v37, 4  ;;  %v1860_v14 = vrot.slane %v1858_v18, 5  ;;  %978 = vst [vmem:[#allocation2 + $0xc0] sm:$0x1] %v977_v9  ;;  %v843_v46 = vmul.f32 %v8274_v3, %v793_v15  ;;  %v796_v40 = vpop.f32.mrf.mxu1 }
 0x1e1   : > { %4699 = vmatmul.mubr.bf16.gmra.mxu1 %v6177_v21  ;;  %v884_v58 = vadd.f32 %v8280_v10, %v845_v2  ;;  %v1845_v41 = vor.u32 %v1844_v63, %v1841_v12  ;;  %v974_v27 = vsel %vm7848_vm2, 0, %v973_v23  ;;  %v846_v20 = vmul.f32 %v8274_v3, %v7003_v31 }
 0x1e2   : > { %v1033_v5 = vsel %vm7856_vm4, 0, %v1032_v19  ;;  %v1855_v24 = vor.u32 %v1854_v59, %v1850_v54  ;;  %v882_v21 = vadd.f32 %v8280_v10, %v843_v46  ;;  %975 = vst [vmem:[#allocation2 + $0xb4] sm:$0x1] %v974_v27  ;;  %v6130_v37 = vrot.slane %v2015_v44, 9 }
 0x1e3   : > { %v916_v7 = vmax.f32 %v884_v58, 0.0  ;;  %1034 = vst [vmem:[#allocation2 + $0xc8] sm:$0x1] %v1033_v5  ;;  %v1846_v18 = vrot.slane %v1845_v41, 4  ;;  %v885_v15 = vadd.f32 %v8280_v10, %v846_v20  ;;  %v2138_v12 = vrot.slane %v8450_v53, 5 }
 0x1e4   : > { %v2141_v2 = vrot.slane %v1612_v45, 5  ;;  %v1856_v23 = vrot.slane %v1855_v24, 4  ;;  %v914_v31 = vmax.f32 %v882_v21, 0.0  ;;  %v844_v9 = vmul.f32 %v8274_v3, %v796_v40  ;;  %v1029_v40 = vld [vmem:[#allocation2 + $0xbc] sm:$0x1] }
 0x1e5   : > { %v6433_v63 = vpack.c.bf16 %v916_v7, %v916_v7  ;;  %v1851_v59 = vsel %vm7882_vm7, %v1846_v18, %v1850_v54  ;;  %v917_v19 = vmax.f32 %v885_v15, 0.0  ;;  %v2139_v46 = vsel %vm7896_vm10, %v6130_v37, %v2138_v12  ;;  %v8497_v54 = vld [vmem:[#allocation2 + $0x84] sm:$0xf]  ;;  %v8499_v15 = vld [vmem:[#allocation2 + $0x88] sm:$0xf] }
 0x1e6   : > { %v2140_v27 = vrot.slane %v2138_v12, 4  ;;  %v1861_v44 = vsel %vm7882_vm7, %v1856_v23, %v1860_v14  ;;  %v6431_v20 = vpack.c.bf16 %v914_v31, %v914_v31  ;;  %v883_v3 = vadd.f32 %v8280_v10, %v844_v9 }
 0x1e7   : > { %v1392_v58 = vshrl.u32 %v6433_v63, 16  ;;  %v1395_v41 = vshll.u32 %v6433_v63, 16  ;;  %v6194_v45 = vcombine.low %v1851_v59, %v1861_v44  ;;  %v6434_v5 = vpack.c.bf16 %v917_v19, %v917_v19  ;;  %v1564_v14 = vld [vmem:[#allocation2 + $0xc0] sm:$0xf] }
 0x1e8   : > { %v2142_v7 = vsel %vm7896_vm10, %v2140_v27, %v2141_v2  ;;  %v1375_v21 = vshrl.u32 %v6431_v20, 16  ;;  %v1378_v37 = vshll.u32 %v6431_v20, 16  ;;  %v6178_v63 = vcombine.low %v8442_v49, %v8450_v53 }
 0x1e9   : > { %v1394_v24 = vrot.slane %v1392_v58, 7  ;;  %v6210_v18 = vcombine.low %v2139_v46, %v2142_v7  ;;  %4706 = vmatprep.mubr.bf16.mxu1 %v6194_v45  ;;  %v1400_v12 = vshrl.u32 %v6434_v5, 16  ;;  %v1403_v23 = vshll.u32 %v6434_v5, 16  ;;  %v1557_v27 = vld [vmem:[#allocation2 + $0xb4] sm:$0xf] }
 0x1ea   : > { %v6227_v2 = vcombine.low %v8497_v54, %v8499_v15  ;;  %v2450_v10 = vshrl.u32 %v8440_v52, 16  ;;  %v1377_v9 = vrot.slane %v1375_v21, 7  ;;  %v915_v59 = vmax.f32 %v883_v3, 0.0  ;;  %4707 = vmatmul.mubr.bf16.gmra.mxu1 %v6178_v63 }
 0x1eb   : > { %v1397_v31 = vor.u32 %v1395_v41, %v1394_v24  ;;  %4868 = vmatmul.mubr.bf16.gmra.mxu0 %v6210_v18  ;;  %v2453_v19 = vshll.u32 %v8440_v52, 16  ;;  %v1398_v46 = vrot.slane %v1394_v24, 4  ;;  %v1402_v44 = vrot.slane %v1400_v12, 7  ;;  %v1568_v41 = vld [vmem:[#allocation2 + $0xc8] sm:$0x1] }
 0x1ec   : > { %v1030_v58 = vsel %vm7856_vm4, 0, %v1029_v40  ;;  %4875 = vmatprep.mubr.bf16.mxu0 %v6227_v2  ;;  %v2439_v49 = vshrl.u32 %v8419_v39, 16  ;;  %v1380_v20 = vor.u32 %v1378_v37, %v1377_v9  ;;  %v6432_v45 = vpack.c.bf16 %v915_v59, %v915_v59  ;;  %v8514_v24 = vld [vmem:[#allocation2 + $0x78] sm:$0xf]  ;;  %v8519_v37 = vld [vmem:[#allocation2 + $0x7c] sm:$0xf] }
 0x1ed   : > { %v1565_v53 = vsel %vm7968_vm13, %v1397_v31, %v1564_v14  ;;  %1031 = vst [vmem:[#allocation2 + $0xbc] sm:$0x1] %v1030_v58  ;;  %v2459_v5 = vshll.u32 %v8458_v17, 16  ;;  %v1405_v52 = vor.u32 %v1403_v23, %v1402_v44  ;;  %v1407_v7 = vrot.slane %v1402_v44, 4  ;;  %v2016_v2 = vld [vmem:[#allocation2 + $0x78] sm:$0xe] }
 0x1ee   : > { %1566 = vst [vmem:[#allocation2 + $0xc0] sm:$0xf] %v1565_v53  ;;  %v2474_v3 = vshrl.u32 %v8497_v54, 16  ;;  %v2463_v40 = vshrl.u32 %v8458_v17, 16  ;;  %v1558_v39 = vsel %vm7968_vm13, %v1380_v20, %v1557_v27  ;;  %v1383_v21 = vshrl.u32 %v6432_v45, 16 }
 0x1ef   : > { %v1386_v18 = vshll.u32 %v6432_v45, 16  ;;  %v8521_v14 = vrot.slane %v2450_v10, 4  ;;  %v8523_v12 = vrot.slane %v2453_v19, 5  ;;  %1559 = vst [vmem:[#allocation2 + $0xb4] sm:$0xf] %v1558_v39  ;;  %v1406_v23 = vsel %vm7979_vm14, %v1398_v46, %v1405_v52 }
 0x1f0   : > { %v1569_v63 = vsel %vm7848_vm2, %v1407_v7, %v1568_v41  ;;  %v1381_v17 = vrot.slane %v1377_v9, 4  ;;  %1567 = vst [vmem:[#allocation2 + $0xc4] sm:$0xf] %v1406_v23  ;;  %v1385_v1 = vrot.slane %v1383_v21, 7  ;;  %v1613_v31 = vld [vmem:[#allocation2 + $0x80] sm:$0x1] }
 0x1f1   : > { %1570 = vst [vmem:[#allocation2 + $0xc8] sm:$0x1] %v1569_v63  ;;  %v1863_v59 = vshrl.u32 %v8514_v24, 16  ;;  %v1866_v10 = vshll.u32 %v8514_v24, 16  ;;  %v8531_v27 = vrot.slane %v2474_v3, 4  ;;  %v2477_v19 = vshll.u32 %v8497_v54, 16 }
 0x1f2   : > { %v1872_v44 = vshll.u32 %v8519_v37, 16  ;;  %v1876_v46 = vshrl.u32 %v8519_v37, 16  ;;  %v1388_v58 = vor.u32 %v1386_v18, %v1385_v1  ;;  %v1390_v53 = vrot.slane %v1385_v1, 4 }
 0x1f3   : > { %v1865_v20 = vrot.slane %v1863_v59, 4  ;;  %v1868_v9 = vrot.slane %v1866_v10, 5  ;;  %v1882_v7 = vshll.u32 %v1613_v31, 16  ;;  %v6131_v39 = vrot.slane %v2016_v2, 9 }
 0x1f4   : > { %v1561_v41 = vld [vmem:[#allocation2 + $0xbc] sm:$0x1]  ;;  %v1874_v45 = vrot.slane %v1872_v44, 5  ;;  %v1878_v52 = vrot.slane %v1876_v46, 4  ;;  %v1389_v21 = vsel %vm7979_vm14, %v1381_v17, %v1388_v58  ;;  %v2145_v23 = vrot.slane %v8519_v37, 5 }
 0x1f5   : > { %v1562_v3 = vsel %vm7848_vm2, %v1390_v53, %v1561_v41  ;;  %v1869_v54 = vor.u32 %v1868_v9, %v1865_v20  ;;  %1560 = vst [vmem:[#allocation2 + $0xb8] sm:$0xf] %v1389_v21  ;;  %v2479_v18 = vrot.slane %v2477_v19, 5  ;;  %v1884_v1 = vrot.slane %v1882_v7, 5  ;;  %v2207_v20 = vld [vmem:[#allocation2 + $0x90] sm:$0xf] }
 0x1f6   : > { %1563 = vst [vmem:[#allocation2 + $0xbc] sm:$0x1] %v1562_v3  ;;  %v1879_v63 = vor.u32 %v1878_v52, %v1874_v45  ;;  %v2148_v59 = vrot.slane %v1613_v31, 5  ;;  %v10214_v10 = vor.u32 %v8454_v13, %v8452_v62  ;;  %v2146_v22 = vsel %vm7896_vm10, %v6131_v39, %v2145_v23  ;;  %v8554_v9 = vld [vmem:[#allocation2 + $0x84] sm:$0xf] }
 0x1f7   : > { %v1870_v2 = vrot.slane %v1869_v54, 4  ;;  %v2147_v17 = vrot.slane %v2145_v23, 4  ;;  %v8548_v46 = vrot.slane %v2439_v49, 4  ;;  %v8550_v58 = vrot.slane %v2459_v5, 5  ;;  %v8563_v41 = vld [vmem:[#allocation2 + $0x88] sm:$0xf] }
 0x1f8   : > { %v8544_v44 = vrot.slane %v10214_v10, 4  ;;  %v8552_v53 = vrot.slane %v2463_v40, 4  ;;  %v1880_v19 = vrot.slane %v1879_v63, 4  ;;  %v2456_v62 = vor.u32 %v8523_v12, %v8521_v14  ;;  %v1614_v5 = vld [vmem:[#allocation2 + $0x8c] sm:$0x1] }
 0x1f9   : > { %v2483_v13 = vshll.u32 %v8499_v15, 16  ;;  %v1875_v31 = vsel %vm7882_vm7, %v1870_v2, %v1874_v45  ;;  %v2149_v49 = vsel %vm7896_vm10, %v2147_v17, %v2148_v59  ;;  %v2480_v40 = vor.u32 %v2479_v18, %v8531_v27  ;;  %v8569_v14 = vld [vmem:[#allocation2 + $0x94] sm:$0xf]  ;;  %v2017_v12 = vld [vmem:[#allocation2 + $0x84] sm:$0xe] }
 0x1fa   : > { %10215 = vst [vmem:[#allocation20_spill] sm:$0xff] %v8552_v53  ;;  %v2487_v52 = vshrl.u32 %v8499_v15, 16  ;;  %v1885_v7 = vsel %vm7882_vm7, %v1880_v19, %v1884_v1  ;;  %v6211_v39 = vcombine.low %v2146_v22, %v2149_v49  ;;  %v6228_v45 = vcombine.low %v2207_v20, %v8569_v14 }
 0x1fb   : > { %v6195_v21 = vcombine.low %v1875_v31, %v1885_v7  ;;  %v1887_v3 = vshrl.u32 %v8554_v9, 16  ;;  %v1890_v54 = vshll.u32 %v8554_v9, 16  ;;  %v6179_v27 = vcombine.low %v8514_v24, %v8519_v37  ;;  %v8581_v7 = vld [vmem:[#allocation2 + $0x90] sm:$0xf] }
 0x1fc   : > { %4876 = vmatmul.mubr.bf16.gmra.mxu0 %v6211_v39  ;;  %v1896_v15 = vshll.u32 %v8563_v41, 16  ;;  %v1900_v23 = vshrl.u32 %v8563_v41, 16  ;;  %v1906_v18 = vshll.u32 %v1614_v5, 16  ;;  %v6132_v59 = vrot.slane %v2017_v12, 9 }
 0x1fd   : > { %4714 = vmatprep.mubr.bf16.mxu1 %v6195_v21  ;;  %4883 = vmatprep.mubr.bf16.mxu0 %v6228_v45  ;;  %v1889_v63 = vrot.slane %v1887_v3, 4  ;;  %v1892_v1 = vrot.slane %v1890_v54, 5  ;;  %v2152_v10 = vrot.slane %v8563_v41, 5  ;;  %v2498_v2 = vshrl.u32 %v2207_v20, 16  ;;  %v8587_v3 = vld [vmem:[#allocation2 + $0x94] sm:$0xf] }
 0x1fe   : > { %4715 = vmatmul.mubr.bf16.gmra.mxu1 %v6179_v27  ;;  %v2501_v22 = vshll.u32 %v2207_v20, 16  ;;  %v1898_v17 = vrot.slane %v1896_v15, 5  ;;  %v1902_v19 = vrot.slane %v1900_v23, 4  ;;  %v2155_v49 = vrot.slane %v1614_v5, 5  ;;  %v1615_v54 = vld [vmem:[#allocation2 + $0x98] sm:$0x1] }
 0x1ff   : > { %v1893_v31 = vor.u32 %v1892_v1, %v1889_v63  ;;  %v2153_v24 = vsel %vm7896_vm10, %v6132_v59, %v2152_v10  ;;  %v2154_v37 = vrot.slane %v2152_v10, 4  ;;  %v8583_v39 = vrot.slane %v2456_v62, 4  ;;  %v2209_v5 = vld [vmem:[#allocation2 + $0x9c] sm:$0xf]  ;;  %v8597_v59 = vld [vmem:[#allocation2 + $0xa0] sm:$0xf] }
 0x200   : > { %v8585_v21 = vrot.slane %v2483_v13, 5  ;;  %v1903_v12 = vor.u32 %v1902_v19, %v1898_v17  ;;  %v1908_v45 = vrot.slane %v1906_v18, 5  ;;  %v8589_v20 = vrot.slane %v2480_v40, 4  ;;  %v2018_v19 = vld [vmem:[#allocation2 + $0x90] sm:$0xe] }
 0x201   : > { %10216 = vst [vmem:[#allocation21_spill] sm:$0xff] %v8583_v39  ;;  %v8591_v27 = vrot.slane %v2487_v52, 4  ;;  %v1894_v15 = vrot.slane %v1893_v31, 4  ;;  %v2156_v23 = vsel %vm7896_vm10, %v2154_v37, %v2155_v49  ;;  %v2507_v63 = vshll.u32 %v8569_v14, 16 }
 0x202   : > { %10217 = vst [vmem:[#allocation22_spill] sm:$0xff] %v8585_v21  ;;  %10218 = vst [vmem:[#allocation23_spill] sm:$0xff] %v8589_v20  ;;  %v2511_v62 = vshrl.u32 %v8569_v14, 16  ;;  %v1904_v13 = vrot.slane %v1903_v12, 4  ;;  %v6212_v1 = vcombine.low %v2153_v24, %v2156_v23  ;;  %v8599_v18 = vrot.slane %v2498_v2, 4 }
 0x203   : > { %10219 = vst [vmem:[#allocation24_spill] sm:$0xff] %v8591_v27  ;;  %v8601_v10 = vrot.slane %v2501_v22, 5  ;;  %v1899_v40 = vsel %vm7882_vm7, %v1894_v15, %v1898_v17  ;;  %v6229_v52 = vcombine.low %v2209_v5, %v8597_v59  ;;  %v6180_v14 = vcombine.low %v8554_v9, %v8563_v41 }
 0x204   : > { %v1909_v31 = vsel %vm7882_vm7, %v1904_v13, %v1908_v45  ;;  %4884 = vmatmul.mubr.bf16.gmra.mxu0 %v6212_v1  ;;  %v1911_v24 = vshrl.u32 %v8581_v7, 16  ;;  %v1914_v2 = vshll.u32 %v8581_v7, 16  ;;  %v1920_v22 = vshll.u32 %v8587_v3, 16 }
 0x205   : > { %v6196_v37 = vcombine.low %v1899_v40, %v1909_v31  ;;  %4891 = vmatprep.mubr.bf16.mxu0 %v6229_v52  ;;  %v1924_v17 = vshrl.u32 %v8587_v3, 16  ;;  %v1930_v49 = vshll.u32 %v1615_v54, 16  ;;  %v2522_v12 = vshrl.u32 %v2209_v5, 16 }
 0x206   : > { %v1913_v15 = vrot.slane %v1911_v24, 4  ;;  %v1916_v23 = vrot.slane %v1914_v2, 5  ;;  %v6133_v38 = vrot.slane %v2018_v19, 9  ;;  %v2525_v45 = vshll.u32 %v2209_v5, 16  ;;  %v2211_v19 = vld [vmem:[#allocation2 + $0xa8] sm:$0xf] }
 0x207   : > { %4722 = vmatprep.mubr.bf16.mxu1 %v6196_v37  ;;  %v1922_v13 = vrot.slane %v1920_v22, 5  ;;  %v1926_v1 = vrot.slane %v1924_v17, 4  ;;  %v2159_v9 = vrot.slane %v8587_v3, 5  ;;  %v8615_v41 = vrot.slane %v2507_v63, 5  ;;  %v8621_v37 = vld [vmem:[#allocation2 + $0x9c] sm:$0xf] }
 0x208   : > { %v8617_v34 = vrot.slane %v2511_v62, 4  ;;  %4723 = vmatmul.mubr.bf16.gmra.mxu1 %v6180_v14  ;;  %v1917_v40 = vor.u32 %v1916_v23, %v1913_v15  ;;  %v2162_v52 = vrot.slane %v1615_v54, 5  ;;  %v1932_v27 = vrot.slane %v1930_v49, 5  ;;  %v8627_v14 = vld [vmem:[#allocation2 + $0xa0] sm:$0xf] }
 0x209   : > { %10220 = vst [vmem:[#allocation25_spill] sm:$0xff] %v8615_v41  ;;  %v1927_v31 = vor.u32 %v1926_v1, %v1922_v13  ;;  %v2160_v24 = vsel %vm7896_vm10, %v6133_v38, %v2159_v9  ;;  %v2161_v2 = vrot.slane %v2159_v9, 4  ;;  %v2504_v5 = vor.u32 %v8601_v10, %v8599_v18  ;;  %v1616_v15 = vld [vmem:[#allocation2 + $0xa4] sm:$0x1]  ;;  %v8633_v9 = vld [vmem:[#allocation2 + $0xac] sm:$0xf] }
 0x20a   : > { %10221 = vst [vmem:[#allocation26_spill] sm:$0xff] %v8617_v34  ;;  %v2531_v63 = vshll.u32 %v8597_v59, 16  ;;  %v2535_v62 = vshrl.u32 %v8597_v59, 16  ;;  %v1918_v22 = vrot.slane %v1917_v40, 4  ;;  %v2524_v54 = vrot.slane %v2522_v12, 4 }
 0x20b   : > { %v2527_v17 = vrot.slane %v2525_v45, 5  ;;  %v1928_v49 = vrot.slane %v1927_v31, 4  ;;  %v2163_v38 = vsel %vm7896_vm10, %v2161_v2, %v2162_v52  ;;  %v2546_v18 = vshrl.u32 %v2211_v19, 16  ;;  %v2019_v34 = vld [vmem:[#allocation2 + $0x9c] sm:$0xe] }
 0x20c   : > { %v1923_v23 = vsel %vm7882_vm7, %v1918_v22, %v1922_v13  ;;  %v6213_v1 = vcombine.low %v2160_v24, %v2163_v38  ;;  %v2549_v10 = vshll.u32 %v2211_v19, 16  ;;  %v6230_v12 = vcombine.low %v2211_v19, %v8633_v9 }
 0x20d   : > { %v1933_v59 = vsel %vm7882_vm7, %v1928_v49, %v1932_v27  ;;  %v1935_v45 = vshrl.u32 %v8621_v37, 16  ;;  %v1938_v40 = vshll.u32 %v8621_v37, 16  ;;  %v1944_v31 = vshll.u32 %v8627_v14, 16 }
 0x20e   : > { %v6197_v52 = vcombine.low %v1923_v23, %v1933_v59  ;;  %4892 = vmatmul.mubr.bf16.gmra.mxu0 %v6213_v1  ;;  %v1948_v13 = vshrl.u32 %v8627_v14, 16  ;;  %v1954_v24 = vshll.u32 %v1616_v15, 16  ;;  %v6181_v2 = vcombine.low %v8581_v7, %v8587_v3 }
 0x20f   : > { %4899 = vmatprep.mubr.bf16.mxu0 %v6230_v12  ;;  %v1937_v22 = vrot.slane %v1935_v45, 4  ;;  %v1940_v38 = vrot.slane %v1938_v40, 5  ;;  %v6134_v27 = vrot.slane %v2019_v34, 9  ;;  %v2528_v49 = vor.u32 %v2527_v17, %v2524_v54  ;;  %v8647_v12 = vld [vmem:[#allocation2 + $0xa8] sm:$0xf] }
 0x210   : > { %4730 = vmatprep.mubr.bf16.mxu1 %v6197_v52  ;;  %v1946_v19 = vrot.slane %v1944_v31, 5  ;;  %v1950_v41 = vrot.slane %v1948_v13, 4  ;;  %v2166_v20 = vrot.slane %v8627_v14, 5  ;;  %v2548_v23 = vrot.slane %v2546_v18, 4  ;;  %v8649_v34 = vld [vmem:[#allocation2 + $0xac] sm:$0xf] }
 0x211   : > { %4731 = vmatmul.mubr.bf16.gmra.mxu1 %v6181_v2  ;;  %v2551_v1 = vrot.slane %v2549_v10, 5  ;;  %v1941_v59 = vor.u32 %v1940_v38, %v1937_v22  ;;  %v2169_v21 = vrot.slane %v1616_v15, 5  ;;  %v1956_v53 = vrot.slane %v1954_v24, 5  ;;  %v1617_v10 = vld [vmem:[#allocation2 + $0xb0] sm:$0x1] }
 0x212   : > { %v1951_v39 = vor.u32 %v1950_v41, %v1946_v19  ;;  %v2167_v7 = vsel %vm7896_vm10, %v6134_v27, %v2166_v20  ;;  %v2168_v3 = vrot.slane %v2166_v20, 4  ;;  %v8651_v54 = vrot.slane %v2504_v5, 4  ;;  %v2020_v52 = vld [vmem:[#allocation2 + $0xa8] sm:$0xe]  ;;  %v2214_v24 = vld [vmem:[#allocation2 + $0xb8] sm:$0xf] }
 0x213   : > { %v8653_v17 = vrot.slane %v2531_v63, 5  ;;  %v8655_v45 = vrot.slane %v2535_v62, 4  ;;  %v1942_v18 = vrot.slane %v1941_v59, 4  ;;  %v8657_v40 = vrot.slane %v2528_v49, 4  ;;  %v2213_v62 = vld [vmem:[#allocation2 + $0xb4] sm:$0xf] }
 0x214   : > { %10222 = vst [vmem:[#allocation27_spill] sm:$0xff] %v8651_v54  ;;  %v2555_v41 = vshll.u32 %v8633_v9, 16  ;;  %v1952_v15 = vrot.slane %v1951_v39, 4  ;;  %v2170_v20 = vsel %vm7896_vm10, %v2168_v3, %v2169_v21  ;;  %v2552_v31 = vor.u32 %v2551_v1, %v2548_v23  ;;  %v8731_v54 = vld [vmem:[#allocation2 + $0x24] sm:$0xf] }
 0x215   : > { %10223 = vst [vmem:[#allocation28_spill] sm:$0xff] %v8653_v17  ;;  %10224 = vst [vmem:[#allocation29_spill] sm:$0xff] %v8655_v45  ;;  %v2559_v13 = vshrl.u32 %v8633_v9, 16  ;;  %v1947_v5 = vsel %vm7882_vm7, %v1942_v18, %v1946_v19  ;;  %v6214_v63 = vcombine.low %v2167_v7, %v2170_v20  ;;  %v6231_v22 = vcombine.low %v2213_v62, %v2214_v24 }
 0x216   : > { %10225 = vst [vmem:[#allocation30_spill] sm:$0xff] %v8657_v40  ;;  %v1957_v2 = vsel %vm7882_vm7, %v1952_v15, %v1956_v53  ;;  %v1959_v38 = vshrl.u32 %v8647_v12, 16  ;;  %v1962_v39 = vshll.u32 %v8647_v12, 16  ;;  %v1968_v21 = vshll.u32 %v8649_v34, 16 }
 0x217   : > { %v6198_v27 = vcombine.low %v1947_v5, %v1957_v2  ;;  %4900 = vmatmul.mubr.bf16.gmra.mxu0 %v6214_v63  ;;  %v1972_v9 = vshrl.u32 %v8649_v34, 16  ;;  %v1978_v49 = vshll.u32 %v1617_v10, 16  ;;  %v6182_v19 = vcombine.low %v8621_v37, %v8627_v14 }
 0x218   : > { %4907 = vmatprep.mubr.bf16.mxu0 %v6231_v22  ;;  %v1961_v23 = vrot.slane %v1959_v38, 4  ;;  %v1964_v1 = vrot.slane %v1962_v39, 5  ;;  %v6135_v59 = vrot.slane %v2020_v52, 9  ;;  %v2570_v53 = vshrl.u32 %v2213_v62, 16  ;;  %v8676_v22 = vld [vmem:[#allocation2 + $0xb4] sm:$0xf] }
 0x219   : > { %4738 = vmatprep.mubr.bf16.mxu1 %v6198_v27  ;;  %v1970_v7 = vrot.slane %v1968_v21, 5  ;;  %v1974_v3 = vrot.slane %v1972_v9, 4  ;;  %v2173_v18 = vrot.slane %v8649_v34, 5  ;;  %v2573_v15 = vshll.u32 %v2213_v62, 16  ;;  %v8684_v21 = vld [vmem:[#allocation2 + $0xc0] sm:$0xf] }
 0x21a   : > { %4739 = vmatmul.mubr.bf16.gmra.mxu1 %v6182_v19  ;;  %v2579_v20 = vshll.u32 %v2214_v24, 16  ;;  %v1965_v5 = vor.u32 %v1964_v1, %v1961_v23  ;;  %v2176_v63 = vrot.slane %v1617_v10, 5  ;;  %v1980_v45 = vrot.slane %v1978_v49, 5  ;;  %v8686_v62 = vld [vmem:[#allocation2 + $0xb8] sm:$0xf] }
 0x21b   : > { %v1975_v2 = vor.u32 %v1974_v3, %v1970_v7  ;;  %v2174_v37 = vsel %vm7896_vm10, %v6135_v59, %v2173_v18  ;;  %v2175_v14 = vrot.slane %v2173_v18, 4  ;;  %v8678_v52 = vrot.slane %v2552_v31, 4  ;;  %v1618_v23 = vld [vmem:[#allocation2 + $0xbc] sm:$0x1]  ;;  %v8698_v59 = vld [vmem:[#allocation2 + $0xc4] sm:$0xf] }
 0x21c   : > { %v8680_v38 = vrot.slane %v2555_v41, 5  ;;  %v8682_v39 = vrot.slane %v2559_v13, 4  ;;  %v1966_v27 = vrot.slane %v1965_v5, 4  ;;  %v8688_v10 = vrot.slane %v2570_v53, 4  ;;  %v2021_v3 = vld [vmem:[#allocation2 + $0xb4] sm:$0xe] }
 0x21d   : > { %10226 = vst [vmem:[#allocation31_spill] sm:$0xff] %v8678_v52  ;;  %v2583_v9 = vshrl.u32 %v2214_v24, 16  ;;  %v1976_v49 = vrot.slane %v1975_v2, 4  ;;  %v2177_v19 = vsel %vm7896_vm10, %v2175_v14, %v2176_v63  ;;  %v8692_v1 = vrot.slane %v2573_v15, 5  ;;  %v8708_v2 = vld [vmem:[#allocation2 + $0x18] sm:$0xf] }
 0x21e   : > { %10227 = vst [vmem:[#allocation32_spill] sm:$0xff] %v8680_v38  ;;  %10228 = vst [vmem:[#allocation33_spill] sm:$0xff] %v8682_v39  ;;  %v8694_v31 = vrot.slane %v2579_v20, 5  ;;  %v1971_v41 = vsel %vm7882_vm7, %v1966_v27, %v1970_v7  ;;  %v6215_v13 = vcombine.low %v2174_v37, %v2177_v19  ;;  %v6232_v24 = vcombine.low %v8684_v21, %v8698_v59  ;;  %v2826_v38 = vld [vmem:[#allocation2 + $0x20] sm:$0x1] }
 0x21f   : > { %v1981_v53 = vsel %vm7882_vm7, %v1976_v49, %v1980_v45  ;;  %v1983_v18 = vshrl.u32 %v8676_v22, 16  ;;  %v1986_v15 = vshll.u32 %v8676_v22, 16  ;;  %v1992_v20 = vshll.u32 %v8686_v62, 16 }
 0x220   : > { %10229 = vst [vmem:[#allocation34_spill] sm:$0xff] %v8694_v31  ;;  %v6199_v5 = vcombine.low %v1971_v41, %v1981_v53  ;;  %4908 = vmatmul.mubr.bf16.gmra.mxu0 %v6215_v13  ;;  %v1996_v7 = vshrl.u32 %v8686_v62, 16  ;;  %v2002_v63 = vshll.u32 %v1618_v23, 16  ;;  %v6183_v37 = vcombine.low %v8647_v12, %v8649_v34  ;;  %v8715_v53 = vld [vmem:[#allocation2 + $0x1c] sm:$0xf] }
 0x221   : > { %4915 = vmatprep.mubr.bf16.mxu0 %v6232_v24  ;;  %v1985_v45 = vrot.slane %v1983_v18, 4  ;;  %v1988_v14 = vrot.slane %v1986_v15, 5  ;;  %v6136_v27 = vrot.slane %v2021_v3, 9  ;;  %v8712_v49 = vrot.slane %v2583_v9, 4 }
 0x222   : > { %4746 = vmatprep.mubr.bf16.mxu1 %v6199_v5  ;;  %v1994_v19 = vrot.slane %v1992_v20, 5  ;;  %v1998_v41 = vrot.slane %v1996_v7, 4  ;;  %v2180_v13 = vrot.slane %v8686_v62, 5  ;;  %v2004_v39 = vrot.slane %v2002_v63, 5  ;;  %v2217_v7 = vld [vmem:[#allocation2 + $0x14] sm:$0x1] }
 0x223   : > { %10230 = vst [vmem:[#allocation35_spill] sm:$0xff] %v8712_v49  ;;  %4747 = vmatmul.mubr.bf16.gmra.mxu1 %v6183_v37  ;;  %v1989_v31 = vor.u32 %v1988_v14, %v1985_v45  ;;  %v2183_v52 = vrot.slane %v1618_v23, 5  ;;  %v2843_v12 = vshrl.u32 %v8708_v2, 16  ;;  %v2846_v24 = vshll.u32 %v8708_v2, 16  ;;  %v2617_v14 = vld [vmem:[#allocation2 + $0xc] sm:$0xe] }
 0x224   : > { %v1999_v34 = vor.u32 %v1998_v41, %v1994_v19  ;;  %v2181_v3 = vsel %vm7896_vm10, %v6136_v27, %v2180_v13  ;;  %v2182_v9 = vrot.slane %v2180_v13, 4  ;;  %v2852_v5 = vshll.u32 %v8715_v53, 16 }
 0x225   : > { %v1990_v18 = vrot.slane %v1989_v31, 4  ;;  %v2845_v15 = vrot.slane %v2843_v12, 4  ;;  %v2856_v20 = vshrl.u32 %v8715_v53, 16  ;;  %v2848_v63 = vrot.slane %v2846_v24, 5 }
 0x226   : > { %v2000_v37 = vrot.slane %v1999_v34, 4  ;;  %v2184_v23 = vsel %vm7896_vm10, %v2182_v9, %v2183_v52  ;;  %v2862_v45 = vshll.u32 %v2826_v38, 16  ;;  %v2854_v13 = vrot.slane %v2852_v5, 5  ;;  %v7368_v38 = vld [vmem:[#allocation2 + $0x10] sm:$0xf] }
 0x227   : > { %v1995_v27 = vsel %vm7882_vm7, %v1990_v18, %v1994_v19  ;;  %v6216_v41 = vcombine.low %v2181_v3, %v2184_v23  ;;  %v2858_v49 = vrot.slane %v2856_v20, 4  ;;  %v6184_v12 = vcombine.low %v8676_v22, %v8686_v62  ;;  %v8733_v20 = vld [vmem:[#allocation2 + $0x28] sm:$0xf] }
 0x228   : > { %v2005_v31 = vsel %vm7882_vm7, %v2000_v37, %v2004_v39  ;;  %v2849_v40 = vor.u32 %v2848_v63, %v2845_v15  ;;  %v2253_v34 = vshll.u32 %v2217_v7, 16  ;;  %v6137_v9 = vrot.slane %v2617_v14, 9  ;;  %10231 = vst [vmem:[#allocation36_spill] sm:$0xff] %v8733_v20 }
 0x229   : > { %v6200_v17 = vcombine.low %v1995_v27, %v2005_v31  ;;  %4916 = vmatmul.mubr.bf16.gmra.mxu0 %v6216_v41  ;;  %v2859_v52 = vor.u32 %v2858_v49, %v2854_v13  ;;  %v2683_v24 = vrot.slane %v7368_v38, 5  ;;  %v2864_v3 = vrot.slane %v2862_v45, 5  ;;  %v2618_v45 = vld [vmem:[#allocation2 + $0x18] sm:$0xe] }
 0x22a   : > { %v2850_v19 = vrot.slane %v2849_v40, 4  ;;  %v2255_v18 = vrot.slane %v2253_v34, 5  ;;  %v2686_v5 = vrot.slane %v2217_v7, 5  ;;  %v6265_v49 = vcombine.low %v8708_v2, %v8715_v53  ;;  %v2827_v7 = vld [vmem:[#allocation2 + $0x2c] sm:$0x1] }
 0x22b   : > { %4754 = vmatprep.mubr.bf16.mxu1 %v6200_v17  ;;  %v2860_v39 = vrot.slane %v2859_v52, 4  ;;  %v2684_v22 = vsel %vm7896_vm10, %v6137_v9, %v2683_v24  ;;  %v2685_v62 = vrot.slane %v2683_v24, 4  ;;  %v2246_v40 = vsel %vm7882_vm7, %v8135_v51, %v8106_v33  ;;  %v2218_v34 = vld [vmem:[#allocation2 + $0x20] sm:$0x1] }
 0x22c   : > { %4755 = vmatmul.mubr.bf16.gmra.mxu1 %v6184_v12  ;;  %v2855_v15 = vsel %vm7882_vm7, %v2850_v19, %v2854_v13  ;;  %v2867_v17 = vshrl.u32 %v8731_v54, 16  ;;  %v2870_v37 = vshll.u32 %v8731_v54, 16  ;;  %v2256_v53 = vsel %vm7882_vm7, %v8201_v6, %v2255_v18  ;;  %v7369_v6 = vld [vmem:[#allocation2 + $0x1c] sm:$0xf] }
 0x22d   : > { %v2865_v23 = vsel %vm7882_vm7, %v2860_v39, %v2864_v3  ;;  %v2687_v2 = vsel %vm7896_vm10, %v2685_v62, %v2686_v5  ;;  %v2876_v63 = vshll.u32 %v8733_v20, 16  ;;  %v2880_v13 = vshrl.u32 %v8733_v20, 16 }
 0x22e   : > { %v6281_v14 = vcombine.low %v2855_v15, %v2865_v23  ;;  %v6249_v33 = vcombine.low %v2684_v22, %v2687_v2  ;;  %v2869_v51 = vrot.slane %v2867_v17, 4  ;;  %v2872_v27 = vrot.slane %v2870_v37, 5  ;;  %v7322_v17 = vld [vmem:[#allocation8 + $0x230] sm:$0xff]   ;;  %v8767_v23 = vld [vmem:[#allocation2 + $0x30] sm:$0xf] }
 0x22f   : > { %v2878_v41 = vrot.slane %v2876_v63, 5  ;;  %v2886_v31 = vshll.u32 %v2827_v7, 16  ;;  %v10169_v12 = vrot.slane %v8733_v20, 5  ;;  %v3302_v9 = vrot.slane %v2827_v7, 5  ;;  %v8769_v2 = vld [vmem:[#allocation2 + $0x34] sm:$0xf] }
 0x230   : > { %5117 = vmatprep.mubr.bf16.mxu0 %v6281_v14  ;;  %4956 = vmatprep.mubr.bf16.mxu1 %v6249_v33  ;;  %v2873_v52 = vor.u32 %v2872_v27, %v2869_v51  ;;  %v6138_v38 = vrot.slane %v2618_v45, 9  ;;  %v2690_v24 = vrot.slane %v7369_v6, 5  ;;  %v6233_v19 = vcombine.low %v2246_v40, %v2256_v53 }
 0x231   : > { %5118 = vmatmul.mubr.bf16.vlgmr.msra.gmra.mxu0 %v6265_v49  ;;  %v2882_v3 = vrot.slane %v2880_v13, 4  ;;  %v2888_v18 = vrot.slane %v2886_v31, 5  ;;  %v3301_v5 = vrot.slane %v10169_v12, 4  ;;  %v2693_v15 = vrot.slane %v2218_v34, 5  ;;  %v2619_v31 = vld [vmem:[#allocation2 + $0x24] sm:$0xe] }
 0x232   : > { %v2874_v39 = vrot.slane %v2873_v52, 4  ;;  %v2691_v22 = vsel %vm7896_vm10, %v6138_v38, %v2690_v24  ;;  %v2692_v62 = vrot.slane %v2690_v24, 4  ;;  %v2264_v49 = vor.u32 %v8175_v29, %v8139_v55  ;;  %v7370_v29 = vld [vmem:[#allocation8 + $0x238] sm:$0xff]  }
 0x233   : > { %v2883_v37 = vor.u32 %v2882_v3, %v2878_v41  ;;  %v8763_v7 = vsel %vm7896_vm10, %v3301_v5, %v3302_v9  ;;  %v2267_v40 = vshll.u32 %v7369_v6, 16  ;;  %v6266_v63 = vcombine.low %v8731_v54, %v8733_v20  ;;  %v8787_v3 = vld [vmem:[#allocation2 + $0x2c] sm:$0x1] }
 0x234   : > { %10232 = vst [vmem:[#allocation37_spill] sm:$0xff] %v8763_v7  ;;  %4957 = vmatmul.mubr.bf16.vlgmr.msra.gmra.mxu1 %v6233_v19  ;;  %v2694_v53 = vsel %vm7896_vm10, %v2692_v62, %v2693_v15  ;;  %v10233_v45 = vshrl.u32 %v8038_v43, 16  ;;  %v2277_v33 = vshll.u32 %v2218_v34, 16  ;;  %v2879_v51 = vsel %vm7882_vm7, %v2874_v39, %v2878_v41  ;;  %v7325_v43 = vld [vmem:[#allocation8 + $0x228] sm:$0xff]   ;;  %v2828_v39 = vld [vmem:[#allocation2 + $0x38] sm:$0x1] }
 0x235   : > { %v2884_v55 = vrot.slane %v2883_v37, 4  ;;  %7005 = vmatpush3.bf16.msra.mxu1 %v7370_v29  ;;  %v6250_v27 = vcombine.low %v2691_v22, %v2694_v53  ;;  %v2269_v13 = vrot.slane %v2267_v40, 5  ;;  %v2265_v52 = vrot.slane %v2264_v49, 4  ;;  %v8789_v37 = vpop.f32.mrf.mxu1 }
 0x236   : > { %v2273_v14 = vrot.slane %v10233_v45, 4  ;;  %v2891_v9 = vshrl.u32 %v8767_v23, 16  ;;  %v2894_v38 = vshll.u32 %v8767_v23, 16  ;;  %v2900_v54 = vshll.u32 %v8769_v2, 16  ;;  %7006 = vmatprep.subr.bf16.mxu1 %v7322_v17  ;;  %v8782_v6 = vpop.f32.mrf.mxu0  ;;  %10235 = vst [vmem:[#allocation39_spill] sm:$0xff] %v8789_v37 }
 0x237   : > { %10234 = vst [vmem:[#allocation38_spill] sm:$0xff] %v8782_v6  ;;  %v2889_v41 = vsel %vm7882_vm7, %v2884_v55, %v2888_v18  ;;  %4964 = vmatprep.mubr.bf16.mxu1 %v6250_v27  ;;  %v2279_v24 = vrot.slane %v2277_v33, 5  ;;  %v2904_v19 = vshrl.u32 %v8769_v2, 16  ;;  %v2910_v53 = vshll.u32 %v2828_v39, 16  ;;  %v7371_v55 = vld [vmem:[#allocation2 + $0x28] sm:$0xf]  ;;  %v8804_v39 = vpop.f32.mrf.mxu1 }
 0x238   : > { %v2274_v34 = vor.u32 %v2273_v14, %v2269_v13  ;;  %v6282_v5 = vcombine.low %v2879_v51, %v2889_v41  ;;  %v2893_v22 = vrot.slane %v2891_v9, 4  ;;  %v2896_v62 = vrot.slane %v2894_v38, 5  ;;  %v8791_v18 = vpop.f32.mrf.mxu0  ;;  %v7328_v27 = vld [vmem:[#allocation8 + $0x220] sm:$0xff]   ;;  %10237 = vst [vmem:[#allocation41_spill] sm:$0xff] %v8804_v39  ;;  %v8966_v39 = vld [vmem:[#allocation2 + $0x6c] sm:$0xf] }
 0x239   : > { %v2902_v15 = vrot.slane %v2900_v54, 5  ;;  %v2906_v40 = vrot.slane %v2904_v19, 4  ;;  %v6139_v45 = vrot.slane %v2619_v31, 9  ;;  %7007 = vmatpush3.bf16.msra.mxu1 %v7322_v17  ;;  %10236 = vst [vmem:[#allocation40_spill] sm:$0xff] %v8791_v18  ;;  %v2697_v51 = vrot.slane %v7371_v55, 5  ;;  %v7340_v14 = vld [vmem:[#allocation8 + $0x200] sm:$0xff]  }
 0x23a   : > { %v2275_v49 = vrot.slane %v2274_v34, 4  ;;  %5125 = vmatprep.mubr.bf16.mxu0 %v6282_v5  ;;  %v2897_v33 = vor.u32 %v2896_v62, %v2893_v22  ;;  %v2700_v29 = vrot.slane %v8787_v3, 5  ;;  %7008 = vmatprep.subr.bf16.mxu1 %v7325_v43  ;;  %v2270_v9 = vsel %vm7882_vm7, %v2265_v52, %v2269_v13  ;;  %v8800_v54 = vld [vmem:[#allocation2 + $0x3c] sm:$0xf]  ;;  %v8810_v62 = vld [vmem:[#allocation2 + $0x40] sm:$0xf] }
 0x23b   : > { %5126 = vmatmul.mubr.bf16.gmra.mxu0 %v6266_v63  ;;  %v2907_v31 = vor.u32 %v2906_v40, %v2902_v15  ;;  %v2912_v38 = vrot.slane %v2910_v53, 5  ;;  %v2699_v19 = vrot.slane %v2697_v51, 4  ;;  %v2288_v5 = vor.u32 %v8234_v57, %v8231_v42 }
 0x23c   : > { %v2280_v17 = vsel %vm7882_vm7, %v2275_v49, %v2279_v24  ;;  %v2898_v34 = vrot.slane %v2897_v33, 4  ;;  %v2698_v63 = vsel %vm7896_vm10, %v6139_v45, %v2697_v51  ;;  %v2291_v13 = vshll.u32 %v7371_v55, 16  ;;  %v8812_v49 = vpop.f32.mrf.mxu0  ;;  %v7331_v45 = vld [vmem:[#allocation8 + $0x218] sm:$0xff]   ;;  %v2829_v55 = vld [vmem:[#allocation2 + $0x44] sm:$0x1] }
 0x23d   : > { %v6234_v41 = vcombine.low %v2270_v9, %v2280_v17  ;;  %v2908_v22 = vrot.slane %v2907_v31, 4  ;;  %v10238_v52 = vshrl.u32 %v8093_v8, 16  ;;  %7009 = vmatpush3.bf16.msra.mxu1 %v7325_v43  ;;  %10239 = vst [vmem:[#allocation42_spill] sm:$0xff] %v8812_v49  ;;  %v2701_v42 = vsel %vm7896_vm10, %v2699_v19, %v2700_v29  ;;  %v2620_v9 = vld [vmem:[#allocation2 + $0x30] sm:$0xe] }
 0x23e   : > { %v2903_v40 = vsel %vm7882_vm7, %v2898_v34, %v2902_v15  ;;  %v2301_v57 = vshll.u32 %v8787_v3, 16  ;;  %v2915_v53 = vshrl.u32 %v8800_v54, 16  ;;  %7010 = vmatprep.subr.bf16.mxu1 %v7328_v27  ;;  %v6251_v33 = vcombine.low %v2698_v63, %v2701_v42  ;;  %v8829_v63 = vpop.f32.mrf.mxu0  ;;  %v7334_v42 = vld [vmem:[#allocation8 + $0x210] sm:$0xff]  }
 0x23f   : > { %v2297_v24 = vrot.slane %v10238_v52, 4  ;;  %4965 = vmatmul.mubr.bf16.gmra.mxu1 %v6234_v41  ;;  %v2913_v8 = vsel %vm7882_vm7, %v2908_v22, %v2912_v38  ;;  %v2293_v43 = vrot.slane %v2291_v13, 5  ;;  %v2918_v51 = vshll.u32 %v8800_v54, 16  ;;  %v8824_v41 = vpop.f32.mrf.mxu1  ;;  %v2220_v22 = vld [vmem:[#allocation2 + $0x38] sm:$0x1]  ;;  %10241 = vst [vmem:[#allocation44_spill] sm:$0xff] %v8829_v63 }
 0x240   : > { %v6283_v17 = vcombine.low %v2903_v40, %v2913_v8  ;;  %v2289_v15 = vrot.slane %v2288_v5, 4  ;;  %v2917_v31 = vrot.slane %v2915_v53, 4  ;;  %v2924_v29 = vshll.u32 %v8810_v62, 16  ;;  %10240 = vst [vmem:[#allocation43_spill] sm:$0xff] %v8824_v41  ;;  %4972 = vmatprep.mubr.bf16.mxu1 %v6251_v33  ;;  %v7373_v63 = vld [vmem:[#allocation2 + $0x40] sm:$0xf] }
 0x241   : > { %v6267_v3 = vcombine.low %v8767_v23, %v8769_v2  ;;  %v2298_v34 = vor.u32 %v2297_v24, %v2293_v43  ;;  %v2920_v19 = vrot.slane %v2918_v51, 5  ;;  %v2928_v38 = vshrl.u32 %v8810_v62, 16  ;;  %7011 = vmatpush3.bf16.msra.mxu1 %v7328_v27  ;;  %v7372_v23 = vld [vmem:[#allocation2 + $0x34] sm:$0xf] }
 0x242   : > { %5133 = vmatprep.mubr.bf16.mxu0 %v6283_v17  ;;  %v2303_v13 = vrot.slane %v2301_v57, 5  ;;  %v2926_v5 = vrot.slane %v2924_v29, 5  ;;  %v2934_v52 = vshll.u32 %v2829_v55, 16  ;;  %v6140_v40 = vrot.slane %v2620_v9, 9  ;;  %7012 = vmatprep.subr.bf16.mxu1 %v7331_v45  ;;  %v8835_v57 = vpop.f32.mrf.mxu1 }
 0x243   : > { %5134 = vmatmul.mubr.bf16.gmra.mxu0 %v6267_v3  ;;  %v2299_v53 = vrot.slane %v2298_v34, 4  ;;  %v2921_v8 = vor.u32 %v2920_v19, %v2917_v31  ;;  %v2930_v33 = vrot.slane %v2928_v38, 4  ;;  %v2704_v2 = vrot.slane %v7372_v23, 5  ;;  %10242 = vst [vmem:[#allocation45_spill] sm:$0xff] %v8835_v57  ;;  %v8841_v3 = vld [vmem:[#allocation2 + $0x48] sm:$0xf] }
 0x244   : > { %v2294_v24 = vsel %vm7882_vm7, %v2289_v15, %v2293_v43  ;;  %v2936_v51 = vrot.slane %v2934_v52, 5  ;;  %v2707_v27 = vrot.slane %v2220_v22, 5  ;;  %v6268_v17 = vcombine.low %v8800_v54, %v8810_v62  ;;  %v8847_v19 = vld [vmem:[#allocation2 + $0x4c] sm:$0xf] }
 0x245   : > { %v2304_v55 = vsel %vm7882_vm7, %v2299_v53, %v2303_v13  ;;  %v2922_v9 = vrot.slane %v2921_v8, 4  ;;  %v2931_v29 = vor.u32 %v2930_v33, %v2926_v5  ;;  %v2312_v31 = vor.u32 %v8307_v47, %v8302_v25  ;;  %7013 = vmatpush3.bf16.msra.mxu1 %v7331_v45  ;;  %v7337_v13 = vld [vmem:[#allocation8 + $0x208] sm:$0xff]  }
 0x246   : > { %v8843_v34 = vpop.f32.mrf.mxu0  ;;  %v6235_v43 = vcombine.low %v2294_v24, %v2304_v55  ;;  %v2705_v15 = vsel %vm7896_vm10, %v6140_v40, %v2704_v2  ;;  %v2706_v54 = vrot.slane %v2704_v2, 4  ;;  %v2315_v62 = vshll.u32 %v7372_v23, 16  ;;  %7014 = vmatprep.subr.bf16.mxu1 %v7334_v42  ;;  %v2830_v23 = vld [vmem:[#allocation2 + $0x50] sm:$0x1] }
 0x247   : > { %v8849_v38 = vpop.f32.mrf.mxu1  ;;  %v2927_v25 = vsel %vm7882_vm7, %v2922_v9, %v2926_v5  ;;  %v2932_v47 = vrot.slane %v2931_v29, 4  ;;  %v10243_v45 = vshrl.u32 %v8146_v28, 16  ;;  %v2325_v53 = vshll.u32 %v2220_v22, 16  ;;  %v2221_v29 = vld [vmem:[#allocation2 + $0x44] sm:$0x1] }
 0x248   : > { %v8855_v8 = vpop.f32.mrf.mxu0  ;;  %4973 = vmatmul.mubr.bf16.gmra.mxu1 %v6235_v43  ;;  %v2708_v40 = vsel %vm7896_vm10, %v2706_v54, %v2707_v27  ;;  %v2317_v33 = vrot.slane %v2315_v62, 5  ;;  %v2939_v2 = vshrl.u32 %v8841_v3, 16  ;;  %v2942_v24 = vshll.u32 %v8841_v3, 16  ;;  %v2621_v43 = vld [vmem:[#allocation2 + $0x3c] sm:$0xe] }
 0x249   : > { %v2321_v52 = vrot.slane %v10243_v45, 4  ;;  %v8861_v55 = vpop.f32.mrf.mxu1  ;;  %v2937_v5 = vsel %vm7882_vm7, %v2932_v47, %v2936_v51  ;;  %v6252_v28 = vcombine.low %v2705_v15, %v2708_v40  ;;  %v2313_v9 = vrot.slane %v2312_v31, 4  ;;  %7015 = vmatpush3.bf16.msra.mxu1 %v7334_v42 }
 0x24a   : > { %v2948_v22 = vshll.u32 %v8847_v19, 16  ;;  %v8866_v45 = vpop.f32.mrf.mxu0  ;;  %v6284_v27 = vcombine.low %v2927_v25, %v2937_v5  ;;  %v2327_v62 = vrot.slane %v2325_v53, 5  ;;  %v2941_v12 = vrot.slane %v2939_v2, 4  ;;  %7016 = vmatprep.subr.bf16.mxu1 %v7337_v13 }
 0x24b   : > { %v2322_v54 = vor.u32 %v2321_v52, %v2317_v33  ;;  %4980 = vmatprep.mubr.bf16.mxu1 %v6252_v28  ;;  %v2944_v57 = vrot.slane %v2942_v24, 5  ;;  %v2952_v51 = vshrl.u32 %v8847_v19, 16  ;;  %v2958_v15 = vshll.u32 %v2830_v23, 16  ;;  %v8869_v31 = vpop.f32.mrf.mxu1 }
 0x24c   : > { %v2950_v41 = vrot.slane %v2948_v22, 5  ;;  %5141 = vmatprep.mubr.bf16.mxu0 %v6284_v27  ;;  %v6141_v40 = vrot.slane %v2621_v43, 9  ;;  %v2711_v49 = vrot.slane %v7373_v63, 5  ;;  %v2714_v42 = vrot.slane %v2221_v29, 5  ;;  %v8873_v24 = vpop.f32.mrf.mxu0 }
 0x24d   : > { %v2323_v47 = vrot.slane %v2322_v54, 4  ;;  %5142 = vmatmul.mubr.bf16.gmra.mxu0 %v6268_v17  ;;  %v2318_v25 = vsel %vm7882_vm7, %v2313_v9, %v2317_v33  ;;  %v2945_v52 = vor.u32 %v2944_v57, %v2941_v12  ;;  %v2954_v53 = vrot.slane %v2952_v51, 4  ;;  %7017 = vmatpush3.bf16.msra.mxu1 %v7337_v13  ;;  %v8881_v57 = vld [vmem:[#allocation2 + $0x54] sm:$0xf]  ;;  %v8883_v9 = vld [vmem:[#allocation2 + $0x58] sm:$0xf]  ;;  %v8885_v13 = vpop.f32.mrf.mxu1 }
 0x24e   : > { %v2960_v2 = vrot.slane %v2958_v15, 5  ;;  %v2712_v5 = vsel %vm7896_vm10, %v6141_v40, %v2711_v49  ;;  %v2713_v28 = vrot.slane %v2711_v49, 4  ;;  %v2336_v22 = vor.u32 %v8344_v60, %v8337_v11  ;;  %7018 = vmatprep.subr.bf16.mxu1 %v7340_v14 }
 0x24f   : > { %v2328_v23 = vsel %vm7882_vm7, %v2323_v47, %v2327_v62  ;;  %v2946_v43 = vrot.slane %v2945_v52, 4  ;;  %v2955_v33 = vor.u32 %v2954_v53, %v2950_v41  ;;  %v2339_v12 = vshll.u32 %v7373_v63, 16 }
 0x250   : > { %v6236_v17 = vcombine.low %v2318_v25, %v2328_v23  ;;  %v2715_v27 = vsel %vm7896_vm10, %v2713_v28, %v2714_v42  ;;  %v2337_v54 = vrot.slane %v2336_v22, 4  ;;  %v10244_v49 = vshrl.u32 %v8213_v32, 16  ;;  %v2831_v25 = vld [vmem:[#allocation2 + $0x5c] sm:$0x1]  ;;  %v2622_v28 = vld [vmem:[#allocation2 + $0x48] sm:$0xe] }
 0x251   : > { %v2349_v51 = vshll.u32 %v2221_v29, 16  ;;  %v2951_v11 = vsel %vm7882_vm7, %v2946_v43, %v2950_v41  ;;  %v2956_v60 = vrot.slane %v2955_v33, 4  ;;  %v6253_v63 = vcombine.low %v2712_v5, %v2715_v27  ;;  %v8893_v47 = vpop.f32.mrf.mxu0  ;;  %7019 = vmatpush3.bf16.msra.mxu1 %v7340_v14  ;;  %v2222_v5 = vld [vmem:[#allocation2 + $0x50] sm:$0x1] }
 0x252   : > { %v2345_v62 = vrot.slane %v10244_v49, 4  ;;  %4981 = vmatmul.mubr.bf16.gmra.mxu1 %v6236_v17  ;;  %v2341_v15 = vrot.slane %v2339_v12, 5  ;;  %v6269_v40 = vcombine.low %v8841_v3, %v8847_v19  ;;  %v2963_v42 = vshrl.u32 %v8881_v57, 16 }
 0x253   : > { %v2966_v52 = vshll.u32 %v8881_v57, 16  ;;  %v2972_v32 = vshll.u32 %v8883_v9, 16  ;;  %v2961_v29 = vsel %vm7882_vm7, %v2956_v60, %v2960_v2  ;;  %4988 = vmatprep.mubr.bf16.mxu1 %v6253_v63  ;;  %v2351_v53 = vrot.slane %v2349_v51, 5  ;;  %v8903_v22 = vpop.f32.mrf.mxu1  ;;  %v8905_v3 = vpop.f32.mrf.mxu0  ;;  %v7374_v63 = vld [vmem:[#allocation2 + $0x4c] sm:$0xf] }
 0x254   : > { %v2346_v41 = vor.u32 %v2345_v62, %v2341_v15  ;;  %v2976_v23 = vshrl.u32 %v8883_v9, 16  ;;  %v6285_v19 = vcombine.low %v2951_v11, %v2961_v29  ;;  %v2965_v17 = vrot.slane %v2963_v42, 4 }
 0x255   : > { %v2968_v43 = vrot.slane %v2966_v52, 5  ;;  %v2974_v33 = vrot.slane %v2972_v32, 5  ;;  %v2342_v14 = vsel %vm7882_vm7, %v2337_v54, %v2341_v15  ;;  %v2982_v27 = vshll.u32 %v2831_v25, 16  ;;  %v8909_v49 = vpop.f32.mrf.mxu1  ;;  %v8911_v62 = vpop.f32.mrf.mxu0  ;;  %v8917_v15 = vld [vmem:[#allocation2 + $0x60] sm:$0xf] }
 0x256   : > { %v2347_v12 = vrot.slane %v2346_v41, 4  ;;  %v2978_v2 = vrot.slane %v2976_v23, 4  ;;  %5149 = vmatprep.mubr.bf16.mxu0 %v6285_v19  ;;  %v6142_v60 = vrot.slane %v2622_v28, 9  ;;  %v2718_v18 = vrot.slane %v7374_v63, 5 }
 0x257   : > { %v2969_v51 = vor.u32 %v2968_v43, %v2965_v17  ;;  %v2721_v6 = vrot.slane %v2222_v5, 5  ;;  %5150 = vmatmul.mubr.bf16.gmra.mxu0 %v6269_v40  ;;  %v2984_v52 = vrot.slane %v2982_v27, 5  ;;  %v6270_v54 = vcombine.low %v8881_v57, %v8883_v9  ;;  %v8919_v25 = vpop.f32.mrf.mxu1  ;;  %v8923_v28 = vpop.f32.mrf.mxu0 }
 0x258   : > { %v2352_v11 = vsel %vm7882_vm7, %v2347_v12, %v2351_v53  ;;  %v2979_v42 = vor.u32 %v2978_v2, %v2974_v33  ;;  %v2719_v41 = vsel %vm7896_vm10, %v6142_v60, %v2718_v18  ;;  %v2720_v23 = vrot.slane %v2718_v18, 4  ;;  %v8935_v12 = vld [vmem:[#allocation2 + $0x64] sm:$0xf]  ;;  %v2623_v60 = vld [vmem:[#allocation2 + $0x54] sm:$0xe] }
 0x259   : > { %v6237_v32 = vcombine.low %v2342_v14, %v2352_v11  ;;  %v2970_v29 = vrot.slane %v2969_v51, 4  ;;  %v2360_v53 = vor.u32 %v8401_v4, %v8397_v35  ;;  %v2363_v19 = vshll.u32 %v7374_v63, 16  ;;  %v8929_v9 = vpop.f32.mrf.mxu1  ;;  %v2832_v51 = vld [vmem:[#allocation2 + $0x68] sm:$0x1] }
 0x25a   : > { %v2980_v40 = vrot.slane %v2979_v42, 4  ;;  %v10245_v17 = vshrl.u32 %v8247_v30, 16  ;;  %v2722_v14 = vsel %vm7896_vm10, %v2720_v23, %v2721_v6  ;;  %v2373_v18 = vshll.u32 %v2222_v5, 16 }
 0x25b   : > { %4989 = vmatmul.mubr.bf16.gmra.mxu1 %v6237_v32  ;;  %v2975_v43 = vsel %vm7882_vm7, %v2970_v29, %v2974_v33  ;;  %v2987_v2 = vshrl.u32 %v8917_v15, 16  ;;  %v6254_v4 = vcombine.low %v2719_v41, %v2722_v14  ;;  %v2361_v30 = vrot.slane %v2360_v53, 4  ;;  %v2223_v32 = vld [vmem:[#allocation2 + $0x5c] sm:$0x1] }
 0x25c   : > { %v2369_v57 = vrot.slane %v10245_v17, 4  ;;  %v2985_v35 = vsel %vm7882_vm7, %v2980_v40, %v2984_v52  ;;  %v2365_v27 = vrot.slane %v2363_v19, 5  ;;  %v2375_v11 = vrot.slane %v2373_v18, 5  ;;  %v8941_v6 = vpop.f32.mrf.mxu0  ;;  %v7375_v17 = vld [vmem:[#allocation2 + $0x58] sm:$0xf] }
 0x25d   : > { %v6286_v63 = vcombine.low %v2975_v43, %v2985_v35  ;;  %v2989_v42 = vrot.slane %v2987_v2, 4  ;;  %v2990_v33 = vshll.u32 %v8917_v15, 16  ;;  %4996 = vmatprep.mubr.bf16.mxu1 %v6254_v4  ;;  %v2996_v52 = vshll.u32 %v8935_v12, 16  ;;  %v8947_v23 = vpop.f32.mrf.mxu1 }
 0x25e   : > { %v2366_v5 = vsel %vm7882_vm7, %v2361_v30, %v2365_v27  ;;  %v2370_v29 = vor.u32 %v2369_v57, %v2365_v27  ;;  %v3000_v41 = vshrl.u32 %v8935_v12, 16  ;;  %v3006_v53 = vshll.u32 %v2832_v51, 16  ;;  %v8949_v14 = vpop.f32.mrf.mxu0 }
 0x25f   : > { %5157 = vmatprep.mubr.bf16.mxu0 %v6286_v63  ;;  %v2992_v40 = vrot.slane %v2990_v33, 5  ;;  %v6143_v19 = vrot.slane %v2623_v60, 9  ;;  %v2725_v43 = vrot.slane %v7375_v17, 5  ;;  %v2998_v2 = vrot.slane %v2996_v52, 5  ;;  %v8951_v57 = vpop.f32.mrf.mxu1 }
 0x260   : > { %5158 = vmatmul.mubr.bf16.gmra.mxu0 %v6270_v54  ;;  %v2371_v18 = vrot.slane %v2370_v29, 4  ;;  %v3002_v35 = vrot.slane %v3000_v41, 4  ;;  %v2728_v4 = vrot.slane %v2223_v32, 5  ;;  %v10246_v30 = vor.u32 %v8692_v1, %v8688_v10  ;;  %v8960_v33 = vpop.f32.mrf.mxu0 }
 0x261   : > { %v2993_v63 = vor.u32 %v2992_v40, %v2989_v42  ;;  %v2726_v51 = vsel %vm7896_vm10, %v6143_v19, %v2725_v43  ;;  %v2727_v60 = vrot.slane %v2725_v43, 4  ;;  %v3008_v52 = vrot.slane %v3006_v53, 5  ;;  %v8970_v19 = vld [vmem:[#allocation2 + $0x70] sm:$0xf]  ;;  %v8974_v53 = vpop.f32.mrf.mxu1 }
 0x262   : > { %v8956_v27 = vrot.slane %v10246_v30, 4  ;;  %v2376_v54 = vsel %vm7882_vm7, %v2371_v18, %v2375_v11  ;;  %v3003_v29 = vor.u32 %v3002_v35, %v2998_v2  ;;  %v2384_v41 = vor.u32 %v8437_v61, %v8435_v0  ;;  %v2833_v35 = vld [vmem:[#allocation2 + $0x74] sm:$0x1] }
 0x263   : > { %v6238_v10 = vcombine.low %v2366_v5, %v2376_v54  ;;  %v2994_v1 = vrot.slane %v2993_v63, 4  ;;  %v2729_v42 = vsel %vm7896_vm10, %v2727_v60, %v2728_v4  ;;  %v2387_v40 = vshll.u32 %v7375_v17, 16  ;;  %v8979_v17 = vpop.f32.mrf.mxu0  ;;  %v2624_v54 = vld [vmem:[#allocation2 + $0x60] sm:$0xe] }
 0x264   : > { %10247 = vst [vmem:[#allocation46_spill] sm:$0xff] %v8956_v27  ;;  %v3004_v43 = vrot.slane %v3003_v29, 4  ;;  %v6255_v30 = vcombine.low %v2726_v51, %v2729_v42  ;;  %v2385_v37 = vrot.slane %v2384_v41, 4  ;;  %v10248_v11 = vshrl.u32 %v8319_v36, 16 }
 0x265   : > { %4997 = vmatmul.mubr.bf16.gmra.mxu1 %v6238_v10  ;;  %v2999_v0 = vsel %vm7882_vm7, %v2994_v1, %v2998_v2  ;;  %v2389_v61 = vrot.slane %v2387_v40, 5  ;;  %v2397_v5 = vshll.u32 %v2223_v32, 16  ;;  %v3011_v4 = vshrl.u32 %v8966_v39, 16  ;;  %v2224_v10 = vld [vmem:[#allocation2 + $0x68] sm:$0x1] }
 0x266   : > { %v2393_v18 = vrot.slane %v10248_v11, 4  ;;  %v3009_v63 = vsel %vm7882_vm7, %v3004_v43, %v3008_v52  ;;  %5004 = vmatprep.mubr.bf16.mxu1 %v6255_v30  ;;  %v3014_v36 = vshll.u32 %v8966_v39, 16  ;;  %v3020_v51 = vshll.u32 %v8970_v19, 16  ;;  %v8988_v52 = vpop.f32.mrf.mxu1 }
 0x267   : > { %v3024_v60 = vshrl.u32 %v8970_v19, 16  ;;  %v6287_v29 = vcombine.low %v2999_v0, %v3009_v63  ;;  %v6271_v32 = vcombine.low %v8917_v15, %v8935_v12  ;;  %v2399_v41 = vrot.slane %v2397_v5, 5 }
 0x268   : > { %v2394_v2 = vor.u32 %v2393_v18, %v2389_v61  ;;  %v3013_v1 = vrot.slane %v3011_v4, 4  ;;  %v3016_v42 = vrot.slane %v3014_v36, 5  ;;  %v3022_v40 = vrot.slane %v3020_v51, 5  ;;  %v7376_v18 = vld [vmem:[#allocation2 + $0x64] sm:$0xf] }
 0x269   : > { %v3026_v11 = vrot.slane %v3024_v60, 4  ;;  %5165 = vmatprep.mubr.bf16.mxu0 %v6287_v29  ;;  %v2390_v43 = vsel %vm7882_vm7, %v2385_v37, %v2389_v61  ;;  %v3030_v7 = vshll.u32 %v2833_v35, 16  ;;  %v6144_v20 = vrot.slane %v2624_v54, 9  ;;  %v8992_v0 = vpop.f32.mrf.mxu0  ;;  %v9000_v61 = vld [vmem:[#allocation2 + $0x78] sm:$0xf] }
 0x26a   : > { %v2395_v30 = vrot.slane %v2394_v2, 4  ;;  %5166 = vmatmul.mubr.bf16.gmra.mxu0 %v6271_v32  ;;  %v3017_v15 = vor.u32 %v3016_v42, %v3013_v1  ;;  %v2732_v5 = vrot.slane %v7376_v18, 5  ;;  %v2735_v4 = vrot.slane %v2224_v10, 5  ;;  %v9010_v42 = vld [vmem:[#allocation2 + $0x7c] sm:$0xf] }
 0x26b   : > { %v3027_v12 = vor.u32 %v3026_v11, %v3022_v40  ;;  %v3032_v36 = vrot.slane %v3030_v7, 5  ;;  %v6272_v51 = vcombine.low %v8966_v39, %v8970_v19  ;;  %v2408_v37 = vor.u32 %v8446_v50, %v8444_v56  ;;  %v9002_v35 = vpop.f32.mrf.mxu0 }
 0x26c   : > { %v2400_v63 = vsel %vm7882_vm7, %v2395_v30, %v2399_v41  ;;  %v3018_v54 = vrot.slane %v3017_v15, 4  ;;  %v2733_v32 = vsel %vm7896_vm10, %v6144_v20, %v2732_v5  ;;  %v9006_v2 = vpop.f32.mrf.mxu1  ;;  %v2734_v41 = vrot.slane %v2732_v5, 4 }
 0x26d   : > { %v6239_v60 = vcombine.low %v2390_v43, %v2400_v63  ;;  %v3028_v29 = vrot.slane %v3027_v12, 4  ;;  %v2409_v7 = vrot.slane %v2408_v37, 4  ;;  %v2411_v1 = vshll.u32 %v7376_v18, 16  ;;  %v9012_v56 = vpop.f32.mrf.mxu0  ;;  %v2834_v43 = vld [vmem:[#allocation2 + $0x80] sm:$0x1] }
 0x26e   : > { %v10249_v39 = vshrl.u32 %v8342_v16, 16  ;;  %10250 = vst [vmem:[#allocation47_spill] sm:$0xff] %v9012_v56  ;;  %v3023_v50 = vsel %vm7882_vm7, %v3018_v54, %v3022_v40  ;;  %v2421_v20 = vshll.u32 %v2224_v10, 16  ;;  %v3035_v30 = vshrl.u32 %v9000_v61, 16  ;;  %v9019_v15 = vpop.f32.mrf.mxu1  ;;  %v2225_v63 = vld [vmem:[#allocation2 + $0x74] sm:$0x1] }
 0x26f   : > { %5005 = vmatmul.mubr.bf16.gmra.mxu1 %v6239_v60  ;;  %v3033_v11 = vsel %vm7882_vm7, %v3028_v29, %v3032_v36  ;;  %v2736_v16 = vsel %vm7896_vm10, %v2734_v41, %v2735_v4  ;;  %v2413_v18 = vrot.slane %v2411_v1, 5  ;;  %v3038_v5 = vshll.u32 %v9000_v61, 16  ;;  %v2625_v37 = vld [vmem:[#allocation2 + $0x6c] sm:$0xe]  ;;  %v9030_v41 = vpop.f32.mrf.mxu0 }
 0x270   : > { %v2417_v19 = vrot.slane %v10249_v39, 4  ;;  %v6288_v12 = vcombine.low %v3023_v50, %v3033_v11  ;;  %v6256_v60 = vcombine.low %v2733_v32, %v2736_v16  ;;  %v2423_v40 = vrot.slane %v2421_v20, 5  ;;  %v9025_v10 = vpop.f32.mrf.mxu1 }
 0x271   : > { %v3037_v54 = vrot.slane %v3035_v30, 4  ;;  %v3044_v36 = vshll.u32 %v9010_v42, 16  ;;  %10251 = vst [vmem:[#allocation48_spill] sm:$0xff] %v9025_v10  ;;  %v2414_v29 = vsel %vm7882_vm7, %v2409_v7, %v2413_v18  ;;  %v3040_v50 = vrot.slane %v3038_v5, 5  ;;  %v7377_v10 = vld [vmem:[#allocation2 + $0x70] sm:$0xf] }
 0x272   : > { %5173 = vmatprep.mubr.bf16.mxu0 %v6288_v12  ;;  %v2418_v39 = vor.u32 %v2417_v19, %v2413_v18  ;;  %v3048_v4 = vshrl.u32 %v9010_v42, 16  ;;  %5012 = vmatprep.mubr.bf16.mxu1 %v6256_v60  ;;  %v3054_v32 = vshll.u32 %v2834_v43, 16  ;;  %v2445_v11 = vshll.u32 %v2225_v63, 16  ;;  %v9032_v30 = vpop.f32.mrf.mxu1 }
 0x273   : > { %5174 = vmatmul.mubr.bf16.gmra.mxu0 %v6272_v51  ;;  %v3046_v1 = vrot.slane %v3044_v36, 5  ;;  %v6145_v20 = vrot.slane %v2625_v37, 9  ;;  %10252 = vst [vmem:[#allocation49_spill] sm:$0xff] %v9032_v30  ;;  %v3041_v27 = vor.u32 %v3040_v50, %v3037_v54  ;;  %v2739_v56 = vrot.slane %v7377_v10, 5  ;;  %v9039_v36 = vld [vmem:[#allocation2 + $0x84] sm:$0xf] }
 0x274   : > { %v2419_v16 = vrot.slane %v2418_v39, 4  ;;  %v3050_v12 = vrot.slane %v3048_v4, 4  ;;  %v2594_v7 = vshrl.u32 %v8684_v21, 16  ;;  %v2597_v19 = vshll.u32 %v8684_v21, 16  ;;  %v9041_v39 = vld [vmem:[#allocation2 + $0x88] sm:$0xf]  ;;  %v9043_v54 = vpop.f32.mrf.mxu0 }
 0x275   : > { %v2603_v18 = vshll.u32 %v8698_v59, 16  ;;  %v2742_v5 = vrot.slane %v2225_v63, 5  ;;  %v3042_v43 = vrot.slane %v3041_v27, 4  ;;  %v3056_v37 = vrot.slane %v3054_v32, 5  ;;  %10253 = vst [vmem:[#allocation50_spill] sm:$0xff] %v9043_v54  ;;  %v9047_v59 = vpop.f32.mrf.mxu1  ;;  %v10255_v32 = vld [vmem:[#allocation19_spill] sm:$0xff] }
 0x276   : > { %v2424_v51 = vsel %vm7882_vm7, %v2419_v16, %v2423_v40  ;;  %v3051_v60 = vor.u32 %v3050_v12, %v3046_v1  ;;  %v2447_v50 = vrot.slane %v2445_v11, 5  ;;  %v2740_v21 = vsel %vm7896_vm10, %v6145_v20, %v2739_v56  ;;  %10254 = vst [vmem:[#allocation51_spill] sm:$0xff] %v9047_v59  ;;  %v2835_v11 = vld [vmem:[#allocation2 + $0x8c] sm:$0x1]  ;;  %v2626_v59 = vld [vmem:[#allocation2 + $0x78] sm:$0xe] }
 0x277   : > { %v6240_v10 = vcombine.low %v2414_v29, %v2424_v51  ;;  %v2741_v4 = vrot.slane %v2739_v56, 4  ;;  %v3047_v63 = vsel %vm7882_vm7, %v3042_v43, %v3046_v1  ;;  %v6273_v40 = vcombine.low %v9000_v61, %v9010_v42  ;;  %v9060_v51 = vpop.f32.mrf.mxu0  ;;  %v2226_v43 = vld [vmem:[#allocation2 + $0x80] sm:$0x1]  ;;  %v9065_v54 = vpop.f32.mrf.mxu1 }
 0x278   : > { %v3052_v27 = vrot.slane %v3051_v60, 4  ;;  %v2442_v16 = vor.u32 %v8548_v46, %v10255_v32  ;;  %v3059_v20 = vshrl.u32 %v9039_v36, 16  ;;  %v3062_v56 = vshll.u32 %v9039_v36, 16  ;;  %10256 = vst [vmem:[#allocation19_spill] sm:$0xff] %v9060_v51  ;;  %10257 = vst [vmem:[#allocation52_spill] sm:$0xff] %v9065_v54 }
 0x279   : > { %5013 = vmatmul.mubr.bf16.gmra.mxu1 %v6240_v10  ;;  %v2743_v29 = vsel %vm7896_vm10, %v2741_v4, %v2742_v5  ;;  %v3068_v12 = vshll.u32 %v9041_v39, 16  ;;  %v3072_v46 = vshrl.u32 %v9041_v39, 16  ;;  %v2438_v51 = vsel %vm7882_vm7, %v8544_v44, %v10255_v32  ;;  %v7379_v32 = vld [vmem:[#allocation2 + $0x7c] sm:$0xf]  ;;  %v9084_v30 = vpop.f32.mrf.mxu1 }
 0x27a   : > { %v3057_v1 = vsel %vm7882_vm7, %v3052_v27, %v3056_v37  ;;  %v6257_v61 = vcombine.low %v2740_v21, %v2743_v29  ;;  %v2443_v42 = vrot.slane %v2442_v16, 4  ;;  %v3061_v10 = vrot.slane %v3059_v20, 4 }
 0x27b   : > { %v6289_v60 = vcombine.low %v3047_v63, %v3057_v1  ;;  %v3064_v5 = vrot.slane %v3062_v56, 5  ;;  %v3070_v4 = vrot.slane %v3068_v12, 5  ;;  %v3074_v21 = vrot.slane %v3072_v46, 4  ;;  %v9075_v63 = vld [vmem:[#allocation2 + $0xc4] sm:$0xf]  ;;  %v9078_v12 = vpop.f32.mrf.mxu0 }
 0x27c   : > { %5020 = vmatprep.mubr.bf16.mxu1 %v6257_v61  ;;  %v2448_v37 = vsel %vm7882_vm7, %v2443_v42, %v2447_v50  ;;  %v3078_v27 = vshll.u32 %v2835_v11, 16  ;;  %v9073_v16 = vrot.slane %v2594_v7, 4  ;;  %10258 = vst [vmem:[#allocation53_spill] sm:$0xff] %v9075_v63  ;;  %v2607_v29 = vshrl.u32 %v9075_v63, 16  ;;  %v9082_v46 = vld [vmem:[#allocation2 + $0x90] sm:$0xf] }
 0x27d   : > { %5181 = vmatprep.mubr.bf16.mxu0 %v6289_v60  ;;  %v3065_v20 = vor.u32 %v3064_v5, %v3061_v10  ;;  %v2469_v56 = vshll.u32 %v2226_v43, 16  ;;  %v3075_v1 = vor.u32 %v3074_v21, %v3070_v4  ;;  %v6146_v44 = vrot.slane %v2626_v59, 9  ;;  %v9096_v21 = vld [vmem:[#allocation2 + $0x94] sm:$0xf] }
 0x27e   : > { %5182 = vmatmul.mubr.bf16.gmra.mxu0 %v6273_v40  ;;  %v3080_v61 = vrot.slane %v3078_v27, 5  ;;  %v2746_v54 = vrot.slane %v7379_v32, 5  ;;  %v9080_v50 = vrot.slane %v2597_v19, 5  ;;  %v6241_v11 = vcombine.low %v2438_v51, %v2448_v37  ;;  %v9098_v27 = vpop.f32.mrf.mxu0 }
 0x27f   : > { %v3066_v7 = vrot.slane %v3065_v20, 4  ;;  %v2749_v42 = vrot.slane %v2226_v43, 5  ;;  %v9086_v60 = vrot.slane %v2603_v18, 5  ;;  %v3076_v10 = vrot.slane %v3075_v1, 4  ;;  %v10260_v43 = vld [vmem:[#allocation20_spill] sm:$0xff] }
 0x280   : > { %v2747_v40 = vsel %vm7896_vm10, %v6146_v44, %v2746_v54  ;;  %v2748_v5 = vrot.slane %v2746_v54, 4  ;;  %v2471_v19 = vrot.slane %v2469_v56, 5  ;;  %v6274_v51 = vcombine.low %v9039_v36, %v9041_v39  ;;  %v2836_v18 = vld [vmem:[#allocation2 + $0x98] sm:$0x1] }
 0x281   : > { %10259 = vst [vmem:[#allocation54_spill] sm:$0xff] %v9086_v60  ;;  %5021 = vmatmul.mubr.bf16.gmra.mxu1 %v6241_v11  ;;  %v3071_v59 = vsel %vm7882_vm7, %v3066_v7, %v3070_v4  ;;  %v2466_v37 = vor.u32 %v10260_v43, %v8550_v58  ;;  %v3081_v20 = vsel %vm7882_vm7, %v3076_v10, %v3080_v61  ;;  %v10261_v4 = vld [vmem:[#allocation21_spill] sm:$0xff]  ;;  %v3083_v36 = vshrl.u32 %v9082_v46, 16  ;;  %v2227_v11 = vld [vmem:[#allocation2 + $0x8c] sm:$0x1]  ;;  %v9110_v7 = vpop.f32.mrf.mxu1 }
 0x282   : > { %v2750_v54 = vsel %vm7896_vm10, %v2748_v5, %v2749_v42  ;;  %v2462_v56 = vsel %vm7882_vm7, %v10261_v4, %v8550_v58  ;;  %v6290_v39 = vcombine.low %v3071_v59, %v3081_v20  ;;  %v3086_v32 = vshll.u32 %v9082_v46, 16  ;;  %10262 = vst [vmem:[#allocation20_spill] sm:$0xff] %v9110_v7  ;;  %v2627_v5 = vld [vmem:[#allocation2 + $0x84] sm:$0xe] }
 0x283   : > { %v6258_v1 = vcombine.low %v2747_v40, %v2750_v54  ;;  %v2467_v44 = vrot.slane %v2466_v37, 4  ;;  %v3085_v43 = vrot.slane %v3083_v36, 4  ;;  %v3092_v61 = vshll.u32 %v9096_v21, 16 }
 0x284   : > { %v3096_v42 = vshrl.u32 %v9096_v21, 16  ;;  %v3102_v10 = vshll.u32 %v2836_v18, 16  ;;  %v9114_v60 = vrot.slane %v2607_v29, 4  ;;  %5189 = vmatprep.mubr.bf16.mxu0 %v6290_v39  ;;  %v3088_v40 = vrot.slane %v3086_v32, 5  ;;  %v9120_v37 = vpop.f32.mrf.mxu0 }
 0x285   : > { %5028 = vmatprep.mubr.bf16.mxu1 %v6258_v1  ;;  %v2472_v58 = vsel %vm7882_vm7, %v2467_v44, %v2471_v19  ;;  %v6596_v59 = vadd.f32 %v8855_v8, %v8843_v34  ;;  %v3094_v54 = vrot.slane %v3092_v61, 5  ;;  %v2493_v36 = vshll.u32 %v2227_v11, 16 }
 0x286   : > { %10263 = vst [vmem:[#allocation21_spill] sm:$0xff] %v9114_v60  ;;  %5190 = vmatmul.mubr.bf16.gmra.mxu0 %v6274_v51  ;;  %v6242_v20 = vcombine.low %v2462_v56, %v2472_v58  ;;  %v3098_v4 = vrot.slane %v3096_v42, 4  ;;  %v3089_v18 = vor.u32 %v3088_v40, %v3085_v43  ;;  %v3104_v63 = vrot.slane %v3102_v10, 5  ;;  %v7380_v60 = vld [vmem:[#allocation2 + $0x88] sm:$0xf]  ;;  %v9122_v1 = vpop.f32.mrf.mxu1  ;;  %v9124_v7 = vpop.f32.mrf.mxu0  ;;  %v7342_v58 = vld [vmem:[#allocation9 + $0x38] sm:$0xff]  }
 0x287   : > { %v6147_v29 = vrot.slane %v2627_v5, 9  ;;  %v2753_v39 = vrot.slane %v7380_v60, 5  ;;  %v2756_v44 = vrot.slane %v2227_v11, 5  ;;  %v6484_v34 = vadd.f32 %v8861_v55, %v8849_v38  ;;  %v9134_v43 = vld [vmem:[#allocation2 + $0x9c] sm:$0xf]  ;;  %7052 = vmatprep.subr.bf16.mxu0 %v7342_v58 }
 0x288   : > { %v3099_v19 = vor.u32 %v3098_v4, %v3094_v54  ;;  %v6599_v8 = vadd.f32 %v8873_v24, %v8866_v45  ;;  %v3090_v51 = vrot.slane %v3089_v18, 4  ;;  %v6487_v60 = vadd.f32 %v8885_v13, %v8869_v31  ;;  %v9136_v61 = vpop.f32.mrf.mxu1  ;;  %v9138_v11 = vpop.f32.mrf.mxu0  ;;  %v10265_v45 = vld [vmem:[#allocation22_spill] sm:$0xff]  ;;  %v10266_v24 = vld [vmem:[#allocation23_spill] sm:$0xff]  ;;  %7053 = vmatpush3.bf16.msra.mxu0 %v7342_v58 }
 0x289   : > { %5029 = vmatmul.mubr.bf16.gmra.mxu1 %v6242_v20  ;;  %v2754_v56 = vsel %vm7896_vm10, %v6147_v29, %v2753_v39  ;;  %v2755_v32 = vrot.slane %v2753_v39, 4  ;;  %v2495_v38 = vrot.slane %v2493_v36, 5  ;;  %v9140_v55 = vadd.f32 %v6596_v59, %v6484_v34  ;;  %v9146_v5 = vld [vmem:[#allocation2 + $0xa0] sm:$0xf]  ;;  %v10269_v20 = vld [vmem:[#allocation24_spill] sm:$0xff] }
 0x28a   : > { %v3100_v42 = vrot.slane %v3099_v19, 4  ;;  %v2486_v10 = vsel %vm7882_vm7, %v10266_v24, %v10265_v45  ;;  %10267 = vst [vmem:[#allocation22_spill] sm:$0xff] %v9146_v5  ;;  %v3095_v31 = vsel %vm7882_vm7, %v3090_v51, %v3094_v54  ;;  %v9152_v40 = vadd.f32 %v6599_v8, %v6487_v60  ;;  %v9156_v4 = vld [vmem:[#allocation2 + $0xa4] sm:$0x1]  ;;  %v9158_v36 = vpop.f32.mrf.mxu1  ;;  %v9164_v19 = vpop.f32.mrf.mxu0 }
 0x28b   : > { %10264 = vst [vmem:[#allocation55_spill] sm:$0xff] %v9140_v55  ;;  %v2757_v13 = vsel %vm7896_vm10, %v2755_v32, %v2756_v44  ;;  %v2490_v59 = vor.u32 %v10269_v20, %v10265_v45  ;;  %10270 = vst [vmem:[#allocation24_spill] sm:$0xff] %v9156_v4  ;;  %v3107_v39 = vshrl.u32 %v9134_v43, 16  ;;  %v3110_v54 = vshll.u32 %v9134_v43, 16  ;;  %v2228_v32 = vld [vmem:[#allocation2 + $0x98] sm:$0x1] }
 0x28c   : > { %10268 = vst [vmem:[#allocation23_spill] sm:$0xff] %v9152_v40  ;;  %v3105_v18 = vsel %vm7882_vm7, %v3100_v42, %v3104_v63  ;;  %v6259_v29 = vcombine.low %v2754_v56, %v2757_v13  ;;  %v3116_v8 = vshll.u32 %v9146_v5, 16  ;;  %v3120_v51 = vshrl.u32 %v9146_v5, 16  ;;  %v2628_v45 = vld [vmem:[#allocation2 + $0x90] sm:$0xe] }
 0x28d   : > { %v6291_v44 = vcombine.low %v3095_v31, %v3105_v18  ;;  %v2491_v34 = vrot.slane %v2490_v59, 4  ;;  %v6275_v63 = vcombine.low %v9082_v46, %v9096_v21  ;;  %v3109_v56 = vrot.slane %v3107_v39, 4  ;;  %v9175_v59 = vpop.f32.mrf.mxu1 }
 0x28e   : > { %5036 = vmatprep.mubr.bf16.mxu1 %v6259_v29  ;;  %v3112_v60 = vrot.slane %v3110_v54, 5  ;;  %v3126_v42 = vshll.u32 %v9156_v4, 16  ;;  %v3118_v31 = vrot.slane %v3116_v8, 5  ;;  %v3122_v13 = vrot.slane %v3120_v51, 4  ;;  %v9177_v39 = vpop.f32.mrf.mxu0 }
 0x28f   : > { %5197 = vmatprep.mubr.bf16.mxu0 %v6291_v44  ;;  %v2496_v24 = vsel %vm7882_vm7, %v2491_v34, %v2495_v38  ;;  %v6602_v20 = vadd.f32 %v8905_v3, %v8893_v47  ;;  %v2517_v29 = vshll.u32 %v2228_v32, 16  ;;  %v6148_v40 = vrot.slane %v2628_v45, 9  ;;  %v7381_v44 = vld [vmem:[#allocation2 + $0x94] sm:$0xf] }
 0x290   : > { %5198 = vmatmul.mubr.bf16.gmra.mxu0 %v6275_v63  ;;  %v6243_v58 = vcombine.low %v2486_v10, %v2496_v24  ;;  %v3113_v18 = vor.u32 %v3112_v60, %v3109_v56  ;;  %v3128_v46 = vrot.slane %v3126_v42, 5  ;;  %v3123_v54 = vor.u32 %v3122_v13, %v3118_v31  ;;  %v9187_v56 = vld [vmem:[#allocation2 + $0xa8] sm:$0xf]  ;;  %v2229_v13 = vld [vmem:[#allocation2 + $0xa4] sm:$0x1] }
 0x291   : > { %v2760_v55 = vrot.slane %v7381_v44, 5  ;;  %v2763_v4 = vrot.slane %v2228_v32, 5  ;;  %v2519_v34 = vrot.slane %v2517_v29, 5  ;;  %v6490_v47 = vadd.f32 %v8909_v49, %v8903_v22  ;;  %v9189_v32 = vpop.f32.mrf.mxu1  ;;  %v10272_v49 = vld [vmem:[#allocation25_spill] sm:$0xff] }
 0x292   : > { %5037 = vmatmul.mubr.bf16.gmra.mxu1 %v6243_v58  ;;  %v3114_v38 = vrot.slane %v3113_v18, 4  ;;  %v6605_v3 = vadd.f32 %v8923_v28, %v8911_v62  ;;  %v3124_v10 = vrot.slane %v3123_v54, 4  ;;  %v6493_v63 = vadd.f32 %v8929_v9, %v8919_v25  ;;  %v10273_v62 = vld [vmem:[#allocation27_spill] sm:$0xff]  ;;  %v9203_v25 = vld [vmem:[#allocation2 + $0xb0] sm:$0x1]  ;;  %v9205_v9 = vpop.f32.mrf.mxu0 }
 0x293   : > { %v2761_v8 = vsel %vm7896_vm10, %v6148_v40, %v2760_v55  ;;  %v2762_v51 = vrot.slane %v2760_v55, 4  ;;  %v9193_v42 = vadd.f32 %v6602_v20, %v6490_v47  ;;  %v6276_v22 = vcombine.low %v9134_v43, %v9146_v5  ;;  %v9201_v55 = vld [vmem:[#allocation2 + $0xac] sm:$0xf]  ;;  %10275 = vst [vmem:[#allocation27_spill] sm:$0xff] %v9203_v25  ;;  %v10277_v43 = vld [vmem:[#allocation26_spill] sm:$0xff]  ;;  %v9220_v47 = vpop.f32.mrf.mxu1 }
 0x294   : > { %v3119_v60 = vsel %vm7882_vm7, %v3114_v38, %v3118_v31  ;;  %v2510_v28 = vsel %vm7882_vm7, %v10273_v62, %v10272_v49  ;;  %10274 = vst [vmem:[#allocation25_spill] sm:$0xff] %v9201_v55  ;;  %v3129_v40 = vsel %vm7882_vm7, %v3124_v10, %v3128_v46  ;;  %v9211_v24 = vadd.f32 %v6605_v3, %v6493_v63  ;;  %v9224_v63 = vpop.f32.mrf.mxu0 }
 0x295   : > { %10271 = vst [vmem:[#allocation56_spill] sm:$0xff] %v9193_v42  ;;  %v2764_v45 = vsel %vm7896_vm10, %v2762_v51, %v2763_v4  ;;  %v2514_v31 = vor.u32 %v10277_v43, %v10272_v49  ;;  %v6292_v20 = vcombine.low %v3119_v60, %v3129_v40  ;;  %v3131_v18 = vshrl.u32 %v9187_v56, 16  ;;  %v2629_v4 = vld [vmem:[#allocation2 + $0x9c] sm:$0xe] }
 0x296   : > { %10276 = vst [vmem:[#allocation57_spill] sm:$0xff] %v9211_v24  ;;  %v6260_v58 = vcombine.low %v2761_v8, %v2764_v45  ;;  %v3134_v29 = vshll.u32 %v9187_v56, 16  ;;  %v3140_v44 = vshll.u32 %v9201_v55, 16  ;;  %v3144_v46 = vshrl.u32 %v9201_v55, 16 }
 0x297   : > { %v2515_v54 = vrot.slane %v2514_v31, 4  ;;  %v3150_v38 = vshll.u32 %v9203_v25, 16  ;;  %5205 = vmatprep.mubr.bf16.mxu0 %v6292_v20  ;;  %v3133_v3 = vrot.slane %v3131_v18, 4  ;;  %v6608_v8 = vadd.f32 %v8949_v14, %v8941_v6  ;;  %v7382_v18 = vld [vmem:[#allocation2 + $0xa0] sm:$0xf]  ;;  %v9230_v14 = vpop.f32.mrf.mxu1 }
 0x298   : > { %5044 = vmatprep.mubr.bf16.mxu1 %v6260_v58  ;;  %v3136_v10 = vrot.slane %v3134_v29, 5  ;;  %v2541_v51 = vshll.u32 %v2229_v13, 16  ;;  %5206 = vmatmul.mubr.bf16.gmra.mxu0 %v6276_v22  ;;  %v3142_v49 = vrot.slane %v3140_v44, 5  ;;  %v3146_v62 = vrot.slane %v3144_v46, 4  ;;  %v9238_v44 = vld [vmem:[#allocation2 + $0xb4] sm:$0xf]  ;;  %v9240_v46 = vpop.f32.mrf.mxu0 }
 0x299   : > { %v2520_v60 = vsel %vm7882_vm7, %v2515_v54, %v2519_v34  ;;  %v3152_v40 = vrot.slane %v3150_v38, 5  ;;  %v6149_v20 = vrot.slane %v2629_v4, 9  ;;  %v2767_v29 = vrot.slane %v7382_v18, 5 }
 0x29a   : > { %v6244_v45 = vcombine.low %v2510_v28, %v2520_v60  ;;  %v3137_v43 = vor.u32 %v3136_v10, %v3133_v3  ;;  %v2543_v31 = vrot.slane %v2541_v51, 5  ;;  %v3147_v58 = vor.u32 %v3146_v62, %v3142_v49  ;;  %v9246_v3 = vld [vmem:[#allocation2 + $0xb8] sm:$0xf]  ;;  %v9258_v60 = vld [vmem:[#allocation2 + $0xbc] sm:$0x1] }
 0x29b   : > { %v2770_v24 = vrot.slane %v2229_v13, 5  ;;  %v6496_v6 = vadd.f32 %v8951_v57, %v8947_v23  ;;  %v6611_v34 = vadd.f32 %v8979_v17, %v8960_v33  ;;  %v6499_v28 = vadd.f32 %v8988_v52, %v8974_v53  ;;  %v7343_v13 = vld [vmem:[#allocation9 + $0x30] sm:$0xff]   ;;  %v10280_v17 = vld [vmem:[#allocation28_spill] sm:$0xff]  ;;  %v10281_v52 = vld [vmem:[#allocation30_spill] sm:$0xff] }
 0x29c   : > { %5045 = vmatmul.mubr.bf16.gmra.mxu1 %v6244_v45  ;;  %v3138_v22 = vrot.slane %v3137_v43, 4  ;;  %v6277_v54 = vcombine.low %v9187_v56, %v9201_v55  ;;  %v3148_v38 = vrot.slane %v3147_v58, 4  ;;  %v2768_v23 = vsel %vm7896_vm10, %v6149_v20, %v2767_v29  ;;  %v10282_v10 = vld [vmem:[#allocation29_spill] sm:$0xff]  ;;  %7054 = vmatprep.subr.bf16.mxu0 %v7343_v13  ;;  %v9266_v43 = vpop.f32.mrf.mxu1 }
 0x29d   : > { %v2769_v57 = vrot.slane %v2767_v29, 4  ;;  %v9244_v4 = vadd.f32 %v6608_v8, %v6496_v6  ;;  %v9250_v53 = vadd.f32 %v6611_v34, %v6499_v28  ;;  %v2534_v56 = vsel %vm7882_vm7, %v10281_v52, %v10280_v17  ;;  %7055 = vmatpush3.bf16.msra.mxu0 %v7343_v13  ;;  %v2230_v6 = vld [vmem:[#allocation2 + $0xb0] sm:$0x1]  ;;  %v7384_v55 = vld [vmem:[#allocation2 + $0xb8] sm:$0xf] }
 0x29e   : > { %v3143_v33 = vsel %vm7882_vm7, %v3138_v22, %v3142_v49  ;;  %v2538_v51 = vor.u32 %v10282_v10, %v10280_v17  ;;  %v3153_v8 = vsel %vm7882_vm7, %v3148_v38, %v3152_v40  ;;  %v3155_v49 = vshrl.u32 %v9238_v44, 16  ;;  %v9269_v22 = vpop.f32.mrf.mxu0  ;;  %v2630_v38 = vld [vmem:[#allocation2 + $0xa8] sm:$0xe] }
 0x29f   : > { %10278 = vst [vmem:[#allocation26_spill] sm:$0xff] %v9244_v4  ;;  %10279 = vst [vmem:[#allocation58_spill] sm:$0xff] %v9250_v53  ;;  %v2771_v62 = vsel %vm7896_vm10, %v2769_v57, %v2770_v24  ;;  %v3158_v45 = vshll.u32 %v9238_v44, 16  ;;  %v6293_v20 = vcombine.low %v3143_v33, %v3153_v8  ;;  %v3164_v29 = vshll.u32 %v9246_v3, 16 }
 0x2a0   : > { %v6261_v58 = vcombine.low %v2768_v23, %v2771_v62  ;;  %v2539_v18 = vrot.slane %v2538_v51, 4  ;;  %v3157_v34 = vrot.slane %v3155_v49, 4  ;;  %v3168_v28 = vshrl.u32 %v9246_v3, 16  ;;  %v9279_v17 = vpop.f32.mrf.mxu0 }
 0x2a1   : > { %v3160_v40 = vrot.slane %v3158_v45, 5  ;;  %v3174_v24 = vshll.u32 %v9258_v60, 16  ;;  %5213 = vmatprep.mubr.bf16.mxu0 %v6293_v20  ;;  %v3166_v23 = vrot.slane %v3164_v29, 5  ;;  %v6614_v33 = vadd.f32 %v9002_v35, %v8992_v0  ;;  %v9281_v62 = vpop.f32.mrf.mxu1  ;;  %v7383_v20 = vld [vmem:[#allocation2 + $0xac] sm:$0xf] }
 0x2a2   : > { %5052 = vmatprep.mubr.bf16.mxu1 %v6261_v58  ;;  %v2544_v13 = vsel %vm7882_vm7, %v2539_v18, %v2543_v31  ;;  %5214 = vmatmul.mubr.bf16.gmra.mxu0 %v6277_v54  ;;  %v3170_v51 = vrot.slane %v3168_v28, 4  ;;  %v2565_v49 = vshll.u32 %v2230_v6, 16  ;;  %v6150_v45 = vrot.slane %v2630_v38, 9  ;;  %v10283_v35 = vld [vmem:[#allocation47_spill] sm:$0xff]  ;;  %v10284_v28 = vld [vmem:[#allocation48_spill] sm:$0xff] }
 0x2a3   : > { %v6245_v52 = vcombine.low %v2534_v56, %v2544_v13  ;;  %v3161_v10 = vor.u32 %v3160_v40, %v3157_v34  ;;  %v3176_v8 = vrot.slane %v3174_v24, 5  ;;  %v2774_v58 = vrot.slane %v7383_v20, 5  ;;  %v9287_v56 = vpop.f32.mrf.mxu1  ;;  %v10285_v24 = vld [vmem:[#allocation49_spill] sm:$0xff]  ;;  %v9295_v13 = vpop.f32.mrf.mxu0  ;;  %v10289_v20 = vld [vmem:[#allocation31_spill] sm:$0xff] }
 0x2a4   : > { %v2777_v57 = vrot.slane %v2230_v6, 5  ;;  %v3171_v18 = vor.u32 %v3170_v51, %v3166_v23  ;;  %v6502_v0 = vadd.f32 %v9019_v15, %v9006_v2  ;;  %v6617_v54 = vadd.f32 %v9030_v41, %v10283_v35  ;;  %v9293_v6 = vld [vmem:[#allocation2 + $0xc0] sm:$0xf] }
 0x2a5   : > { %5053 = vmatmul.mubr.bf16.gmra.mxu1 %v6245_v52  ;;  %v3162_v31 = vrot.slane %v3161_v10, 4  ;;  %v2567_v29 = vrot.slane %v2565_v49, 5  ;;  %v2775_v34 = vsel %vm7896_vm10, %v6150_v45, %v2774_v58  ;;  %v2776_v40 = vrot.slane %v2774_v58, 4  ;;  %v9303_v10 = vld [vmem:[#allocation2 + $0xc4] sm:$0xf]  ;;  %v10288_v45 = vld [vmem:[#allocation32_spill] sm:$0xff] }
 0x2a6   : > { %v6505_v38 = vadd.f32 %v10285_v24, %v10284_v28  ;;  %v3172_v15 = vrot.slane %v3171_v18, 4  ;;  %v9299_v52 = vadd.f32 %v6614_v33, %v6502_v0  ;;  %v6278_v41 = vcombine.low %v9238_v44, %v9246_v3  ;;  %v9315_v33 = vld [vmem:[#allocation2 + $0xc8] sm:$0x1]  ;;  %v9317_v18 = vpop.f32.mrf.mxu1 }
 0x2a7   : > { %v3167_v2 = vsel %vm7882_vm7, %v3162_v31, %v3166_v23  ;;  %v2778_v51 = vsel %vm7896_vm10, %v2776_v40, %v2777_v57  ;;  %v2558_v58 = vsel %vm7882_vm7, %v10289_v20, %v10288_v45  ;;  %v10290_v23 = vld [vmem:[#allocation33_spill] sm:$0xff]  ;;  %10291 = vst [vmem:[#allocation29_spill] sm:$0xff] %v9315_v33  ;;  %v3179_v57 = vshrl.u32 %v9293_v6, 16  ;;  %v9325_v20 = vpop.f32.mrf.mxu0 }
 0x2a8   : > { %10286 = vst [vmem:[#allocation28_spill] sm:$0xff] %v9299_v52  ;;  %v9307_v49 = vadd.f32 %v6617_v54, %v6505_v38  ;;  %v2562_v31 = vor.u32 %v10290_v23, %v10288_v45  ;;  %v3177_v44 = vsel %vm7882_vm7, %v3172_v15, %v3176_v8  ;;  %v6262_v0 = vcombine.low %v2775_v34, %v2778_v51  ;;  %v2231_v54 = vld [vmem:[#allocation2 + $0xbc] sm:$0x1]  ;;  %v2631_v45 = vld [vmem:[#allocation2 + $0xb4] sm:$0xe]  ;;  %v10292_v34 = vld [vmem:[#allocation50_spill] sm:$0xff]  ;;  %v9332_v53 = vpop.f32.mrf.mxu1 }
 0x2a9   : > { %v3182_v35 = vshll.u32 %v9293_v6, 16  ;;  %v6294_v40 = vcombine.low %v3167_v2, %v3177_v44  ;;  %v3188_v24 = vshll.u32 %v9303_v10, 16  ;;  %v3192_v38 = vshrl.u32 %v9303_v10, 16  ;;  %v10293_v15 = vld [vmem:[#allocation19_spill] sm:$0xff] }
 0x2aa   : > { %10287 = vst [vmem:[#allocation30_spill] sm:$0xff] %v9307_v49  ;;  %v2563_v28 = vrot.slane %v2562_v31, 4  ;;  %5060 = vmatprep.mubr.bf16.mxu1 %v6262_v0  ;;  %v3181_v23 = vrot.slane %v3179_v57, 4  ;;  %v3198_v8 = vshll.u32 %v9315_v33, 16  ;;  %v6620_v51 = vadd.f32 %v10293_v15, %v10292_v34  ;;  %v10298_v15 = vld [vmem:[#allocation46_spill] sm:$0xff] }
 0x2ab   : > { %v3184_v49 = vrot.slane %v3182_v35, 5  ;;  %5221 = vmatprep.mubr.bf16.mxu0 %v6294_v40  ;;  %v3190_v31 = vrot.slane %v3188_v24, 5  ;;  %v3194_v44 = vrot.slane %v3192_v38, 4  ;;  %v2589_v52 = vshll.u32 %v2231_v54, 16  ;;  %v9334_v34 = vpop.f32.mrf.mxu0 }
 0x2ac   : > { %v2568_v2 = vsel %vm7882_vm7, %v2563_v28, %v2567_v29  ;;  %5222 = vmatmul.mubr.bf16.gmra.mxu0 %v6278_v41  ;;  %v3200_v0 = vrot.slane %v3198_v8, 5  ;;  %v6151_v57 = vrot.slane %v2631_v45, 9  ;;  %v2781_v5 = vrot.slane %v7384_v55, 5  ;;  %v10294_v29 = vld [vmem:[#allocation51_spill] sm:$0xff]  ;;  %v10295_v28 = vld [vmem:[#allocation52_spill] sm:$0xff] }
 0x2ad   : > { %v6246_v4 = vcombine.low %v2558_v58, %v2568_v2  ;;  %v3185_v42 = vor.u32 %v3184_v49, %v3181_v23  ;;  %v3195_v35 = vor.u32 %v3194_v44, %v3190_v31  ;;  %v2591_v25 = vrot.slane %v2589_v52, 5  ;;  %v10296_v41 = vld [vmem:[#allocation20_spill] sm:$0xff]  ;;  %v7344_v58 = vld [vmem:[#allocation9 + $0x28] sm:$0xff]   ;;  %v9346_v23 = vpop.f32.mrf.mxu1  ;;  %v10299_v44 = vld [vmem:[#allocation35_spill] sm:$0xff] }
 0x2ae   : > { %v2784_v33 = vrot.slane %v2231_v54, 5  ;;  %v6508_v24 = vadd.f32 %v10295_v28, %v10294_v29  ;;  %v6623_v38 = vadd.f32 %v9098_v27, %v9078_v12  ;;  %v6511_v49 = vadd.f32 %v10296_v41, %v9084_v30  ;;  %v10297_v30 = vld [vmem:[#allocation34_spill] sm:$0xff]  ;;  %7056 = vmatprep.subr.bf16.mxu0 %v7344_v58 }
 0x2af   : > { %5061 = vmatmul.mubr.bf16.gmra.mxu1 %v6246_v4  ;;  %v3186_v40 = vrot.slane %v3185_v42, 4  ;;  %v3196_v45 = vrot.slane %v3195_v35, 4  ;;  %v2782_v52 = vsel %vm7896_vm10, %v6151_v57, %v2781_v5  ;;  %v2783_v55 = vrot.slane %v2781_v5, 4  ;;  %v2232_v4 = vld [vmem:[#allocation2 + $0xc8] sm:$0x1]  ;;  %7057 = vmatpush3.bf16.msra.mxu0 %v7344_v58 }
 0x2b0   : > { %v6279_v54 = vcombine.low %v9293_v6, %v9303_v10  ;;  %v2632_v42 = vld [vmem:[#allocation2 + $0xc0] sm:$0xe]  ;;  %v9350_v12 = vadd.f32 %v6620_v51, %v6508_v24  ;;  %v9352_v27 = vadd.f32 %v6623_v38, %v6511_v49  ;;  %v2582_v2 = vsel %vm7882_vm7, %v10298_v15, %v10297_v30  ;;  %v10300_v38 = vld [vmem:[#allocation53_spill] sm:$0xff]  ;;  %v979_v49 = vld [vmem:[#allocation2 + $0xcc] sm:$0x1] }
 0x2b1   : > { %v3191_v8 = vsel %vm7882_vm7, %v3186_v40, %v3190_v31  ;;  %v3201_v5 = vsel %vm7882_vm7, %v3196_v45, %v3200_v0  ;;  %v2785_v6 = vsel %vm7896_vm10, %v2783_v55, %v2784_v33  ;;  %v2586_v57 = vor.u32 %v10299_v44, %v10297_v30  ;;  %v9366_v31 = vpop.f32.mrf.mxu0  ;;  %v9371_v45 = vpop.f32.mrf.mxu1 }
 0x2b2   : > { %v6626_v51 = vadd.f32 %v9124_v7, %v9120_v37  ;;  %v6295_v35 = vcombine.low %v3191_v8, %v3201_v5  ;;  %v6263_v40 = vcombine.low %v2782_v52, %v2785_v6  ;;  %v2613_v29 = vshll.u32 %v2232_v4, 16 }
 0x2b3   : > { %v6152_v28 = vrot.slane %v2632_v42, 9  ;;  %v2587_v24 = vrot.slane %v2586_v57, 4  ;;  %v2788_v41 = vrot.slane %v10300_v38, 5  ;;  %v2791_v0 = vrot.slane %v2232_v4, 5  ;;  %v1035_v4 = vld [vmem:[#allocation2 + $0xd4] sm:$0x1]  ;;  %v9388_v8 = vpop.f32.mrf.mxu0 }
 0x2b4   : > { %v6514_v33 = vadd.f32 %v9136_v61, %v9122_v1  ;;  %v10301_v7 = vor.u32 %v9080_v50, %v9073_v16  ;;  %5229 = vmatprep.mubr.bf16.mxu0 %v6295_v35  ;;  %5068 = vmatprep.mubr.bf16.mxu1 %v6263_v40  ;;  %v2615_v58 = vrot.slane %v2613_v29, 5  ;;  %v6629_v52 = vadd.f32 %v9164_v19, %v9138_v11  ;;  %v9380_v42 = vld [vmem:[#allocation2 + $0xd0] sm:$0xf]  ;;  %v10302_v19 = vld [vmem:[#allocation54_spill] sm:$0xff] }
 0x2b5   : > { %v6517_v55 = vadd.f32 %v9175_v59, %v9158_v36  ;;  %5230 = vmatmul.mubr.bf16.gmra.mxu0 %v6279_v54  ;;  %v2592_v1 = vsel %vm7882_vm7, %v2587_v24, %v2591_v25  ;;  %v2789_v16 = vsel %vm7896_vm10, %v6152_v28, %v2788_v41  ;;  %v2790_v50 = vrot.slane %v2788_v41, 4  ;;  %v10303_v36 = vld [vmem:[#allocation21_spill] sm:$0xff]  ;;  %v3227_v41 = vld [vmem:[#allocation2 + $0x24] sm:$0xe] }
 0x2b6   : > { %v2601_v37 = vrot.slane %v10301_v7, 4  ;;  %v9386_v61 = vadd.f32 %v6626_v51, %v6514_v33  ;;  %v6247_v30 = vcombine.low %v2582_v2, %v2592_v1  ;;  %v2610_v59 = vor.u32 %v10303_v36, %v10302_v19  ;;  %v9403_v2 = vpop.f32.mrf.mxu1  ;;  %v7385_v28 = vld [vmem:[#allocation2 + $0x1c] sm:$0xf] }
 0x2b7   : > { %v9390_v11 = vadd.f32 %v6629_v52, %v6517_v55  ;;  %v6632_v54 = vadd.f32 %v9205_v9, %v9177_v39  ;;  %v2792_v25 = vsel %vm7896_vm10, %v2790_v50, %v2791_v0  ;;  %v980_v5 = vsel %vm7848_vm2, 0, %v979_v49  ;;  %v3226_v9 = vld [vmem:[#allocation2 + $0x18] sm:$0xe]  ;;  %v9413_v0 = vpop.f32.mrf.mxu0 }
 0x2b8   : > { %v1036_v44 = vsel %vm7856_vm4, 0, %v1035_v4  ;;  %v3212_v57 = vshll.u32 %v9380_v42, 16  ;;  %5069 = vmatmul.mubr.bf16.gmra.mxu1 %v6247_v30  ;;  %v6264_v51 = vcombine.low %v2789_v16, %v2792_v25  ;;  %v2611_v35 = vrot.slane %v2610_v59, 4  ;;  %981 = vst [vmem:[#allocation2 + $0xcc] sm:$0x1] %v980_v5 }
 0x2b9   : > { %1037 = vst [vmem:[#allocation2 + $0xd4] sm:$0x1] %v1036_v44  ;;  %v3216_v39 = vshrl.u32 %v9380_v42, 16  ;;  %v2606_v40 = vsel %vm7882_vm7, %v2601_v37, %v10302_v19  ;;  %v3292_v24 = vrot.slane %v7385_v28, 5  ;;  %v6520_v38 = vadd.f32 %v9220_v47, %v9189_v32  ;;  %v7386_v4 = vld [vmem:[#allocation2 + $0x20] sm:$0x1]  ;;  %v9423_v47 = vpop.f32.mrf.mxu1 }
 0x2ba   : > { %v9409_v29 = vrot.slane %v3212_v57, 5  ;;  %5076 = vmatprep.mubr.bf16.mxu1 %v6264_v51  ;;  %v2616_v33 = vsel %vm7882_vm7, %v2611_v35, %v2615_v58  ;;  %v6635_v7 = vadd.f32 %v9240_v46, %v9224_v63  ;;  %v6523_v37 = vadd.f32 %v9266_v43, %v9230_v14  ;;  %v3228_v32 = vld [vmem:[#allocation2 + $0x30] sm:$0xe]  ;;  %v7387_v46 = vld [vmem:[#allocation2 + $0x34] sm:$0xf]  ;;  %v10308_v57 = vld [vmem:[#allocation37_spill] sm:$0xff] }
 0x2bb   : > { %v3218_v49 = vrot.slane %v3216_v39, 4  ;;  %v6153_v52 = vrot.slane %v3226_v9, 9  ;;  %v3294_v55 = vrot.slane %v3292_v24, 4  ;;  %v3295_v1 = vrot.slane %v7386_v4, 5  ;;  %v7388_v35 = vld [vmem:[#allocation2 + $0x38] sm:$0x1] }
 0x2bc   : > { %v9421_v16 = vadd.f32 %v6632_v54, %v6520_v38  ;;  %v9425_v50 = vadd.f32 %v6635_v7, %v6523_v37  ;;  %v6154_v30 = vrot.slane %v3227_v41, 9  ;;  %v6638_v58 = vadd.f32 %v9279_v17, %v9269_v22  ;;  %v9433_v36 = vpop.f32.mrf.mxu0  ;;  %v10306_v54 = vld [vmem:[#allocation36_spill] sm:$0xff]  ;;  %v3229_v4 = vld [vmem:[#allocation2 + $0x3c] sm:$0xe] }
 0x2bd   : > { %v6248_v19 = vcombine.low %v2606_v40, %v2616_v33  ;;  %v3293_v63 = vsel %vm7896_vm10, %v6153_v52, %v3292_v24  ;;  %v3296_v14 = vsel %vm7896_vm10, %v3294_v55, %v3295_v1  ;;  %v3306_v43 = vrot.slane %v7387_v46, 5  ;;  %v7390_v46 = vld [vmem:[#allocation2 + $0x4c] sm:$0xf] }
 0x2be   : > { %v3219_v59 = vor.u32 %v3218_v49, %v9409_v29  ;;  %v10307_v25 = vrot.slane %v10306_v54, 5  ;;  %v6155_v5 = vrot.slane %v3228_v32, 9  ;;  %v6526_v22 = vadd.f32 %v9287_v56, %v9281_v62  ;;  %v9449_v40 = vpop.f32.mrf.mxu1  ;;  %v6649_v28 = vpop.f32.mrf.mxu0  ;;  %v7389_v32 = vld [vmem:[#allocation2 + $0x40] sm:$0xf]  ;;  %v7391_v54 = vld [vmem:[#allocation2 + $0x44] sm:$0x1] }
 0x2bf   : > { %v9442_v17 = vld [vmem:[#allocation2 + $0xcc] sm:$0xf]  ;;  %v6297_v44 = vcombine.low %v3293_v63, %v3296_v14  ;;  %v3309_v39 = vrot.slane %v7388_v35, 5  ;;  %v6641_v9 = vadd.f32 %v9325_v20, %v9295_v13  ;;  %v3308_v38 = vrot.slane %v3306_v43, 4  ;;  %v7345_v13 = vld [vmem:[#allocation9 + $0x20] sm:$0xff]  }
 0x2c0   : > { %v3300_v15 = vsel %vm7896_vm10, %v6154_v30, %v10307_v25  ;;  %v9444_v6 = vld [vmem:[#allocation2 + $0xd4] sm:$0x1]  ;;  %5077 = vmatmul.mubr.bf16.gmra.mxu1 %v6248_v19  ;;  %v3203_v24 = vshrl.u32 %v9442_v17, 16  ;;  %v3206_v62 = vshll.u32 %v9442_v17, 16  ;;  %v9454_v41 = vadd.f32 %v6638_v58, %v6526_v22  ;;  %v6537_v49 = vpop.f32.mrf.mxu1  ;;  %v6651_v7 = vpop.f32.mrf.mxu0  ;;  %7058 = vmatprep.subr.bf16.mxu0 %v7345_v13  ;;  %v3230_v22 = vld [vmem:[#allocation2 + $0x48] sm:$0xe] }
 0x2c1   : > { %v6298_v51 = vcombine.low %v3300_v15, %v10308_v57  ;;  %v3222_v56 = vshll.u32 %v9444_v6, 16  ;;  %7020 = vmatprep.mubr.bf16.mxu1 %v6297_v44  ;;  %v6529_v33 = vadd.f32 %v9332_v53, %v9317_v18  ;;  %v3220_v52 = vrot.slane %v3219_v59, 4  ;;  %7059 = vmatpush3.bf16.msra.mxu0 %v7345_v13 }
 0x2c2   : > { %v3205_v20 = vrot.slane %v3203_v24, 4  ;;  %v3208_v37 = vrot.slane %v3206_v62, 5  ;;  %v3313_v30 = vrot.slane %v7389_v32, 5  ;;  %v6644_v19 = vadd.f32 %v9366_v31, %v9334_v34  ;;  %v6539_v58 = vpop.f32.mrf.mxu1  ;;  %v6652_v63 = vpop.f32.mrf.mxu0 }
 0x2c3   : > { %v3224_v55 = vrot.slane %v3222_v56, 5  ;;  %v9458_v1 = vadd.f32 %v6641_v9, %v6529_v33  ;;  %v3307_v53 = vsel %vm7896_vm10, %v6155_v5, %v3306_v43  ;;  %v3310_v18 = vsel %vm7896_vm10, %v3308_v38, %v3309_v39  ;;  %v7392_v33 = vld [vmem:[#allocation2 + $0x50] sm:$0x1] }
 0x2c4   : > { %v3209_v14 = vor.u32 %v3208_v37, %v3205_v20  ;;  %v3320_v59 = vrot.slane %v7390_v46, 5  ;;  %v3316_v25 = vrot.slane %v7391_v54, 5  ;;  %v6156_v15 = vrot.slane %v3229_v4, 9  ;;  %v6540_v31 = vpop.f32.mrf.mxu1  ;;  %v6654_v44 = vpop.f32.mrf.mxu0 }
 0x2c5   : > { %v6532_v34 = vadd.f32 %v9371_v45, %v9346_v23  ;;  %v3225_v35 = vsel %vm7882_vm7, %v3220_v52, %v3224_v55  ;;  %v3315_v43 = vrot.slane %v3313_v30, 4  ;;  %v6647_v5 = vadd.f32 %v9413_v0, %v9388_v8 }
 0x2c6   : > { %v3210_v57 = vrot.slane %v3209_v14, 4  ;;  %v6280_v39 = vcombine.low %v9442_v17, %v9380_v42  ;;  %v6299_v9 = vcombine.low %v3307_v53, %v3310_v18  ;;  %v6535_v62 = vadd.f32 %v9423_v47, %v9403_v2  ;;  %v6655_v23 = vpop.f32.mrf.mxu0  ;;  %v7394_v14 = vld [vmem:[#allocation2 + $0x64] sm:$0xf] }
 0x2c7   : > { %v9474_v24 = vadd.f32 %v6644_v19, %v6532_v34  ;;  %v6157_v56 = vrot.slane %v3230_v22, 9  ;;  %v3322_v38 = vrot.slane %v3320_v59, 4  ;;  %v3323_v13 = vrot.slane %v7392_v33, 5  ;;  %v3232_v19 = vld [vmem:[#allocation2 + $0x60] sm:$0xe] }
 0x2c8   : > { %v3215_v45 = vsel %vm7882_vm7, %v3210_v57, %v9409_v29  ;;  %7021 = vmatmul.mubr.bf16.vlgmr.msra.gmra.mxu1 %v6298_v51  ;;  %v9481_v0 = vadd.f32 %v6647_v5, %v6535_v62  ;;  %v6650_v17 = vadd.f32 %v6649_v28, %v9433_v36  ;;  %v6542_v20 = vpop.f32.mrf.mxu1  ;;  %v6657_v37 = vpop.f32.mrf.mxu0  ;;  %v3314_v2 = vsel %vm7896_vm10, %v6156_v15, %v3313_v30  ;;  %v7393_v29 = vld [vmem:[#allocation2 + $0x58] sm:$0xf]  ;;  %v3231_v30 = vld [vmem:[#allocation2 + $0x54] sm:$0xe]  ;;  %v7396_v57 = vld [vmem:[#allocation2 + $0x68] sm:$0x1] }
 0x2c9   : > { %v6296_v8 = vcombine.low %v3215_v45, %v3225_v35  ;;  %7024 = vmatprep.mubr.bf16.mxu1 %v6299_v9  ;;  %v3317_v26 = vsel %vm7896_vm10, %v3315_v43, %v3316_v25  ;;  %v3327_v47 = vrot.slane %v7393_v29, 5  ;;  %v6538_v51 = vadd.f32 %v6537_v49, %v9449_v40  ;;  %v7395_v49 = vld [vmem:[#allocation2 + $0x5c] sm:$0x1]  ;;  %v7399_v29 = vld [vmem:[#allocation2 + $0x74] sm:$0x1] }
 0x2ca   : > { %v6653_v52 = vadd.f32 %v6652_v63, %v6651_v7  ;;  %v6541_v55 = vadd.f32 %v6540_v31, %v6539_v58  ;;  %v6543_v4 = vpop.f32.mrf.mxu1  ;;  %v6658_v32 = vpop.f32.mrf.mxu0  ;;  %v3321_v36 = vsel %vm7896_vm10, %v6157_v56, %v3320_v59  ;;  %v3324_v28 = vsel %vm7896_vm10, %v3322_v38, %v3323_v13  ;;  %v3233_v56 = vld [vmem:[#allocation2 + $0x6c] sm:$0xe]  ;;  %v3234_v38 = vld [vmem:[#allocation2 + $0x78] sm:$0xe] }
 0x2cb   : > { %5237 = vmatprep.mubr.bf16.mxu0 %v6296_v8  ;;  %v3334_v53 = vrot.slane %v7394_v14, 5  ;;  %v9493_v18 = vadd.f32 %v6650_v17, %v6538_v51  ;;  %v3330_v7 = vrot.slane %v7395_v49, 5  ;;  %v6300_v58 = vcombine.low %v3314_v2, %v3317_v26  ;;  %v7346_v17 = vld [vmem:[#allocation9 + $0x18] sm:$0xff]   ;;  %v7400_v49 = vld [vmem:[#allocation2 + $0x80] sm:$0x1] }
 0x2cc   : > { %5238 = vmatmul.mubr.bf16.gmra.mxu0 %v6280_v39  ;;  %v9495_v46 = vadd.f32 %v6653_v52, %v6541_v55  ;;  %v6545_v40 = vpop.f32.mrf.mxu1  ;;  %v6656_v63 = vadd.f32 %v6655_v23, %v6654_v44  ;;  %v6301_v54 = vcombine.low %v3321_v36, %v3324_v28  ;;  %v6158_v25 = vrot.slane %v3231_v30, 9  ;;  %v7397_v39 = vld [vmem:[#allocation2 + $0x70] sm:$0xf]  ;;  %v7398_v44 = vld [vmem:[#allocation2 + $0x7c] sm:$0xf]  ;;  %7060 = vmatprep.subr.bf16.mxu0 %v7346_v17 }
 0x2cd   : > { %v3329_v15 = vrot.slane %v3327_v47, 4  ;;  %v6159_v59 = vrot.slane %v3232_v19, 9  ;;  %v3336_v31 = vrot.slane %v3334_v53, 4  ;;  %v3337_v35 = vrot.slane %v7396_v57, 5  ;;  %v3239_v19 = vld [vmem:[#allocation2 + $0xb4] sm:$0xe]  ;;  %7061 = vmatpush3.bf16.msra.mxu0 %v7346_v17 }
 0x2ce   : > { %v6546_v22 = vpop.f32.mrf.mxu1  ;;  %v6660_v34 = vpop.f32.mrf.mxu0  ;;  %v6544_v43 = vadd.f32 %v6543_v4, %v6542_v20  ;;  %v6659_v5 = vadd.f32 %v6658_v32, %v6657_v37  ;;  %v3341_v9 = vrot.slane %v7397_v39, 5  ;;  %v3348_v23 = vrot.slane %v7398_v44, 5  ;;  %v7401_v39 = vld [vmem:[#allocation2 + $0x88] sm:$0xf]  ;;  %v3236_v17 = vld [vmem:[#allocation2 + $0x90] sm:$0xe] }
 0x2cf   : > { %v6547_v62 = vadd.f32 %v6546_v22, %v6545_v40  ;;  %v3328_v2 = vsel %vm7896_vm10, %v6158_v25, %v3327_v47  ;;  %v3331_v20 = vsel %vm7896_vm10, %v3329_v15, %v3330_v7  ;;  %v3344_v51 = vrot.slane %v7399_v29, 5  ;;  %v10309_v29 = vld [vmem:[#allocation29_spill] sm:$0xff] }
 0x2d0   : > { %7025 = vmatmul.mubr.bf16.gmra.mxu1 %v6300_v58  ;;  %v6661_v45 = vpop.f32.mrf.mxu0  ;;  %v9497_v33 = vadd.f32 %v6656_v63, %v6544_v43  ;;  %v3335_v52 = vsel %vm7896_vm10, %v6159_v59, %v3334_v53  ;;  %v3338_v55 = vsel %vm7896_vm10, %v3336_v31, %v3337_v35  ;;  %v6160_v32 = vrot.slane %v3233_v56, 9  ;;  %v3240_v31 = vld [vmem:[#allocation2 + $0xc0] sm:$0xe] }
 0x2d1   : > { %7028 = vmatprep.mubr.bf16.mxu1 %v6301_v54  ;;  %v6548_v13 = vpop.f32.mrf.mxu1  ;;  %v6662_v8 = vadd.f32 %v6661_v45, %v6660_v34  ;;  %v9503_v37 = vadd.f32 %v6659_v5, %v6547_v62  ;;  %v3343_v36 = vrot.slane %v3341_v9, 4  ;;  %v6161_v28 = vrot.slane %v3234_v38, 9  ;;  %v3235_v38 = vld [vmem:[#allocation2 + $0x84] sm:$0xe] }
 0x2d2   : > { %v6663_v26 = vpop.f32.mrf.mxu0  ;;  %v6302_v14 = vcombine.low %v3328_v2, %v3331_v20  ;;  %v3350_v40 = vrot.slane %v3348_v23, 4  ;;  %v3351_v7 = vrot.slane %v7400_v49, 5  ;;  %v6303_v54 = vcombine.low %v3335_v52, %v3338_v55  ;;  %v7402_v52 = vld [vmem:[#allocation2 + $0x8c] sm:$0x1] }
 0x2d3   : > { %v6549_v4 = vpop.f32.mrf.mxu1  ;;  %v3386_v25 = vrot.slane %v9258_v60, 5  ;;  %v6166_v22 = vrot.slane %v3239_v19, 9  ;;  %v3383_v34 = vrot.slane %v9246_v3, 5  ;;  %v3342_v57 = vsel %vm7896_vm10, %v6160_v32, %v3341_v9 }
 0x2d4   : > { %v6550_v47 = vadd.f32 %v6549_v4, %v6548_v13  ;;  %v6664_v30 = vpop.f32.mrf.mxu0  ;;  %v3345_v35 = vsel %vm7896_vm10, %v3343_v36, %v3344_v51  ;;  %v3349_v43 = vsel %vm7896_vm10, %v6161_v28, %v3348_v23  ;;  %v3352_v60 = vsel %vm7896_vm10, %v3350_v40, %v3351_v7 }
 0x2d5   : > { %v6551_v58 = vpop.f32.mrf.mxu1  ;;  %v6665_v63 = vadd.f32 %v6664_v30, %v6663_v26  ;;  %v3355_v62 = vrot.slane %v7401_v39, 5  ;;  %v9523_v3 = vsel %vm7896_vm10, %v6166_v22, %v3383_v34  ;;  %v3385_v56 = vrot.slane %v3383_v34, 4 }
 0x2d6   : > { %v9509_v53 = vadd.f32 %v6662_v8, %v6550_v47  ;;  %v6167_v8 = vrot.slane %v3240_v31, 9  ;;  %v3390_v23 = vrot.slane %v9303_v10, 5  ;;  %v3362_v2 = vrot.slane %v9096_v21, 5 }
 0x2d7   : > { %v6552_v15 = vpop.f32.mrf.mxu1  ;;  %v6666_v59 = vpop.f32.mrf.mxu0  ;;  %v9531_v26 = vsel %vm7896_vm10, %v3385_v56, %v3386_v25  ;;  %v3393_v51 = vrot.slane %v10309_v29, 5  ;;  %v3358_v55 = vrot.slane %v7402_v52, 5  ;;  %v6304_v28 = vcombine.low %v3342_v57, %v3345_v35  ;;  %v3237_v56 = vld [vmem:[#allocation2 + $0x9c] sm:$0xe]  ;;  %v10312_v29 = vld [vmem:[#allocation24_spill] sm:$0xff] }
 0x2d8   : > { %7029 = vmatmul.mubr.bf16.gmra.mxu1 %v6302_v14  ;;  %v6553_v5 = vadd.f32 %v6552_v15, %v6551_v58  ;;  %v6310_v32 = vcombine.low %v9523_v3, %v9531_v26  ;;  %v9538_v36 = vsel %vm7896_vm10, %v6167_v8, %v3390_v23  ;;  %v3392_v10 = vrot.slane %v3390_v23, 4 }
 0x2d9   : > { %7032 = vmatprep.mubr.bf16.mxu1 %v6303_v54  ;;  %v6667_v45 = vpop.f32.mrf.mxu0  ;;  %v6305_v21 = vcombine.low %v3349_v43, %v3352_v60  ;;  %v6162_v47 = vrot.slane %v3235_v38, 9  ;;  %v3357_v14 = vrot.slane %v3355_v62, 4  ;;  %v6163_v40 = vrot.slane %v3236_v17, 9  ;;  %v7403_v54 = vld [vmem:[#allocation2 + $0x98] sm:$0x1] }
 0x2da   : > { %v9525_v9 = vadd.f32 %v6665_v63, %v6553_v5  ;;  %v6554_v44 = vpop.f32.mrf.mxu1  ;;  %v6668_v13 = vadd.f32 %v6667_v45, %v6666_v59  ;;  %v9542_v58 = vsel %vm7896_vm10, %v3392_v10, %v3393_v51  ;;  %v3364_v63 = vrot.slane %v3362_v2, 4  ;;  %v10310_v5 = vld [vmem:[#allocation22_spill] sm:$0xff]  ;;  %v10311_v38 = vld [vmem:[#allocation25_spill] sm:$0xff] }
 0x2db   : > { %v6669_v20 = vpop.f32.mrf.mxu0  ;;  %v3365_v25 = vrot.slane %v7403_v54, 5  ;;  %v6311_v59 = vcombine.low %v9538_v36, %v9542_v58  ;;  %v3356_v57 = vsel %vm7896_vm10, %v6162_v47, %v3355_v62  ;;  %v3359_v35 = vsel %vm7896_vm10, %v3357_v14, %v3358_v55  ;;  %v3238_v62 = vld [vmem:[#allocation2 + $0xa8] sm:$0xe] }
 0x2dc   : > { %v6555_v4 = vpop.f32.mrf.mxu1  ;;  %v3363_v43 = vsel %vm7896_vm10, %v6163_v40, %v3362_v2  ;;  %v3369_v60 = vrot.slane %v10310_v5, 5  ;;  %v3372_v51 = vrot.slane %v10312_v29, 5  ;;  %v6306_v52 = vcombine.low %v3356_v57, %v3359_v35 }
 0x2dd   : > { %v6556_v30 = vadd.f32 %v6555_v4, %v6554_v44  ;;  %v6670_v19 = vpop.f32.mrf.mxu0  ;;  %v3366_v45 = vsel %vm7896_vm10, %v3364_v63, %v3365_v25  ;;  %v3376_v44 = vrot.slane %v10311_v38, 5  ;;  %v6164_v4 = vrot.slane %v3237_v56, 9 }
 0x2de   : > { %v6557_v49 = vpop.f32.mrf.mxu1  ;;  %v6671_v7 = vadd.f32 %v6670_v19, %v6669_v20  ;;  %v7347_v20 = vld [vmem:[#allocation9 + $0x10] sm:$0xff]   ;;  %v6307_v55 = vcombine.low %v3363_v43, %v3366_v45  ;;  %v3371_v10 = vrot.slane %v3369_v60, 4  ;;  %v6165_v47 = vrot.slane %v3238_v62, 9 }
 0x2df   : > { %v9544_v15 = vadd.f32 %v6668_v13, %v6556_v30  ;;  %7062 = vmatprep.subr.bf16.mxu0 %v7347_v20  ;;  %v3378_v30 = vrot.slane %v3376_v44, 4  ;;  %v10313_v19 = vld [vmem:[#allocation27_spill] sm:$0xff]  ;;  %v3370_v25 = vsel %vm7896_vm10, %v6164_v4, %v3369_v60  ;;  %v3397_v62 = vrot.slane %v9380_v42, 5 }
 0x2e0   : > { %7033 = vmatmul.mubr.bf16.gmra.mxu1 %v6304_v28  ;;  %v6558_v22 = vpop.f32.mrf.mxu1  ;;  %v6672_v34 = vpop.f32.mrf.mxu0  ;;  %v3379_v14 = vrot.slane %v10313_v19, 5  ;;  %7063 = vmatpush3.bf16.msra.mxu0 %v7347_v20  ;;  %v3241_v20 = vld [vmem:[#allocation2 + $0xcc] sm:$0xe]  ;;  %v3400_v4 = vrot.slane %v9444_v6, 5 }
 0x2e1   : > { %7036 = vmatprep.mubr.bf16.mxu1 %v6305_v21  ;;  %v6559_v31 = vadd.f32 %v6558_v22, %v6557_v49  ;;  %v3373_v22 = vsel %vm7896_vm10, %v3371_v10, %v3372_v51  ;;  %v6168_v10 = vrot.slane %v3241_v20, 9  ;;  %v10320_v20 = vld [vmem:[#allocation40_spill] sm:$0xff] }
 0x2e2   : > { %v6673_v39 = vpop.f32.mrf.mxu0  ;;  %v3380_v57 = vsel %vm7896_vm10, %v3378_v30, %v3379_v14  ;;  %v6308_v45 = vcombine.low %v3370_v25, %v3373_v22 }
 0x2e3   : > { %v9558_v13 = vadd.f32 %v6671_v7, %v6559_v31  ;;  %v6560_v8 = vpop.f32.mrf.mxu1  ;;  %v6674_v23 = vadd.f32 %v6673_v39, %v6672_v34  ;;  %v3377_v31 = vsel %vm7896_vm10, %v6165_v47, %v3376_v44  ;;  %v3398_v6 = vsel %vm7896_vm10, %v6168_v10, %v3397_v62 }
 0x2e4   : > { %v6675_v17 = vpop.f32.mrf.mxu0  ;;  %v6309_v38 = vcombine.low %v3377_v31, %v3380_v57  ;;  %v10315_v57 = vld [vmem:[#allocation55_spill] sm:$0xff] }
 0x2e5   : > { %v6561_v2 = vpop.f32.mrf.mxu1 }
 0x2e6   : > { %v6562_v28 = vadd.f32 %v6561_v2, %v6560_v8  ;;  %v6676_v21 = vpop.f32.mrf.mxu0 }
 0x2e7   : > { %v6563_v40 = vpop.f32.mrf.mxu1  ;;  %v6677_v49 = vadd.f32 %v6676_v21, %v6675_v17 }
 0x2e8   : > { %7037 = vmatmul.mubr.bf16.gmra.mxu1 %v6306_v52  ;;  %v9562_v7 = vadd.f32 %v6674_v23, %v6562_v28  ;;  %v3399_v28 = vrot.slane %v3397_v62, 4  ;;  %v10318_v62 = vld [vmem:[#allocation41_spill] sm:$0xff] }
 0x2e9   : > { %7040 = vmatprep.mubr.bf16.mxu1 %v6307_v55  ;;  %v6564_v63 = vpop.f32.mrf.mxu1  ;;  %v6678_v54 = vpop.f32.mrf.mxu0 }
 0x2ea   : > { %v6565_v34 = vadd.f32 %v6564_v63, %v6563_v40  ;;  %v3401_v63 = vsel %vm7896_vm10, %v3399_v28, %v3400_v4  ;;  %v10322_v4 = vld [vmem:[#allocation44_spill] sm:$0xff] }
 0x2eb   : > { %v6679_v35 = vpop.f32.mrf.mxu0  ;;  %v6312_v22 = vcombine.low %v3398_v6, %v3401_v63 }
 0x2ec   : > { %v9572_v43 = vadd.f32 %v6677_v49, %v6565_v34  ;;  %v6566_v5 = vpop.f32.mrf.mxu1  ;;  %v6680_v39 = vadd.f32 %v6679_v35, %v6678_v54  ;;  %v7348_v49 = vld [vmem:[#allocation9 + $0x8] sm:$0xff]  }
 0x2ed   : > { %v6681_v56 = vpop.f32.mrf.mxu0  ;;  %7064 = vmatprep.subr.bf16.mxu0 %v7348_v49 }
 0x2ee   : > { %v6567_v8 = vpop.f32.mrf.mxu1  ;;  %7065 = vmatpush3.bf16.msra.mxu0 %v7348_v49  ;;  %v10324_v49 = vld [vmem:[#allocation45_spill] sm:$0xff] }
 0x2ef   : > { %v6568_v60 = vadd.f32 %v6567_v8, %v6566_v5  ;;  %v6682_v23 = vpop.f32.mrf.mxu0 }
 0x2f0   : > { %7041 = vmatmul.mubr.bf16.gmra.mxu1 %v6308_v45  ;;  %v6569_v17 = vpop.f32.mrf.mxu1  ;;  %v6683_v44 = vadd.f32 %v6682_v23, %v6681_v56  ;;  %v10317_v23 = vld [vmem:[#allocation39_spill] sm:$0xff] }
 0x2f1   : > { %7044 = vmatprep.mubr.bf16.mxu1 %v6309_v38  ;;  %v9575_v29 = vadd.f32 %v6680_v39, %v6568_v60  ;;  %v6812_v51 = vpop.f32.mrf.mxu0  ;;  %v10316_v38 = vld [vmem:[#allocation23_spill] sm:$0xff] }
 0x2f2   : > { %v6570_v52 = vpop.f32.mrf.mxu1 }
 0x2f3   : > { %v6571_v2 = vadd.f32 %v6570_v52, %v6569_v17  ;;  %v6813_v55 = vpop.f32.mrf.mxu0  ;;  %v6478_v17 = vadd.f32 %v10318_v62, %v10317_v23 }
 0x2f4   : > { %v6700_v21 = vpop.f32.mrf.mxu1  ;;  %v6814_v47 = vadd.f32 %v6813_v55, %v6812_v51  ;;  %v10321_v55 = vld [vmem:[#allocation42_spill] sm:$0xff] }
 0x2f5   : > { %v9578_v30 = vadd.f32 %v6683_v44, %v6571_v2  ;;  %v6815_v19 = vpop.f32.mrf.mxu0  ;;  %v10319_v44 = vld [vmem:[#allocation38_spill] sm:$0xff]  ;;  %v6593_v10 = vadd.f32 %v10322_v4, %v10321_v55 }
 0x2f6   : > { %v6701_v14 = vpop.f32.mrf.mxu1  ;;  %v6590_v51 = vadd.f32 %v10320_v20, %v10319_v44  ;;  %v7349_v20 = vld [vmem:[#allocation9] sm:$0xff]  }
 0x2f7   : > { %10314 = vst [vmem:[#allocation47_spill] sm:$0xff] %v9578_v30  ;;  %v6702_v42 = vadd.f32 %v6701_v14, %v6700_v21  ;;  %v6816_v40 = vpop.f32.mrf.mxu0  ;;  %v10323_v14 = vld [vmem:[#allocation43_spill] sm:$0xff]  ;;  %7066 = vmatprep.subr.bf16.mxu0 %v7349_v20 }
 0x2f8   : > { %7045 = vmatmul.mubr.bf16.gmra.mxu1 %v6310_v32  ;;  %v6703_v54 = vpop.f32.mrf.mxu1  ;;  %v6481_v6 = vadd.f32 %v10324_v49, %v10323_v14  ;;  %v4798_v63 = vadd.f32 %v6590_v51, %v6478_v17  ;;  %v6817_v17 = vadd.f32 %v6816_v40, %v6815_v19  ;;  %7067 = vmatpush3.bf16.msra.mxu0 %v7349_v20  ;;  %v10330_v20 = vld [vmem:[#allocation30_spill] sm:$0xff] }
 0x2f9   : > { %7048 = vmatprep.mubr.bf16.mxu1 %v6311_v59 }
 0x2fa   : > { %v6704_v25 = vpop.f32.mrf.mxu1 }
 0x2fb   : > { %v6705_v3 = vadd.f32 %v6704_v25, %v6703_v54  ;;  %v9590_v26 = vpop.f32.mrf.mxu0  ;;  %v10325_v25 = vld [vmem:[#allocation56_spill] sm:$0xff] }
 0x2fd   : > { %v9592_v32 = vpop.f32.mrf.mxu0 }
 0x2ff   : > { %v6706_v34 = vpop.f32.mrf.mxu1  ;;  %v9594_v36 = vpop.f32.mrf.mxu0 }
 0x300   : > { %7049 = vmatmul.mubr.bf16.gmra.mxu1 %v6312_v22 }
 0x301   : > { %v6707_v58 = vpop.f32.mrf.mxu1  ;;  %v9596_v31 = vpop.f32.mrf.mxu0 }
 0x302   : > { %v6708_v59 = vadd.f32 %v6707_v58, %v6706_v34  ;;  %v4801_v58 = vadd.f32 %v6593_v10, %v6481_v6 }
 0x303   : > { %v6709_v48 = vpop.f32.mrf.mxu1  ;;  %v9601_v5 = vpop.f32.mrf.mxu0 }
 0x304   : > { %v9599_v35 = vadd.f32 %v6708_v59, %v10315_v57  ;;  %v4959_v59 = vadd.f32 %v6702_v42, %v4798_v63 }
 0x305   : > { %v6710_v39 = vpop.f32.mrf.mxu1  ;;  %v9603_v56 = vpop.f32.mrf.mxu0 }
 0x306   : > { %v6711_v45 = vadd.f32 %v6710_v39, %v6709_v48  ;;  %v9632_v51 = vadd.f32 %v6814_v47, %v4959_v59  ;;  %v10328_v47 = vld [vmem:[#allocation58_spill] sm:$0xff] }
 0x307   : > { %v9608_v60 = vpop.f32.mrf.mxu0 }
 0x308   : > { %v9606_v8 = vadd.f32 %v6711_v45, %v10316_v38  ;;  %v6712_v52 = vpop.f32.mrf.mxu1  ;;  %v4962_v45 = vadd.f32 %v6705_v3, %v4801_v58  ;;  %v10326_v38 = vld [vmem:[#allocation57_spill] sm:$0xff]  ;;  %v10327_v3 = vld [vmem:[#allocation26_spill] sm:$0xff] }
 0x309   : > { %v9614_v2 = vpop.f32.mrf.mxu0 }
 0x30a   : > { %v6713_v28 = vpop.f32.mrf.mxu1  ;;  %v9636_v42 = vadd.f32 %v6817_v17, %v4962_v45 }
 0x30b   : > { %v6714_v21 = vadd.f32 %v6713_v28, %v6712_v52 }
 0x30c   : > { %v6715_v54 = vpop.f32.mrf.mxu1 }
 0x30d   : > { %v9621_v22 = vadd.f32 %v6714_v21, %v10325_v25  ;;  %v9623_v34 = vpop.f32.mrf.mxu0 }
 0x30e   : > { %v6716_v48 = vpop.f32.mrf.mxu1 }
 0x30f   : > { %v6717_v57 = vadd.f32 %v6716_v48, %v6715_v54  ;;  %v9625_v39 = vpop.f32.mrf.mxu0  ;;  %v10329_v48 = vld [vmem:[#allocation28_spill] sm:$0xff] }
 0x311   : > { %v9628_v23 = vadd.f32 %v6717_v57, %v10326_v38  ;;  %v9630_v44 = vpop.f32.mrf.mxu0 }
 0x312   : > { %v6718_v62 = vpop.f32.mrf.mxu1 }
 0x313   : > { %v9634_v55 = vpop.f32.mrf.mxu0 }
 0x314   : > { %v6719_v52 = vpop.f32.mrf.mxu1 }
 0x315   : > { %v6720_v4 = vadd.f32 %v6719_v52, %v6718_v62 }
 0x316   : > { %v6721_v10 = vpop.f32.mrf.mxu1 }
 0x317   : > { %v9639_v28 = vadd.f32 %v6720_v4, %v10327_v3  ;;  %v9641_v14 = vpop.f32.mrf.mxu0 }
 0x318   : > { %v6722_v21 = vpop.f32.mrf.mxu1 }
 0x319   : > { %v6723_v49 = vadd.f32 %v6722_v21, %v6721_v10  ;;  %v9643_v19 = vpop.f32.mrf.mxu0 }
 0x31b   : > { %v9646_v40 = vadd.f32 %v6723_v49, %v10328_v47  ;;  %v6724_v6 = vpop.f32.mrf.mxu1  ;;  %v9648_v63 = vpop.f32.mrf.mxu0 }
 0x31d   : > { %v6725_v54 = vpop.f32.mrf.mxu1  ;;  %v9650_v58 = vpop.f32.mrf.mxu0 }
 0x31e   : > { %v6726_v25 = vadd.f32 %v6725_v54, %v6724_v6 }
 0x31f   : > { %v6727_v59 = vpop.f32.mrf.mxu1 }
 0x320   : > { %v9653_v57 = vadd.f32 %v6726_v25, %v10329_v48  ;;  %v9655_v45 = vpop.f32.mrf.mxu0 }
 0x321   : > { %v6728_v38 = vpop.f32.mrf.mxu1 }
 0x322   : > { %v6729_v62 = vadd.f32 %v6728_v38, %v6727_v59  ;;  %v9657_v17 = vpop.f32.mrf.mxu0 }
 0x324   : > { %v9660_v52 = vadd.f32 %v6729_v62, %v10330_v20  ;;  %v9662_v4 = vpop.f32.mrf.mxu0 }
 0x325   : > { %v6730_v10 = vpop.f32.mrf.mxu1 }
 0x326   : > { %10331 = vst [vmem:[#allocation48_spill] sm:$0xff] %v9660_v52  ;;  %v9664_v3 = vpop.f32.mrf.mxu0 }
 0x327   : > { %10332 = vst [vmem:[#allocation49_spill] sm:$0xff] %v9664_v3  ;;  %v6731_v21 = vpop.f32.mrf.mxu1 }
 0x328   : > { %v6732_v49 = vadd.f32 %v6731_v21, %v6730_v10 }
 0x329   : > { %v6733_v47 = vpop.f32.mrf.mxu1 }
 0x32a   : > { %v9667_v6 = vadd.f32 %v6732_v49, %v9350_v12  ;;  %v9669_v54 = vpop.f32.mrf.mxu0 }
 0x32b   : > { %10333 = vst [vmem:[#allocation32_spill] sm:$0xff] %v9669_v54  ;;  %v6734_v25 = vpop.f32.mrf.mxu1 }
 0x32c   : > { %v6735_v59 = vadd.f32 %v6734_v25, %v6733_v47  ;;  %v9671_v48 = vpop.f32.mrf.mxu0 }
 0x32d   : > { %10334 = vst [vmem:[#allocation31_spill] sm:$0xff] %v9671_v48 }
 0x32e   : > { %v9674_v38 = vadd.f32 %v6735_v59, %v9352_v27  ;;  %v9676_v20 = vpop.f32.mrf.mxu0 }
 0x32f   : > { %v6736_v62 = vpop.f32.mrf.mxu1  ;;  %10335 = vst [vmem:[#allocation33_spill] sm:$0xff] %v9676_v20 }
 0x330   : > { %v9678_v52 = vpop.f32.mrf.mxu0 }
 0x331   : > { %v6737_v30 = vpop.f32.mrf.mxu1  ;;  %10336 = vst [vmem:[#allocation50_spill] sm:$0xff] %v9678_v52 }
 0x332   : > { %v6738_v10 = vadd.f32 %v6737_v30, %v6736_v62 }
 0x333   : > { %v6739_v21 = vpop.f32.mrf.mxu1  ;;  %v9680_v3 = vpop.f32.mrf.mxu0 }
 0x334   : > { %v9683_v12 = vadd.f32 %v6738_v10, %v9386_v61 }
 0x335   : > { %v6740_v49 = vpop.f32.mrf.mxu1  ;;  %v9685_v25 = vpop.f32.mrf.mxu0 }
 0x336   : > { %10337 = vst [vmem:[#allocation19_spill] sm:$0xff] %v9683_v12  ;;  %v6741_v47 = vadd.f32 %v6740_v49, %v6739_v21 }
 0x337   : > { %v9690_v20 = vpop.f32.mrf.mxu0 }
 0x338   : > { %v9688_v27 = vadd.f32 %v6741_v47, %v9390_v11  ;;  %10339 = vst [vmem:[#allocation52_spill] sm:$0xff] %v9690_v20 }
 0x339   : > { %v6742_v59 = vpop.f32.mrf.mxu1  ;;  %v9695_v62 = vpop.f32.mrf.mxu0 }
 0x33a   : > { %10338 = vst [vmem:[#allocation51_spill] sm:$0xff] %v9688_v27  ;;  %10340 = vst [vmem:[#allocation20_spill] sm:$0xff] %v9695_v62 }
 0x33b   : > { %v6743_v48 = vpop.f32.mrf.mxu1 }
 0x33c   : > { %v6744_v54 = vadd.f32 %v6743_v48, %v6742_v59 }
 0x33d   : > { %v6745_v52 = vpop.f32.mrf.mxu1 }
 0x33e   : > { %v9693_v30 = vadd.f32 %v6744_v54, %v9421_v16  ;;  %v9700_v49 = vpop.f32.mrf.mxu0 }
 0x33f   : > { %v6746_v61 = vpop.f32.mrf.mxu1  ;;  %10341 = vst [vmem:[#allocation34_spill] sm:$0xff] %v9700_v49 }
 0x340   : > { %v6747_v10 = vadd.f32 %v6746_v61, %v6745_v52  ;;  %v9705_v48 = vpop.f32.mrf.mxu0 }
 0x341   : > { %v6748_v12 = vpop.f32.mrf.mxu1 }
 0x342   : > { %v9698_v21 = vadd.f32 %v6747_v10, %v9425_v50  ;;  %v9710_v52 = vpop.f32.mrf.mxu0 }
 0x343   : > { %v6749_v11 = vpop.f32.mrf.mxu1  ;;  %10344 = vst [vmem:[#allocation53_spill] sm:$0xff] %v9710_v52 }
 0x344   : > { %v6750_v47 = vadd.f32 %v6749_v11, %v6748_v12  ;;  %v9715_v12 = vpop.f32.mrf.mxu0 }
 0x345   : > { %v6751_v27 = vpop.f32.mrf.mxu1  ;;  %10345 = vst [vmem:[#allocation54_spill] sm:$0xff] %v9715_v12 }
 0x346   : > { %v9703_v20 = vadd.f32 %v6750_v47, %v9454_v41 }
 0x347   : > { %v6752_v16 = vpop.f32.mrf.mxu1 }
 0x348   : > { %10342 = vst [vmem:[#allocation46_spill] sm:$0xff] %v9703_v20  ;;  %v6753_v54 = vadd.f32 %v6752_v16, %v6751_v27  ;;  %v9720_v16 = vpop.f32.mrf.mxu0 }
 0x349   : > { %v6754_v59 = vpop.f32.mrf.mxu1 }
 0x34a   : > { %v9708_v62 = vadd.f32 %v6753_v54, %v9458_v1  ;;  %v9722_v52 = vpop.f32.mrf.mxu0 }
 0x34b   : > { %v6755_v50 = vpop.f32.mrf.mxu1 }
 0x34c   : > { %10343 = vst [vmem:[#allocation35_spill] sm:$0xff] %v9708_v62  ;;  %v6756_v61 = vadd.f32 %v6755_v50, %v6754_v59 }
 0x34d   : > { %v6757_v10 = vpop.f32.mrf.mxu1 }
 0x34e   : > { %v9713_v49 = vadd.f32 %v6756_v61, %v9474_v24  ;;  %v9727_v61 = vpop.f32.mrf.mxu0 }
 0x34f   : > { %v6758_v41 = vpop.f32.mrf.mxu1 }
 0x350   : > { %v6759_v11 = vadd.f32 %v6758_v41, %v6757_v10 }
 0x352   : > { %v9718_v47 = vadd.f32 %v6759_v11, %v9481_v0  ;;  %v6760_v27 = vpop.f32.mrf.mxu1  ;;  %v9732_v11 = vpop.f32.mrf.mxu0 }
 0x354   : > { %10346 = vst [vmem:[#allocation21_spill] sm:$0xff] %v9718_v47  ;;  %v6761_v1 = vpop.f32.mrf.mxu1  ;;  %v9737_v20 = vpop.f32.mrf.mxu0 }
 0x355   : > { %v6762_v54 = vadd.f32 %v6761_v1, %v6760_v27 }
 0x356   : > { %v6763_v62 = vpop.f32.mrf.mxu1 }
 0x357   : > { %v9725_v59 = vadd.f32 %v6762_v54, %v9493_v18 }
 0x358   : > { %v6764_v24 = vpop.f32.mrf.mxu1 }
 0x359   : > { %10347 = vst [vmem:[#allocation17_spill] sm:$0xff] %v9725_v59  ;;  %v6765_v50 = vadd.f32 %v6764_v24, %v6763_v62  ;;  %v9742_v24 = vpop.f32.mrf.mxu0 }
 0x35b   : > { %v9730_v10 = vadd.f32 %v6765_v50, %v9495_v46 }
 0x35c   : > { %v6766_v0 = vpop.f32.mrf.mxu1 }
 0x35d   : > { %10348 = vst [vmem:[#allocation18_spill] sm:$0xff] %v9730_v10 }
 0x35e   : > { %v6767_v41 = vpop.f32.mrf.mxu1 }
 0x35f   : > { %v6768_v47 = vadd.f32 %v6767_v41, %v6766_v0  ;;  %v9747_v0 = vpop.f32.mrf.mxu0 }
 0x360   : > { %v6769_v12 = vpop.f32.mrf.mxu1 }
 0x361   : > { %v9735_v27 = vadd.f32 %v6768_v47, %v9497_v33 }
 0x362   : > { %v6770_v1 = vpop.f32.mrf.mxu1 }
 0x363   : > { %10349 = vst [vmem:[#allocation36_spill] sm:$0xff] %v9735_v27  ;;  %v6771_v18 = vadd.f32 %v6770_v1, %v6769_v12  ;;  %v9752_v12 = vpop.f32.mrf.mxu0 }
 0x365   : > { %v9740_v62 = vadd.f32 %v6771_v18, %v9503_v37  ;;  %v6772_v54 = vpop.f32.mrf.mxu1 }
 0x367   : > { %10350 = vst [vmem:[#allocation37_spill] sm:$0xff] %v9740_v62  ;;  %v6773_v46 = vpop.f32.mrf.mxu1  ;;  %v9754_v62 = vpop.f32.mrf.mxu0 }
 0x368   : > { %v6774_v50 = vadd.f32 %v6773_v46, %v6772_v54 }
 0x369   : > { %v6775_v10 = vpop.f32.mrf.mxu1 }
 0x36a   : > { %v9745_v59 = vadd.f32 %v6774_v50, %v9509_v53  ;;  %v9759_v50 = vpop.f32.mrf.mxu0 }
 0x36b   : > { %v6776_v33 = vpop.f32.mrf.mxu1 }
 0x36c   : > { %10351 = vst [vmem:[#allocation29_spill] sm:$0xff] %v9745_v59  ;;  %v6777_v47 = vadd.f32 %v6776_v33, %v6775_v10  ;;  %v9764_v33 = vpop.f32.mrf.mxu0 }
 0x36e   : > { %v9750_v41 = vadd.f32 %v6777_v47, %v9525_v9 }
 0x36f   : > { %v6778_v37 = vpop.f32.mrf.mxu1 }
 0x370   : > { %10352 = vst [vmem:[#allocation22_spill] sm:$0xff] %v9750_v41 }
 0x371   : > { %v6779_v1 = vpop.f32.mrf.mxu1 }
 0x372   : > { %v6780_v18 = vadd.f32 %v6779_v1, %v6778_v37  ;;  %v9769_v1 = vpop.f32.mrf.mxu0 }
 0x373   : > { %v6781_v27 = vpop.f32.mrf.mxu1 }
 0x374   : > { %v9757_v54 = vadd.f32 %v6780_v18, %v9544_v15 }
 0x375   : > { %v6782_v53 = vpop.f32.mrf.mxu1 }
 0x376   : > { %10353 = vst [vmem:[#allocation25_spill] sm:$0xff] %v9757_v54  ;;  %v6783_v46 = vadd.f32 %v6782_v53, %v6781_v27  ;;  %v9774_v53 = vpop.f32.mrf.mxu0 }
 0x378   : > { %v9762_v10 = vadd.f32 %v6783_v46, %v9558_v13  ;;  %v6784_v9 = vpop.f32.mrf.mxu1 }
 0x37a   : > { %10354 = vst [vmem:[#allocation24_spill] sm:$0xff] %v9762_v10  ;;  %v6785_v47 = vpop.f32.mrf.mxu1 }
 0x37b   : > { %v6786_v41 = vadd.f32 %v6785_v47, %v6784_v9  ;;  %v6820_v9 = vadd.f32 %v9592_v32, %v9590_v26 }
 0x37c   : > { %v6787_v59 = vpop.f32.mrf.mxu1 }
 0x37d   : > { %v9767_v37 = vadd.f32 %v6786_v41, %v9562_v7  ;;  %v9783_v41 = vpop.f32.mrf.mxu0 }
 0x37e   : > { %v6788_v15 = vpop.f32.mrf.mxu1 }
 0x37f   : > { %v6789_v18 = vadd.f32 %v6788_v15, %v6787_v59  ;;  %v5128_v59 = vadd.f32 %v6820_v9, %v9599_v35  ;;  %v9791_v15 = vld [vmem:[%s10149_s5] ss:$0 sm:$0xff]  ;;  %v9795_v26 = vpop.f32.mrf.mxu0 }
 0x380   : > { %v6790_v54 = vpop.f32.mrf.mxu1  ;;  %v9803_v35 = vld [vmem:[%s10150_s6] ss:$0 sm:$0xff] }
 0x381   : > { %v9772_v27 = vadd.f32 %v6789_v18, %v9572_v43 }
 0x382   : > { %v6791_v13 = vpop.f32.mrf.mxu1 }
 0x383   : > { %10355 = vst [vmem:[#allocation27_spill] sm:$0xff] %v9772_v27  ;;  %v6792_v46 = vadd.f32 %v6791_v13, %v6790_v54  ;;  %v6823_v54 = vadd.f32 %v9596_v31, %v9594_v36  ;;  %v6832_v27 = vadd.f32 %v9625_v39, %v9623_v34  ;;  %v9807_v31 = vpop.f32.mrf.mxu0 }
 0x384   : > { %v9776_v10 = vpop.f32.mrf.mxu1 }
 0x385   : > { %v9781_v7 = vadd.f32 %v6792_v46, %v9575_v29  ;;  %v5131_v46 = vadd.f32 %v6823_v54, %v9606_v8 }
 0x386   : > { %v9785_v47 = vpop.f32.mrf.mxu1 }
 0x388   : > { %v7022_v43 = vpop.f32.mrf.mxu1 }
 0x389   : > { %v5289_v18 = vadd.f32 %v7022_v43, %v5128_v59 }
 0x38a   : > { %v5280_v29 = vpop.f32.mrf.mxu1 }
 0x38b   : > { %v5416_v32 = vmul.f32 %v9791_v15, %v5289_v18  ;;  %v5281_v13 = vadd.f32 %v5280_v29, %v9632_v51  ;;  %v6826_v51 = vadd.f32 %v9603_v56, %v9601_v5  ;;  %v5144_v18 = vadd.f32 %v6832_v27, %v9639_v28  ;;  %v9822_v56 = vpop.f32.mrf.mxu0 }
 0x38c   : > { %v7023_v9 = vpop.f32.mrf.mxu1  ;;  %v6835_v29 = vadd.f32 %v9634_v55, %v9630_v44  ;;  %v6829_v5 = vadd.f32 %v9614_v2, %v9608_v60  ;;  %v6844_v60 = vadd.f32 %v9657_v17, %v9655_v45 }
 0x38d   : > { %v5292_v36 = vadd.f32 %v7023_v9, %v5131_v46  ;;  %v5414_v59 = vmul.f32 %v9791_v15, %v5281_v13  ;;  %v5455_v8 = vadd.f32 %v9803_v35, %v5416_v32  ;;  %v5136_v13 = vadd.f32 %v6826_v51, %v9621_v22 }
 0x38e   : > { %v5283_v43 = vpop.f32.mrf.mxu1  ;;  %v5147_v44 = vadd.f32 %v6835_v29, %v9646_v40  ;;  %v5139_v51 = vadd.f32 %v6829_v5, %v9628_v23  ;;  %v6838_v40 = vadd.f32 %v9643_v19, %v9641_v14 }
 0x38f   : > { %v5417_v54 = vmul.f32 %v9791_v15, %v5292_v36  ;;  %v5284_v34 = vadd.f32 %v5283_v43, %v9636_v42  ;;  %v5453_v32 = vadd.f32 %v9803_v35, %v5414_v59  ;;  %v5487_v55 = vmax.f32 %v5455_v8, 0.0  ;;  %v9835_v8 = vpop.f32.mrf.mxu0 }
 0x390   : > { %v7026_v39 = vpop.f32.mrf.mxu1  ;;  %v5152_v5 = vadd.f32 %v6838_v40, %v9653_v57 }
 0x391   : > { %v5456_v46 = vadd.f32 %v9803_v35, %v5417_v54  ;;  %v5305_v9 = vadd.f32 %v7026_v39, %v5144_v18  ;;  %v5415_v28 = vmul.f32 %v9791_v15, %v5284_v34  ;;  %v5485_v29 = vmax.f32 %v5453_v32, 0.0 }
 0x392   : > { %v5296_v27 = vpop.f32.mrf.mxu1 }
 0x393   : > { %v5488_v42 = vmax.f32 %v5456_v46, 0.0  ;;  %v5420_v36 = vmul.f32 %v9791_v15, %v5305_v9  ;;  %v5297_v43 = vadd.f32 %v5296_v27, %v5136_v13  ;;  %v5454_v54 = vadd.f32 %v9803_v35, %v5415_v28 }
 0x394   : > { %v7027_v22 = vpop.f32.mrf.mxu1  ;;  %v5160_v13 = vadd.f32 %v6844_v60, %v9667_v6  ;;  %v6841_v27 = vadd.f32 %v9650_v58, %v9648_v63  ;;  %v6856_v58 = vadd.f32 %v9685_v25, %v9680_v3 }
 0x395   : > { %v5518_v2 = vpack.c.bf16 %v5488_v42, %v5487_v55  ;;  %v5418_v59 = vmul.f32 %v9791_v15, %v5297_v43  ;;  %v5308_v18 = vadd.f32 %v7027_v22, %v5147_v44  ;;  %v5486_v34 = vmax.f32 %v5454_v54, 0.0  ;;  %v10356_v44 = vld [vmem:[#allocation49_spill] sm:$0xff]  ;;  %v9848_v42 = vpop.f32.mrf.mxu0 }
 0x396   : > { %v5299_v39 = vpop.f32.mrf.mxu1  ;;  %v5459_v46 = vadd.f32 %v9803_v35, %v5420_v36  ;;  %v6847_v55 = vadd.f32 %v10356_v44, %v9662_v4 }
 0x397   : > { %v5421_v9 = vmul.f32 %v9791_v15, %v5308_v18  ;;  %v5300_v23 = vadd.f32 %v5299_v39, %v5139_v51  ;;  %v5517_v17 = vpack.c.bf16 %v5486_v34, %v5485_v29  ;;  %v5457_v28 = vadd.f32 %v9803_v35, %v5418_v59  ;;  %v10357_v59 = vld [vmem:[#allocation48_spill] sm:$0xff]  ;;  %v9856_v29 = vpop.f32.mrf.mxu0 }
 0x398   : > { %v7030_v45 = vpop.f32.mrf.mxu1  ;;  %v5491_v36 = vmax.f32 %v5459_v46, 0.0  ;;  %v5163_v51 = vadd.f32 %v6847_v55, %v9674_v38  ;;  %v5155_v63 = vadd.f32 %v6841_v27, %v10357_v59  ;;  %v5176_v38 = vadd.f32 %v6856_v58, %v9693_v30  ;;  %v10362_v27 = vld [vmem:[#allocation19_spill] sm:$0xff]  ;;  %v10363_v55 = vld [vmem:[#allocation33_spill] sm:$0xff] }
 0x399   : > { %v5460_v14 = vadd.f32 %v9803_v35, %v5421_v9  ;;  %v5419_v19 = vmul.f32 %v9791_v15, %v5300_v23  ;;  %v5321_v32 = vadd.f32 %v7030_v45, %v5160_v13  ;;  %7068 = vmatprep.mubr.bf16.mxu0 %v5517_v17  ;;  %v5489_v4 = vmax.f32 %v5457_v28, 0.0  ;;  %v10359_v9 = vld [vmem:[#allocation31_spill] sm:$0xff]  ;;  %v10361_v28 = vld [vmem:[#allocation20_spill] sm:$0xff] }
 0x39a   : > { %v5312_v6 = vpop.f32.mrf.mxu1  ;;  %7069 = vmatmul.mubr.bf16.vlgmr.msra.gmra.mxu0 %v5518_v2  ;;  %v10358_v2 = vld [vmem:[#allocation32_spill] sm:$0xff] }
 0x39b   : > { %v5492_v43 = vmax.f32 %v5460_v14, 0.0  ;;  %v5458_v57 = vadd.f32 %v9803_v35, %v5419_v19  ;;  %v5313_v54 = vadd.f32 %v5312_v6, %v5152_v5  ;;  %v5424_v22 = vmul.f32 %v9791_v15, %v5321_v32  ;;  %v10360_v5 = vld [vmem:[#allocation52_spill] sm:$0xff]  ;;  %v10364_v6 = vld [vmem:[#allocation50_spill] sm:$0xff] }
 0x39c   : > { %v7031_v60 = vpop.f32.mrf.mxu1  ;;  %v6850_v23 = vadd.f32 %v10359_v9, %v10358_v2  ;;  %v6859_v14 = vadd.f32 %v10361_v28, %v10360_v5  ;;  %v10367_v28 = vld [vmem:[#allocation46_spill] sm:$0xff] }
 0x39d   : > { %v5520_v18 = vpack.c.bf16 %v5492_v43, %v5491_v36  ;;  %v5490_v40 = vmax.f32 %v5458_v57, 0.0  ;;  %v5422_v34 = vmul.f32 %v9791_v15, %v5313_v54  ;;  %v5324_v39 = vadd.f32 %v7031_v60, %v5163_v51  ;;  %v9870_v43 = vpop.f32.mrf.mxu0 }
 0x39e   : > { %v5315_v46 = vpop.f32.mrf.mxu1  ;;  %v5463_v17 = vadd.f32 %v9803_v35, %v5424_v22  ;;  %v5168_v44 = vadd.f32 %v6850_v23, %v10362_v27  ;;  %v6853_v36 = vadd.f32 %v10364_v6, %v10363_v55  ;;  %v5179_v59 = vadd.f32 %v6859_v14, %v9698_v21  ;;  %v10366_v23 = vld [vmem:[#allocation34_spill] sm:$0xff] }
 0x39f   : > { %v5316_v13 = vadd.f32 %v5315_v46, %v5155_v63  ;;  %v5519_v45 = vpack.c.bf16 %v5490_v40, %v5489_v4  ;;  %v5425_v3 = vmul.f32 %v9791_v15, %v5324_v39  ;;  %v5461_v30 = vadd.f32 %v9803_v35, %v5422_v34  ;;  %v10365_v40 = vld [vmem:[#allocation51_spill] sm:$0xff]  ;;  %v10369_v55 = vld [vmem:[#allocation54_spill] sm:$0xff] }
 0x3a0   : > { %v7034_v25 = vpop.f32.mrf.mxu1  ;;  %v5495_v63 = vmax.f32 %v5463_v17, 0.0  ;;  %v5171_v39 = vadd.f32 %v6853_v36, %v10365_v40  ;;  %v6868_v46 = vadd.f32 %v9722_v52, %v9720_v16  ;;  %v6871_v36 = vadd.f32 %v9732_v11, %v9727_v61 }
 0x3a1   : > { %v5423_v19 = vmul.f32 %v9791_v15, %v5316_v13  ;;  %v5337_v32 = vadd.f32 %v7034_v25, %v5176_v38  ;;  %7072 = vmatprep.mubr.bf16.mxu0 %v5519_v45  ;;  %v5464_v57 = vadd.f32 %v9803_v35, %v5425_v3  ;;  %v6862_v13 = vadd.f32 %v9705_v48, %v10366_v23  ;;  %v9883_v38 = vpop.f32.mrf.mxu0 }
 0x3a2   : > { %v5328_v54 = vpop.f32.mrf.mxu1  ;;  %7073 = vmatmul.mubr.bf16.gmra.mxu0 %v5520_v18  ;;  %v5493_v18 = vmax.f32 %v5461_v30, 0.0  ;;  %v5192_v5 = vadd.f32 %v6868_v46, %v9713_v49  ;;  %v6880_v61 = vadd.f32 %v9759_v50, %v9754_v62 }
 0x3a3   : > { %v5462_v22 = vadd.f32 %v9803_v35, %v5423_v19  ;;  %v5428_v51 = vmul.f32 %v9791_v15, %v5337_v32  ;;  %v5329_v60 = vadd.f32 %v5328_v54, %v5168_v44  ;;  %v5496_v58 = vmax.f32 %v5464_v57, 0.0  ;;  %v10368_v44 = vld [vmem:[#allocation53_spill] sm:$0xff]  ;;  %v9896_v30 = vpop.f32.mrf.mxu0 }
 0x3a4   : > { %v7035_v4 = vpop.f32.mrf.mxu1  ;;  %v5184_v14 = vadd.f32 %v6862_v13, %v10367_v28  ;;  %v6865_v6 = vadd.f32 %v10369_v55, %v10368_v44  ;;  %v6874_v13 = vadd.f32 %v9742_v24, %v9737_v20  ;;  %v10373_v28 = vld [vmem:[#allocation17_spill] sm:$0xff]  ;;  %v6877_v20 = vadd.f32 %v9752_v12, %v9747_v0 }
 0x3a5   : > { %v5494_v34 = vmax.f32 %v5462_v22, 0.0  ;;  %v5426_v2 = vmul.f32 %v9791_v15, %v5329_v60  ;;  %v5340_v9 = vadd.f32 %v7035_v4, %v5179_v59  ;;  %v5522_v45 = vpack.c.bf16 %v5496_v58, %v5495_v63  ;;  %v10370_v59 = vld [vmem:[#allocation21_spill] sm:$0xff]  ;;  %v10371_v4 = vld [vmem:[#allocation35_spill] sm:$0xff] }
 0x3a6   : > { %v5331_v21 = vpop.f32.mrf.mxu1  ;;  %v5467_v17 = vadd.f32 %v9803_v35, %v5428_v51  ;;  %v5195_v63 = vadd.f32 %v6871_v36, %v10370_v59  ;;  %v5187_v40 = vadd.f32 %v6865_v6, %v10371_v4  ;;  %v6892_v0 = vadd.f32 %v9835_v8, %v9822_v56  ;;  %v10377_v8 = vld [vmem:[#allocation29_spill] sm:$0xff] }
 0x3a7   : > { %v5429_v3 = vmul.f32 %v9791_v15, %v5340_v9  ;;  %v5332_v25 = vadd.f32 %v5331_v21, %v5171_v39  ;;  %v5521_v16 = vpack.c.bf16 %v5494_v34, %v5493_v18  ;;  %v5465_v19 = vadd.f32 %v9803_v35, %v5426_v2  ;;  %v9904_v34 = vpop.f32.mrf.mxu0 }
 0x3a8   : > { %v7038_v52 = vpop.f32.mrf.mxu1  ;;  %v5499_v57 = vmax.f32 %v5467_v17, 0.0 }
 0x3a9   : > { %v5468_v48 = vadd.f32 %v9803_v35, %v5429_v3  ;;  %v5427_v32 = vmul.f32 %v9791_v15, %v5332_v25  ;;  %v5353_v27 = vadd.f32 %v7038_v52, %v5192_v5  ;;  %7076 = vmatprep.mubr.bf16.mxu0 %v5521_v16  ;;  %v5497_v11 = vmax.f32 %v5465_v19, 0.0  ;;  %v6902_v3 = vpop.f32.mrf.mxu0 }
 0x3aa   : > { %v5344_v49 = vpop.f32.mrf.mxu1  ;;  %7077 = vmatmul.mubr.bf16.gmra.mxu0 %v5522_v45  ;;  %v10372_v45 = vld [vmem:[#allocation36_spill] sm:$0xff]  ;;  %v6883_v5 = vadd.f32 %v9769_v1, %v9764_v33  ;;  %v10374_v33 = vld [vmem:[#allocation37_spill] sm:$0xff] }
 0x3ab   : > { %v5500_v54 = vmax.f32 %v5468_v48, 0.0  ;;  %v5466_v22 = vadd.f32 %v9803_v35, %v5427_v32  ;;  %v5345_v51 = vadd.f32 %v5344_v49, %v5184_v14  ;;  %v5432_v60 = vmul.f32 %v9791_v15, %v5353_v27  ;;  %v6903_v55 = vpop.f32.mrf.mxu0 }
 0x3ac   : > { %v7039_v58 = vpop.f32.mrf.mxu1  ;;  %v5208_v21 = vadd.f32 %v6880_v61, %v10372_v45  ;;  %v5200_v14 = vadd.f32 %v6874_v13, %v10373_v28  ;;  %v5211_v1 = vadd.f32 %v6883_v5, %v10374_v33  ;;  %v6895_v45 = vadd.f32 %v9856_v29, %v9848_v42 }
 0x3ad   : > { %v5524_v39 = vpack.c.bf16 %v5500_v54, %v5499_v57  ;;  %v5498_v46 = vmax.f32 %v5466_v22, 0.0  ;;  %v5430_v2 = vmul.f32 %v9791_v15, %v5345_v51  ;;  %v5356_v9 = vadd.f32 %v7039_v58, %v5195_v63  ;;  %v10375_v57 = vld [vmem:[#allocation18_spill] sm:$0xff] }
 0x3ae   : > { %v5347_v23 = vpop.f32.mrf.mxu1  ;;  %v5471_v25 = vadd.f32 %v9803_v35, %v5432_v60  ;;  %v5203_v54 = vadd.f32 %v6877_v20, %v10375_v57  ;;  %v6886_v60 = vadd.f32 %v9783_v41, %v9774_v53 }
 0x3af   : > { %v5348_v18 = vadd.f32 %v5347_v23, %v5187_v40  ;;  %v5523_v17 = vpack.c.bf16 %v5498_v46, %v5497_v11  ;;  %v5433_v62 = vmul.f32 %v9791_v15, %v5356_v9  ;;  %v5469_v24 = vadd.f32 %v9803_v35, %v5430_v2  ;;  %v10376_v11 = vld [vmem:[#allocation25_spill] sm:$0xff]  ;;  %v6905_v46 = vpop.f32.mrf.mxu0 }
 0x3b0   : > { %v7042_v50 = vpop.f32.mrf.mxu1  ;;  %v5503_v6 = vmax.f32 %v5471_v25, 0.0  ;;  %v5216_v9 = vadd.f32 %v6886_v60, %v10377_v8 }
 0x3b1   : > { %v5431_v52 = vmul.f32 %v9791_v15, %v5348_v18  ;;  %v5369_v16 = vadd.f32 %v7042_v50, %v5208_v21  ;;  %7080 = vmatprep.mubr.bf16.mxu0 %v5523_v17  ;;  %v5472_v19 = vadd.f32 %v9803_v35, %v5433_v62  ;;  %v5501_v59 = vmax.f32 %v5469_v24, 0.0 }
 0x3b2   : > { %v5360_v48 = vpop.f32.mrf.mxu1  ;;  %7081 = vmatmul.mubr.bf16.gmra.mxu0 %v5524_v39  ;;  %v5224_v39 = vadd.f32 %v6892_v0, %v10376_v11  ;;  %v6889_v18 = vadd.f32 %v9807_v31, %v9795_v26  ;;  %v6904_v21 = vadd.f32 %v6903_v55, %v6902_v3  ;;  %v6795_v17 = vadd.f32 %v9785_v47, %v9776_v10  ;;  %v10379_v3 = vld [vmem:[#allocation22_spill] sm:$0xff]  ;;  %v10380_v47 = vld [vmem:[#allocation47_spill] sm:$0xff] }
 0x3b3   : > { %v5470_v32 = vadd.f32 %v9803_v35, %v5431_v52  ;;  %v5436_v27 = vmul.f32 %v9791_v15, %v5369_v16  ;;  %v5361_v44 = vadd.f32 %v5360_v48, %v5200_v14  ;;  %v5504_v36 = vmax.f32 %v5472_v19, 0.0  ;;  %v6906_v16 = vpop.f32.mrf.mxu0  ;;  %v10378_v14 = vld [vmem:[#allocation24_spill] sm:$0xff] }
 0x3b4   : > { %v7043_v49 = vpop.f32.mrf.mxu1  ;;  %v5227_v26 = vadd.f32 %v6895_v45, %v10378_v14  ;;  %v5219_v24 = vadd.f32 %v6889_v18, %v10379_v3  ;;  %v6898_v10 = vadd.f32 %v9883_v38, %v9870_v43  ;;  %v5082_v19 = vadd.f32 %v6795_v17, %v10380_v47  ;;  %v7405_v14 = vld [vmem:[%s7816_s12] sm:$0xff]  }
 0x3b5   : > { %v5502_v12 = vmax.f32 %v5470_v32, 0.0  ;;  %v5434_v22 = vmul.f32 %v9791_v15, %v5361_v44  ;;  %v5372_v51 = vadd.f32 %v7043_v49, %v5211_v1  ;;  %v5526_v63 = vpack.c.bf16 %v5504_v36, %v5503_v6 }
 0x3b6   : > { %v5363_v58 = vpop.f32.mrf.mxu1  ;;  %v5475_v4 = vadd.f32 %v9803_v35, %v5436_v27  ;;  %v6907_v44 = vadd.f32 %v6906_v16, %v6905_v46  ;;  %v5240_v1 = vadd.f32 %v6904_v21, %v9781_v7  ;;  %v5232_v43 = vadd.f32 %v6898_v10, %v9767_v37 }
 0x3b7   : > { %v5437_v40 = vmul.f32 %v9791_v15, %v5372_v51  ;;  %v5364_v61 = vadd.f32 %v5363_v58, %v5203_v54  ;;  %v5525_v56 = vpack.c.bf16 %v5502_v12, %v5501_v59  ;;  %v5473_v23 = vadd.f32 %v9803_v35, %v5434_v22 }
 0x3b8   : > { %v7046_v2 = vpop.f32.mrf.mxu1  ;;  %v5507_v62 = vmax.f32 %v5475_v4, 0.0  ;;  %v6901_v38 = vadd.f32 %v9904_v34, %v9896_v30  ;;  %v5243_v59 = vadd.f32 %v6907_v44, %v5082_v19  ;;  %v10381_v30 = vld [vmem:[#allocation27_spill] sm:$0xff]  ;;  %v456_v47 = vunpack.c.h.bf16 %v7405_v14 }
 0x3b9   : > { %v5476_v13 = vadd.f32 %v9803_v35, %v5437_v40  ;;  %v5435_v53 = vmul.f32 %v9791_v15, %v5364_v61  ;;  %v5385_v41 = vadd.f32 %v7046_v2, %v5224_v39  ;;  %7084 = vmatprep.mubr.bf16.mxu0 %v5525_v56  ;;  %v5505_v20 = vmax.f32 %v5473_v23, 0.0 }
 0x3ba   : > { %v5376_v25 = vpop.f32.mrf.mxu1  ;;  %7085 = vmatmul.mubr.bf16.gmra.mxu0 %v5526_v63  ;;  %v5235_v34 = vadd.f32 %v6901_v38, %v10381_v30 }
 0x3bb   : > { %v5508_v50 = vmax.f32 %v5476_v13, 0.0  ;;  %v5474_v5 = vadd.f32 %v9803_v35, %v5435_v53  ;;  %v5377_v52 = vadd.f32 %v5376_v25, %v5216_v9  ;;  %v5440_v28 = vmul.f32 %v9791_v15, %v5385_v41 }
 0x3bc   : > { %v7047_v31 = vpop.f32.mrf.mxu1 }
 0x3bd   : > { %v5528_v42 = vpack.c.bf16 %v5508_v50, %v5507_v62  ;;  %v5506_v29 = vmax.f32 %v5474_v5, 0.0  ;;  %v5438_v48 = vmul.f32 %v9791_v15, %v5377_v52  ;;  %v5388_v32 = vadd.f32 %v7047_v31, %v5227_v26  ;;  %v9972_v50 = vld [vmem:[%s10152_s8] ss:$0 sm:$0xff] }
 0x3be   : > { %v5379_v27 = vpop.f32.mrf.mxu1  ;;  %v5479_v6 = vadd.f32 %v9803_v35, %v5440_v28  ;;  %v9977_v5 = vld [vmem:[%s10153_s9] ss:$0 sm:$0xff]  ;;  %v455_v26 = vunpack.c.l.bf16 %v7405_v14 }
 0x3bf   : > { %v5380_v33 = vadd.f32 %v5379_v27, %v5219_v24  ;;  %v5527_v55 = vpack.c.bf16 %v5506_v29, %v5505_v20  ;;  %v5441_v36 = vmul.f32 %v9791_v15, %v5388_v32  ;;  %v5477_v0 = vadd.f32 %v9803_v35, %v5438_v48 }
 0x3c0   : > { %v7050_v49 = vpop.f32.mrf.mxu1  ;;  %v5511_v63 = vmax.f32 %v5479_v6, 0.0 }
 0x3c1   : > { %v5439_v57 = vmul.f32 %v9791_v15, %v5380_v33  ;;  %v5401_v54 = vadd.f32 %v7050_v49, %v5240_v1  ;;  %7088 = vmatprep.mubr.bf16.mxu0 %v5527_v55  ;;  %v5480_v12 = vadd.f32 %v9803_v35, %v5441_v36  ;;  %v5509_v11 = vmax.f32 %v5477_v0, 0.0  ;;  %v7406_v33 = vld [vmem:[%s7816_s12 + $0x18] sm:$0xff]  }
 0x3c2   : > { %v5392_v7 = vpop.f32.mrf.mxu1  ;;  %7089 = vmatmul.mubr.bf16.gmra.mxu0 %v5528_v42  ;;  %v461_v1 = vunpack.c.l.bf16 %v7406_v33 }
 0x3c3   : > { %v5478_v22 = vadd.f32 %v9803_v35, %v5439_v57  ;;  %v5444_v51 = vmul.f32 %v9791_v15, %v5401_v54  ;;  %v5393_v60 = vadd.f32 %v5392_v7, %v5232_v43  ;;  %v5512_v58 = vmax.f32 %v5480_v12, 0.0  ;;  %v7407_v54 = vld [vmem:[%s7816_s12 + $0x10] sm:$0xff]  }
 0x3c4   : > { %v7051_v4 = vpop.f32.mrf.mxu1  ;;  %v459_v43 = vunpack.c.l.bf16 %v7407_v54 }
 0x3c5   : > { %v5510_v40 = vmax.f32 %v5478_v22, 0.0  ;;  %v5442_v37 = vmul.f32 %v9791_v15, %v5393_v60  ;;  %v5404_v61 = vadd.f32 %v7051_v4, %v5243_v59  ;;  %v5530_v39 = vpack.c.bf16 %v5512_v58, %v5511_v63 }
 0x3c6   : > { %v5395_v46 = vpop.f32.mrf.mxu1  ;;  %v5483_v2 = vadd.f32 %v9803_v35, %v5444_v51  ;;  %v462_v51 = vunpack.c.h.bf16 %v7406_v33 }
 0x3c7   : > { %v5445_v56 = vmul.f32 %v9791_v15, %v5404_v61  ;;  %v5396_v8 = vadd.f32 %v5395_v46, %v5235_v34  ;;  %v5529_v9 = vpack.c.bf16 %v5510_v40, %v5509_v11  ;;  %v5481_v23 = vadd.f32 %v9803_v35, %v5442_v37 }
 0x3c8   : > { %v5515_v41 = vmax.f32 %v5483_v2, 0.0  ;;  %v460_v40 = vunpack.c.h.bf16 %v7407_v54 }
 0x3c9   : > { %v5484_v13 = vadd.f32 %v9803_v35, %v5445_v56  ;;  %v5443_v53 = vmul.f32 %v9791_v15, %v5396_v8  ;;  %7092 = vmatprep.mubr.bf16.mxu0 %v5529_v9  ;;  %v5513_v21 = vmax.f32 %v5481_v23, 0.0 }
 0x3ca   : > { %7093 = vmatmul.mubr.bf16.gmra.mxu0 %v5530_v39  ;;  %v7408_v39 = vld [vmem:[%s7816_s12 + $0x28] sm:$0xff]  }
 0x3cb   : > { %v5516_v18 = vmax.f32 %v5484_v13, 0.0  ;;  %v5482_v45 = vadd.f32 %v9803_v35, %v5443_v53  ;;  %v7404_v35 = vld [vmem:[%s7816_s12 + $0x8] sm:$0xff]   ;;  %v465_v46 = vunpack.c.l.bf16 %v7408_v39  ;;  %v7409_v13 = vld [vmem:[%s7816_s12 + $0x20] sm:$0xff]  }
 0x3cc   : > { %v457_v52 = vunpack.c.l.bf16 %v7404_v35  ;;  %v458_v29 = vunpack.c.h.bf16 %v7404_v35  ;;  %v463_v53 = vunpack.c.l.bf16 %v7409_v13 }
 0x3cd   : > { %v5532_v17 = vpack.c.bf16 %v5516_v18, %v5515_v41  ;;  %v5514_v25 = vmax.f32 %v5482_v45, 0.0 }
 0x3cf   : > { %v5531_v62 = vpack.c.bf16 %v5514_v25, %v5513_v21  ;;  %v466_v25 = vunpack.c.h.bf16 %v7408_v39 }
 0x3d1   : > { %7096 = vmatprep.mubr.bf16.mxu0 %v5531_v62 }
 0x3d2   : > { %7097 = vmatmul.mubr.bf16.gmra.mxu0 %v5532_v17 }
 0x45a   : > { %v7070_v15 = vpop.f32.mrf.mxu0 }
 0x45b   : > { %v5767_v16 = vmul.f32 %v7070_v15, %v9972_v50 }
 0x45c   : > { %v5631_v28 = vpop.f32.mrf.mxu0 }
 0x45d   : > { %v5806_v31 = vadd.f32 %v9977_v5, %v5767_v16  ;;  %v5765_v20 = vmul.f32 %v9972_v50, %v5631_v28  ;;  %v464_v28 = vunpack.c.h.bf16 %v7409_v13 }
 0x45e   : > { %v7071_v42 = vpop.f32.mrf.mxu0 }
 0x45f   : > { %v5838_v3 = vadd.f32 %v5806_v31, %v457_v52  ;;  %v5804_v24 = vadd.f32 %v9977_v5, %v5765_v20  ;;  %v5768_v10 = vmul.f32 %v7071_v42, %v9972_v50 }
 0x460   : > { %v5634_v19 = vpop.f32.mrf.mxu0 }
 0x461   : > { %v5870_v48 = vmax.f32 %v5838_v3, 0.0  ;;  %v5836_v32 = vadd.f32 %v5804_v24, %v455_v26  ;;  %v5807_v27 = vadd.f32 %v9977_v5, %v5768_v10  ;;  %v5766_v44 = vmul.f32 %v9972_v50, %v5634_v19 }
 0x462   : > { %v7074_v55 = vpop.f32.mrf.mxu0 }
 0x463   : > { %5902 = vst [vmem:[%s9990_s11 + $0x10] sm:$0xff] %v5870_v48  ;;  %v5868_v6 = vmax.f32 %v5836_v32, 0.0  ;;  %v5839_v36 = vadd.f32 %v5807_v27, %v458_v29  ;;  %v5805_v49 = vadd.f32 %v9977_v5, %v5766_v44  ;;  %v5771_v57 = vmul.f32 %v7074_v55, %v9972_v50  ;;  %v7410_v29 = vld [vmem:[%s7816_s12 + $0x38] sm:$0xff]   ;;  %v7411_v32 = vld [vmem:[%s7816_s12 + $0x30] sm:$0xff]  }
 0x464   : > { %v5647_v38 = vpop.f32.mrf.mxu0  ;;  %v469_v3 = vunpack.c.l.bf16 %v7410_v29  ;;  %v467_v27 = vunpack.c.l.bf16 %v7411_v32 }
 0x465   : > { %5900 = vst [vmem:[%s9990_s11] sm:$0xff] %v5868_v6  ;;  %v5871_v0 = vmax.f32 %v5839_v36, 0.0  ;;  %v5837_v12 = vadd.f32 %v5805_v49, %v456_v47  ;;  %v5810_v7 = vadd.f32 %v9977_v5, %v5771_v57  ;;  %v5769_v22 = vmul.f32 %v9972_v50, %v5647_v38 }
 0x466   : > { %v7075_v60 = vpop.f32.mrf.mxu0  ;;  %v470_v36 = vunpack.c.h.bf16 %v7410_v29 }
 0x467   : > { %5903 = vst [vmem:[%s9990_s11 + $0x18] sm:$0xff] %v5871_v0  ;;  %v5869_v59 = vmax.f32 %v5837_v12, 0.0  ;;  %v5842_v63 = vadd.f32 %v5810_v7, %v461_v1  ;;  %v5808_v58 = vadd.f32 %v9977_v5, %v5769_v22  ;;  %v5772_v4 = vmul.f32 %v7075_v60, %v9972_v50 }
 0x468   : > { %v5650_v37 = vpop.f32.mrf.mxu0  ;;  %v468_v0 = vunpack.c.h.bf16 %v7411_v32 }
 0x469   : > { %5901 = vst [vmem:[%s9990_s11 + $0x8] sm:$0xff] %v5869_v59  ;;  %v5874_v61 = vmax.f32 %v5842_v63, 0.0  ;;  %v5840_v30 = vadd.f32 %v5808_v58, %v459_v43  ;;  %v5811_v34 = vadd.f32 %v9977_v5, %v5772_v4  ;;  %v5770_v11 = vmul.f32 %v9972_v50, %v5650_v37  ;;  %v7412_v59 = vld [vmem:[%s7816_s12 + $0x48] sm:$0xff]  }
 0x46a   : > { %v7078_v2 = vpop.f32.mrf.mxu0  ;;  %v473_v63 = vunpack.c.l.bf16 %v7412_v59 }
 0x46b   : > { %5906 = vst [vmem:[%s9990_s11 + $0x30] sm:$0xff] %v5874_v61  ;;  %v5872_v56 = vmax.f32 %v5840_v30, 0.0  ;;  %v5843_v8 = vadd.f32 %v5811_v34, %v462_v51  ;;  %v5809_v9 = vadd.f32 %v9977_v5, %v5770_v11  ;;  %v5775_v23 = vmul.f32 %v7078_v2, %v9972_v50  ;;  %v7413_v30 = vld [vmem:[%s7816_s12 + $0x40] sm:$0xff]  }
 0x46c   : > { %v5663_v41 = vpop.f32.mrf.mxu0  ;;  %v471_v34 = vunpack.c.l.bf16 %v7413_v30 }
 0x46d   : > { %5904 = vst [vmem:[%s9990_s11 + $0x20] sm:$0xff] %v5872_v56  ;;  %v5875_v18 = vmax.f32 %v5843_v8, 0.0  ;;  %v5841_v45 = vadd.f32 %v5809_v9, %v460_v40  ;;  %v5814_v21 = vadd.f32 %v9977_v5, %v5775_v23  ;;  %v5773_v17 = vmul.f32 %v9972_v50, %v5663_v41 }
 0x46e   : > { %v7079_v62 = vpop.f32.mrf.mxu0  ;;  %v474_v8 = vunpack.c.h.bf16 %v7412_v59 }
 0x46f   : > { %5907 = vst [vmem:[%s9990_s11 + $0x38] sm:$0xff] %v5875_v18  ;;  %v5873_v15 = vmax.f32 %v5841_v45, 0.0  ;;  %v5846_v35 = vadd.f32 %v5814_v21, %v465_v46  ;;  %v5812_v52 = vadd.f32 %v9977_v5, %v5773_v17  ;;  %v5776_v16 = vmul.f32 %v7079_v62, %v9972_v50 }
 0x470   : > { %v5666_v14 = vpop.f32.mrf.mxu0  ;;  %v472_v18 = vunpack.c.h.bf16 %v7413_v30 }
 0x471   : > { %5905 = vst [vmem:[%s9990_s11 + $0x28] sm:$0xff] %v5873_v15  ;;  %v5878_v26 = vmax.f32 %v5846_v35, 0.0  ;;  %v5844_v31 = vadd.f32 %v5812_v52, %v463_v53  ;;  %v5815_v20 = vadd.f32 %v9977_v5, %v5776_v16  ;;  %v5774_v42 = vmul.f32 %v9972_v50, %v5666_v14  ;;  %v7414_v15 = vld [vmem:[%s7816_s12 + $0x58] sm:$0xff]  }
 0x472   : > { %v7082_v24 = vpop.f32.mrf.mxu0  ;;  %v477_v35 = vunpack.c.l.bf16 %v7414_v15 }
 0x473   : > { %5910 = vst [vmem:[%s9990_s11 + $0x50] sm:$0xff] %v5878_v26  ;;  %v5876_v10 = vmax.f32 %v5844_v31, 0.0  ;;  %v5847_v47 = vadd.f32 %v5815_v20, %v466_v25  ;;  %v5813_v19 = vadd.f32 %v9977_v5, %v5774_v42  ;;  %v5779_v48 = vmul.f32 %v7082_v24, %v9972_v50  ;;  %v7415_v31 = vld [vmem:[%s7816_s12 + $0x50] sm:$0xff]  }
 0x474   : > { %v5679_v44 = vpop.f32.mrf.mxu0  ;;  %v475_v20 = vunpack.c.l.bf16 %v7415_v31 }
 0x475   : > { %5908 = vst [vmem:[%s9990_s11 + $0x40] sm:$0xff] %v5876_v10  ;;  %v5879_v33 = vmax.f32 %v5847_v47, 0.0  ;;  %v5845_v1 = vadd.f32 %v5813_v19, %v464_v28  ;;  %v5818_v55 = vadd.f32 %v9977_v5, %v5779_v48  ;;  %v5777_v6 = vmul.f32 %v9972_v50, %v5679_v44 }
 0x476   : > { %v7083_v49 = vpop.f32.mrf.mxu0  ;;  %v478_v47 = vunpack.c.h.bf16 %v7414_v15 }
 0x477   : > { %5911 = vst [vmem:[%s9990_s11 + $0x58] sm:$0xff] %v5879_v33  ;;  %v5877_v57 = vmax.f32 %v5845_v1, 0.0  ;;  %v5850_v54 = vadd.f32 %v5818_v55, %v469_v3  ;;  %v5816_v43 = vadd.f32 %v9977_v5, %v5777_v6  ;;  %v5780_v38 = vmul.f32 %v7083_v49, %v9972_v50 }
 0x478   : > { %v5682_v12 = vpop.f32.mrf.mxu0  ;;  %v476_v33 = vunpack.c.h.bf16 %v7415_v31 }
 0x479   : > { %5909 = vst [vmem:[%s9990_s11 + $0x48] sm:$0xff] %v5877_v57  ;;  %v5882_v7 = vmax.f32 %v5850_v54, 0.0  ;;  %v5848_v22 = vadd.f32 %v5816_v43, %v467_v27  ;;  %v5819_v51 = vadd.f32 %v9977_v5, %v5780_v38  ;;  %v5778_v60 = vmul.f32 %v9972_v50, %v5682_v12  ;;  %v7416_v57 = vld [vmem:[%s7816_s12 + $0x68] sm:$0xff]  }
 0x47a   : > { %v7086_v58 = vpop.f32.mrf.mxu0  ;;  %v481_v54 = vunpack.c.l.bf16 %v7416_v57 }
 0x47b   : > { %5914 = vst [vmem:[%s9990_s11 + $0x70] sm:$0xff] %v5882_v7  ;;  %v5880_v4 = vmax.f32 %v5848_v22, 0.0  ;;  %v5851_v40 = vadd.f32 %v5819_v51, %v470_v36  ;;  %v5817_v37 = vadd.f32 %v9977_v5, %v5778_v60  ;;  %v5783_v61 = vmul.f32 %v7086_v58, %v9972_v50  ;;  %v7417_v22 = vld [vmem:[%s7816_s12 + $0x60] sm:$0xff]  }
 0x47c   : > { %v5695_v11 = vpop.f32.mrf.mxu0  ;;  %v479_v51 = vunpack.c.l.bf16 %v7417_v22 }
 0x47d   : > { %5912 = vst [vmem:[%s9990_s11 + $0x60] sm:$0xff] %v5880_v4  ;;  %v5883_v39 = vmax.f32 %v5851_v40, 0.0  ;;  %v5849_v46 = vadd.f32 %v5817_v37, %v468_v0  ;;  %v5822_v2 = vadd.f32 %v9977_v5, %v5783_v61  ;;  %v5781_v56 = vmul.f32 %v9972_v50, %v5695_v11 }
 0x47e   : > { %v7087_v9 = vpop.f32.mrf.mxu0  ;;  %v482_v40 = vunpack.c.h.bf16 %v7416_v57 }
 0x47f   : > { %5915 = vst [vmem:[%s9990_s11 + $0x78] sm:$0xff] %v5883_v39  ;;  %v5881_v23 = vmax.f32 %v5849_v46, 0.0  ;;  %v5854_v13 = vadd.f32 %v5822_v2, %v473_v63  ;;  %v5820_v53 = vadd.f32 %v9977_v5, %v5781_v56  ;;  %v5784_v41 = vmul.f32 %v7087_v9, %v9972_v50 }
 0x480   : > { %v5698_v45 = vpop.f32.mrf.mxu0  ;;  %v480_v39 = vunpack.c.h.bf16 %v7417_v22 }
 0x481   : > { %5913 = vst [vmem:[%s9990_s11 + $0x68] sm:$0xff] %v5881_v23  ;;  %v5886_v21 = vmax.f32 %v5854_v13, 0.0  ;;  %v5852_v17 = vadd.f32 %v5820_v53, %v471_v34  ;;  %v5823_v25 = vadd.f32 %v9977_v5, %v5784_v41  ;;  %v5782_v62 = vmul.f32 %v9972_v50, %v5698_v45  ;;  %v7418_v23 = vld [vmem:[%s7816_s12 + $0x78] sm:$0xff]  }
 0x482   : > { %v7090_v52 = vpop.f32.mrf.mxu0  ;;  %v485_v13 = vunpack.c.l.bf16 %v7418_v23 }
 0x483   : > { %5918 = vst [vmem:[%s9990_s11 + $0x90] sm:$0xff] %v5886_v21  ;;  %v5884_v16 = vmax.f32 %v5852_v17, 0.0  ;;  %v5855_v28 = vadd.f32 %v5823_v25, %v474_v8  ;;  %v5821_v14 = vadd.f32 %v9977_v5, %v5782_v62  ;;  %v5787_v26 = vmul.f32 %v7090_v52, %v9972_v50  ;;  %v7419_v17 = vld [vmem:[%s7816_s12 + $0x70] sm:$0xff]   ;;  %s6435_s12 = sshll.u32 %s7686_s17, 12  ;;  %s7607_s17 = smov [#allocation11]  }
 0x484   : > { %v5711_v42 = vpop.f32.mrf.mxu0  ;;  %v483_v25 = vunpack.c.l.bf16 %v7419_v17  ;;  %s10097_s23 = scalar_lea.hbm %s10154_s10, %s6435_s12  ;;  %s7530_s22 = sshll.u32 %s7607_s17, 4  ;;  %s7531_s22 = int_to_ptr.vmem [resolvable:$false] %s7530_s22 }
 0x485   : > { %5916 = vst [vmem:[%s9990_s11 + $0x80] sm:$0xff] %v5884_v16  ;;  %v5887_v29 = vmax.f32 %v5855_v28, 0.0  ;;  %v5853_v3 = vadd.f32 %v5821_v14, %v472_v18  ;;  %v5826_v24 = vadd.f32 %v9977_v5, %v5787_v26  ;;  %v5785_v10 = vmul.f32 %v9972_v50, %v5711_v42  ;;  %s7532_s28 = scalar_lea.vmem %s7531_s22, 8192  ;;  %p7533_p13 = scmp.lt.s32.totalorder %s10099_s18, %s7531_s22 }
 0x486   : > { %v7091_v19 = vpop.f32.mrf.mxu0  ;;  %v486_v28 = vunpack.c.h.bf16 %v7418_v23  ;;  %p7534_p0 = scmp.lt.s32.totalorder %s7532_s28, %s7526_s29 }
 0x487   : > { %5919 = vst [vmem:[%s9990_s11 + $0x98] sm:$0xff] %v5887_v29  ;;  %v5885_v48 = vmax.f32 %v5853_v3, 0.0  ;;  %v5858_v32 = vadd.f32 %v5826_v24, %v477_v35  ;;  %v5824_v27 = vadd.f32 %v9977_v5, %v5785_v10  ;;  %v5788_v44 = vmul.f32 %v7091_v19, %v9972_v50 }
 0x488   : > { %v5714_v1 = vpop.f32.mrf.mxu0  ;;  %v484_v29 = vunpack.c.h.bf16 %v7419_v17  ;;  %p7535_p2 = por %p7534_p0, %p7533_p13 }
 0x489   : > { %5917 = vst [vmem:[%s9990_s11 + $0x88] sm:$0xff] %v5885_v48  ;;  %v5890_v55 = vmax.f32 %v5858_v32, 0.0  ;;  %v5856_v6 = vadd.f32 %v5824_v27, %v475_v20  ;;  %v5827_v36 = vadd.f32 %v9977_v5, %v5788_v44  ;;  %v5786_v49 = vmul.f32 %v9972_v50, %v5714_v1 }
 0x48a   : > { %v7094_v43 = vpop.f32.mrf.mxu0  ;;  %p7536_p10 = pnand %p7535_p2, %p7529_p9 }
 0x48b   : > { %5922 = vst [vmem:[%s9990_s11 + $0xb0] sm:$0xff] %v5890_v55  ;;  %v5888_v38 = vmax.f32 %v5856_v6, 0.0  ;;  %v5859_v0 = vadd.f32 %v5827_v36, %v478_v47  ;;  %v5825_v12 = vadd.f32 %v9977_v5, %v5786_v49  ;;  %v5791_v7 = vmul.f32 %v7094_v43, %v9972_v50 }
 0x48c   : > { %v5727_v60 = vpop.f32.mrf.mxu0 }
 0x48d   : > { %5920 = vst [vmem:[%s9990_s11 + $0xa0] sm:$0xff] %v5888_v38  ;;  %v5891_v59 = vmax.f32 %v5859_v0, 0.0  ;;  %v5857_v63 = vadd.f32 %v5825_v12, %v476_v33  ;;  %v5830_v58 = vadd.f32 %v9977_v5, %v5791_v7  ;;  %v5789_v4 = vmul.f32 %v9972_v50, %v5727_v60 }
 0x48e   : > { %v7095_v37 = vpop.f32.mrf.mxu0 }
 0x48f   : > { %5923 = vst [vmem:[%s9990_s11 + $0xb8] sm:$0xff] %v5891_v59  ;;  %v5889_v61 = vmax.f32 %v5857_v63, 0.0  ;;  %v5862_v30 = vadd.f32 %v5830_v58, %v481_v54  ;;  %v5828_v34 = vadd.f32 %v9977_v5, %v5789_v4  ;;  %v5792_v11 = vmul.f32 %v7095_v37, %v9972_v50 }
 0x490   : > { %v5730_v46 = vpop.f32.mrf.mxu0 }
 0x491   : > { %5921 = vst [vmem:[%s9990_s11 + $0xa8] sm:$0xff] %v5889_v61  ;;  %v5894_v2 = vmax.f32 %v5862_v30, 0.0  ;;  %v5860_v56 = vadd.f32 %v5828_v34, %v479_v51  ;;  %v5831_v8 = vadd.f32 %v9977_v5, %v5792_v11  ;;  %v5790_v9 = vmul.f32 %v9972_v50, %v5730_v46 }
 0x492   : > { %v7098_v53 = vpop.f32.mrf.mxu0 }
 0x493   : > { %5926 = vst [vmem:[%s9990_s11 + $0xd0] sm:$0xff] %v5894_v2  ;;  %v5892_v41 = vmax.f32 %v5860_v56, 0.0  ;;  %v5863_v18 = vadd.f32 %v5831_v8, %v482_v40  ;;  %v5829_v45 = vadd.f32 %v9977_v5, %v5790_v9  ;;  %v5795_v21 = vmul.f32 %v7098_v53, %v9972_v50 }
 0x494   : > { %v5743_v62 = vpop.f32.mrf.mxu0 }
 0x495   : > { %5924 = vst [vmem:[%s9990_s11 + $0xc0] sm:$0xff] %v5892_v41  ;;  %v5895_v15 = vmax.f32 %v5863_v18, 0.0  ;;  %v5861_v35 = vadd.f32 %v5829_v45, %v480_v39  ;;  %v5834_v52 = vadd.f32 %v9977_v5, %v5795_v21  ;;  %v5793_v16 = vmul.f32 %v9972_v50, %v5743_v62 }
 0x496   : > { %v7099_v14 = vpop.f32.mrf.mxu0 }
 0x497   : > { %5927 = vst [vmem:[%s9990_s11 + $0xd8] sm:$0xff] %v5895_v15  ;;  %v5893_v26 = vmax.f32 %v5861_v35, 0.0  ;;  %v5866_v31 = vadd.f32 %v5834_v52, %v485_v13  ;;  %v5832_v20 = vadd.f32 %v9977_v5, %v5793_v16  ;;  %v5796_v42 = vmul.f32 %v7099_v14, %v9972_v50 }
 0x498   : > { %v5746_v3 = vpop.f32.mrf.mxu0 }
 0x499   : > { %5925 = vst [vmem:[%s9990_s11 + $0xc8] sm:$0xff] %v5893_v26  ;;  %v5898_v24 = vmax.f32 %v5866_v31, 0.0  ;;  %v5864_v10 = vadd.f32 %v5832_v20, %v483_v25  ;;  %v5835_v47 = vadd.f32 %v9977_v5, %v5796_v42  ;;  %v5794_v19 = vmul.f32 %v9972_v50, %v5746_v3 }
 0x49b   : > { %5930 = vst [vmem:[%s9990_s11 + $0xf0] sm:$0xff] %v5898_v24  ;;  %v5896_v48 = vmax.f32 %v5864_v10, 0.0  ;;  %v5867_v32 = vadd.f32 %v5835_v47, %v486_v28  ;;  %v5833_v27 = vadd.f32 %v9977_v5, %v5794_v19 }
 0x49d   : > { %5928 = vst [vmem:[%s9990_s11 + $0xe0] sm:$0xff] %v5896_v48  ;;  %v5899_v44 = vmax.f32 %v5867_v32, 0.0  ;;  %v5865_v33 = vadd.f32 %v5833_v27, %v484_v29 }
 0x49f   : > { %5931 = vst [vmem:[%s9990_s11 + $0xf8] sm:$0xff] %v5899_v44  ;;  %v5897_v50 = vmax.f32 %v5865_v33, 0.0 }
 0x4a1   : > { %5929 = vst [vmem:[%s9990_s11 + $0xe8] sm:$0xff] %v5897_v50 }
 0x4a2   : > { %7539 = shalt.err (!%p7536_p10)
}
 0x4a3   : > { %s7540_s1 = scalar_lea.hbm %s10097_s23, 4096  ;;  %s7544_s30 = scalar_lea.hbm %s10154_s10, 8192 }
 0x4a4   : > { %p7541_p6 = scmp.ne.s32.totalorder %s10097_s23, %s7540_s1  ;;  %p7545_p3 = scmp.lt.s32.totalorder %s10097_s23, %s10154_s10 }
 0x4a5   : > { %p7546_p11 = scmp.lt.s32.totalorder %s7544_s30, %s7540_s1 }
 0x4a6   : > { %p7542_p4 = pnand %p7541_p6, %p10382_p1 }
 0x4a7   : > { %p7547_p5 = por %p7546_p11, %p7545_p3 }
 0x4a8   : > { %p7543_p8 = pneg %p7542_p4 }
 0x4aa   : > { %p7548_p7 = pnand %p7547_p5, %p7543_p8 }
 0x4ac   : > { %7551 = shalt.err (!%p7548_p7)
}
 0x4ad   : > { %s7608_s24 = smov 128   ;;  %s7609_s27 = smov 8  }
 0x4ae   : > { %7130 = dma.vmem_to_hbm [thread:$0]  (%p10382_p1), %s10099_s18, 4096, %s10097_s23, %s5933_s4, %s7608_s24, %s7608_s24, %s7609_s27  }
 0x4af PF: > { %s5961_s29 = sand.u32 1, %s7586_s13   ;;  %p10383_p12 = scmp.ne.s32.totalorder %s10182_s20, 0 }
 0x4b0   : > { %p10384_p9 = scmp.ge.s32.totalorder %s7598_s16, 2  ;;  %s5962_s17 = scalar_lea.sflag [#allocation5], %s5961_s29 }
 0x4b2   : > { %p7147_p13 = pnand %p10384_p9, %p10383_p12 }
 0x4b4   : > { %p7148_p0 = pneg %p7147_p13 }
 0x4b6   : > { %7581 = dma.done.wait (%p7148_p0), %s5962_s17, 4096  }
 0x4b7   : > { %7583 = vsyncadd (%p7148_p0), %s5962_s17, 4294963200  ;;  %s10385_s22 = sld [smem:[#allocation16_spill]]  ;;  %p25_p2 = scmp.ge.s32.totalorder %s7754_s26, 4  }
 0x4b8   : > { %s10386_s13 = smov %s7590_s14  ;;  %s10387_s14 = smov %s7594_s15 }
 0x4b9   : > { %s10389_s16 = smov %s7754_s26  ;;  %27 = sbr.rel (!%p25_p2) target bundleno = 11 (0xb), region = 120 }
 0x4bd   : > { %s10388_s15 = smov %s10385_s22 }
 0x4be   :  { %5967 = vsyncpa [#allocation4], 1 }
 0x4bf   :  { %5969 = vsyncpa [#allocation4 + $0x1], 1 }
 0x4c0   :  { %5970 = vsyncpa [#allocation7], 1 }
 0x4c1   :  { %5971 = vsyncpa [#allocation10], 1 }
 0x4c2   :  { %5972 = vsyncpa [#allocation5], 1 }
 0x4c3   :  { %5974 = vsyncpa [#allocation5 + $0x1], 1 }

</bundles_post_ra>
